<compile_context>
chip_gen: v7x
topology: tpu7x:2x2x1
jax: 0.10.0
libtpu: 0.0.40
codegen_flags: <defaults>
</compile_context>

<pallas_src>
import jax
import jax.numpy as jnp
from jax.experimental import pallas as pl
from jax.experimental.pallas import tpu as pltpu

KSIZE = 7
PAD = 3           # 'same' padding for kernel_size=7
N_ACC = 4         # independent accumulators for the stencil (VALU ILP)


def spatial_attention_kernel(w_ref, x_ref, o_ref, pad_ref):
    # w_ref  : SMEM (2*7*7,) f32     flattened conv weight (O=1, I=2, kH, kW)
    # x_ref  : VMEM (Nb, C, H, W)    Nb batch elements
    # o_ref  : VMEM (Nb, 1, H, W)    output attention maps
    # pad_ref: VMEM (2, H+6, W+6) f32 scratch holding zero-padded [avg, max]
    Nb, C, H, W = x_ref.shape
    _, Hp, Wp = pad_ref.shape

    # Zero only the border strips once per grid step.  The interior is fully
    # rewritten for every image below, so re-zeroing it would be a redundant
    # full-scratch store on the scarce vector-store slot.
    pad_ref[:, :PAD, :] = jnp.zeros((2, PAD, Wp), jnp.float32)
    pad_ref[:, Hp - PAD:, :] = jnp.zeros((2, PAD, Wp), jnp.float32)
    pad_ref[:, :, :PAD] = jnp.zeros((2, Hp, PAD), jnp.float32)
    pad_ref[:, :, Wp - PAD:] = jnp.zeros((2, Hp, PAD), jnp.float32)

    # Hoist the 98 SMEM scalar weight reads out of the per-image loop.
    wts = [w_ref[i] for i in range(2 * KSIZE * KSIZE)]

    inv_c = jnp.float32(1.0 / C)

    for nb in range(Nb):  # static unroll over the images in this block
        # --- streamed channel mean / max (one (H,W) slice at a time) -------
        v0 = x_ref[nb, 0].astype(jnp.float32)
        csum, cmax = v0, v0
        for c in range(1, C):
            v = x_ref[nb, c].astype(jnp.float32)
            csum = csum + v
            cmax = jnp.maximum(cmax, v)

        pad_ref[0, PAD:PAD + H, PAD:PAD + W] = csum * inv_c
        pad_ref[1, PAD:PAD + H, PAD:PAD + W] = cmax

        # --- 7x7 conv over the 2 reduced channels ---------------------------
        # 14 slab loads; kw shifts are value-level slices of the loaded slab.
        accs = [jnp.zeros((H, W), jnp.float32) for _ in range(N_ACC)]
        tap = 0
        for c in range(2):
            for kh in range(KSIZE):
                slab = pad_ref[c, kh:kh + H, :]          # (H, Wp): single load
                for kw in range(KSIZE):
                    wv = wts[c * KSIZE * KSIZE + kh * KSIZE + kw]
                    accs[tap % N_ACC] = accs[tap % N_ACC] + wv * slab[:, kw:kw + W]
                    tap += 1
        acc = (accs[0] + accs[1]) + (accs[2] + accs[3])

        # NOTE: for tiny W the store is lane-sparse; a lane-dense (N, H*W)
        # staging layout could be added later if the store path ever binds.
        o_ref[nb, 0] = jax.nn.sigmoid(acc).astype(o_ref.dtype)


def _pick_batch_block(n, c, h, w, itemsize, max_nb=8, per_buffer_budget=8 << 20):
    """Largest divisor of n (<= max_nb) whose input block fits the budget."""
    best = 1
    for nb in range(1, min(n, max_nb) + 1):
        if n % nb == 0 and nb * c * h * w * itemsize <= per_buffer_budget:
            best = nb
    return best


@jax.jit
def spatial_attention(x, w):
    """x: (N, C, H, W); w: (1, 2, 7, 7) conv weight (OIHW). Returns (N, 1, H, W)."""
    N, C, H, W = x.shape
    w_flat = w.astype(jnp.float32).reshape(-1)           # (98,) -> SMEM scalars

    itemsize = jnp.dtype(x.dtype).itemsize
    Nb = _pick_batch_block(N, C, H, W, itemsize)
    Hp, Wp = H + 2 * PAD, W + 2 * PAD

    # Explicit scoped-VMEM sizing: double-buffered input/output blocks plus the
    # pad scratch, with headroom.  Only raise above the conservative default
    # when needed; cap well below v7x's 64 MiB physical per-core VMEM.
    need = (2 * Nb * C * H * W * itemsize      # double-buffered input block
            + 2 * Nb * H * W * itemsize        # double-buffered output block
            + 2 * Hp * Wp * 4)                 # pad scratch
    vmem_limit = None
    if 2 * need + (2 << 20) > (16 << 20):      # 16 MiB = smallest (v5e) default
        vmem_limit = min(2 * need + (2 << 20), 48 << 20)

    return pl.pallas_call(
        spatial_attention_kernel,
        out_shape=jax.ShapeDtypeStruct((N, 1, H, W), x.dtype),
        grid=(N // Nb,),
        in_specs=[
            pl.BlockSpec(memory_space=pltpu.MemorySpace.SMEM),        # weights
            pl.BlockSpec((Nb, C, H, W), lambda n: (n, 0, 0, 0)),      # x block
        ],
        out_specs=pl.BlockSpec((Nb, 1, H, W), lambda n: (n, 0, 0, 0)),
        scratch_shapes=[pltpu.VMEM((2, Hp, Wp), jnp.float32)],
        compiler_params=pltpu.CompilerParams(
            dimension_semantics=("parallel",),
            vmem_limit_bytes=vmem_limit,
        ),
    )(w_flat, x)


def reference_forward(x, w):
    """Pure-JAX reference matching the PyTorch module exactly."""
    avg = jnp.mean(x, axis=1, keepdims=True)
    mx = jnp.max(x, axis=1, keepdims=True)
    cat = jnp.concatenate([avg, mx], axis=1)
    y = jax.lax.conv_general_dilated(
        cat, w, window_strides=(1, 1), padding=((PAD, PAD), (PAD, PAD)),
        dimension_numbers=("NCHW", "OIHW", "NCHW"))
    return jax.nn.sigmoid(y)


if __name__ == "__main__":
    key = jax.random.PRNGKey(0)
    kx, kw = jax.random.split(key)

    N, C, H, W = 2, 4, 16, 16
    x = jax.random.normal(kx, (N, C, H, W), dtype=jnp.float32)
    # Deterministic synthetic conv weight, shape from nn.Conv2d(2, 1, 7, bias=False).
    conv_w = 0.1 * jax.random.normal(kw, (1, 2, KSIZE, KSIZE), dtype=jnp.float32)

    out = spatial_attention(x, conv_w)
    out = jax.block_until_ready(out)

    ref = reference_forward(x, conv_w)
    assert out.shape == (N, 1, H, W), out.shape
    assert jnp.allclose(out, ref, atol=1e-5, rtol=1e-5), float(jnp.max(jnp.abs(out - ref)))

    print("KERNEL_OK")
</pallas_src>

<mosaic_0001>
module attributes {stable_mosaic.version = 11 : i64} {
  func.func @spatial_attention_kernel(%arg0: i32, %arg1: memref<98xf32, #tpu.memory_space<smem>>, %arg2: memref<2x4x16x16xf32, #tpu.memory_space<vmem>>, %arg3: memref<2x1x16x16xf32, #tpu.memory_space<vmem>>, %arg4: memref<2x22x22xf32, #tpu.memory_space<vmem>>) attributes {dimension_semantics = [#tpu.dimension_semantics<parallel>], iteration_bounds = array<i64: 1>, scalar_prefetch = 0 : i64, scratch_operands = 1 : i64, tpu.core_type = #tpu.core_type<tc>, window_params = [{transform_indices = @transform_0, window_bounds = array<i64: 98>}, {transform_indices = @transform_1, window_bounds = array<i64: 2, 4, 16, 16>}, {transform_indices = @transform_2, window_bounds = array<i64: 2, 1, 16, 16>}]} {
    %cst = arith.constant 0.000000e+00 : f32
    %0 = vector.broadcast %cst : f32 to vector<2x3x22xf32>
    %c0 = arith.constant 0 : index
    %c0_0 = arith.constant 0 : index
    %c0_1 = arith.constant 0 : index
    %1 = vector.load %arg4[%c0, %c0_0, %c0_1] : memref<2x22x22xf32, #tpu.memory_space<vmem>>, vector<2x3x22xf32>
    tpu.vector_store %arg4[%c0, %c0_0, %c0_1], %0 {strides = array<i32>} : memref<2x22x22xf32, #tpu.memory_space<vmem>>, vector<2x3x22xf32>,
    %cst_2 = arith.constant 0.000000e+00 : f32
    %2 = vector.broadcast %cst_2 : f32 to vector<2x3x22xf32>
    %c0_3 = arith.constant 0 : index
    %c19 = arith.constant 19 : index
    %c0_4 = arith.constant 0 : index
    %3 = vector.load %arg4[%c0_3, %c19, %c0_4] : memref<2x22x22xf32, #tpu.memory_space<vmem>>, vector<2x3x22xf32>
    tpu.vector_store %arg4[%c0_3, %c19, %c0_4], %2 {strides = array<i32>} : memref<2x22x22xf32, #tpu.memory_space<vmem>>, vector<2x3x22xf32>,
    %cst_5 = arith.constant 0.000000e+00 : f32
    %4 = vector.broadcast %cst_5 : f32 to vector<2x22x3xf32>
    %c0_6 = arith.constant 0 : index
    %c0_7 = arith.constant 0 : index
    %c0_8 = arith.constant 0 : index
    %5 = vector.load %arg4[%c0_6, %c0_7, %c0_8] : memref<2x22x22xf32, #tpu.memory_space<vmem>>, vector<2x22x3xf32>
    tpu.vector_store %arg4[%c0_6, %c0_7, %c0_8], %4 {strides = array<i32>} : memref<2x22x22xf32, #tpu.memory_space<vmem>>, vector<2x22x3xf32>,
    %cst_9 = arith.constant 0.000000e+00 : f32
    %6 = vector.broadcast %cst_9 : f32 to vector<2x22x3xf32>
    %c0_10 = arith.constant 0 : index
    %c0_11 = arith.constant 0 : index
    %c19_12 = arith.constant 19 : index
    %7 = vector.load %arg4[%c0_10, %c0_11, %c19_12] : memref<2x22x22xf32, #tpu.memory_space<vmem>>, vector<2x22x3xf32>
    tpu.vector_store %arg4[%c0_10, %c0_11, %c19_12], %6 {strides = array<i32>} : memref<2x22x22xf32, #tpu.memory_space<vmem>>, vector<2x22x3xf32>,
    %c0_13 = arith.constant 0 : index
    %8 = memref.load %arg1[%c0_13] : memref<98xf32, #tpu.memory_space<smem>>
    %c1 = arith.constant 1 : index
    %9 = memref.load %arg1[%c1] : memref<98xf32, #tpu.memory_space<smem>>
    %c2 = arith.constant 2 : index
    %10 = memref.load %arg1[%c2] : memref<98xf32, #tpu.memory_space<smem>>
    %c3 = arith.constant 3 : index
    %11 = memref.load %arg1[%c3] : memref<98xf32, #tpu.memory_space<smem>>
    %c4 = arith.constant 4 : index
    %12 = memref.load %arg1[%c4] : memref<98xf32, #tpu.memory_space<smem>>
    %c5 = arith.constant 5 : index
    %13 = memref.load %arg1[%c5] : memref<98xf32, #tpu.memory_space<smem>>
    %c6 = arith.constant 6 : index
    %14 = memref.load %arg1[%c6] : memref<98xf32, #tpu.memory_space<smem>>
    %c7 = arith.constant 7 : index
    %15 = memref.load %arg1[%c7] : memref<98xf32, #tpu.memory_space<smem>>
    %c8 = arith.constant 8 : index
    %16 = memref.load %arg1[%c8] : memref<98xf32, #tpu.memory_space<smem>>
    %c9 = arith.constant 9 : index
    %17 = memref.load %arg1[%c9] : memref<98xf32, #tpu.memory_space<smem>>
    %c10 = arith.constant 10 : index
    %18 = memref.load %arg1[%c10] : memref<98xf32, #tpu.memory_space<smem>>
    %c11 = arith.constant 11 : index
    %19 = memref.load %arg1[%c11] : memref<98xf32, #tpu.memory_space<smem>>
    %c12 = arith.constant 12 : index
    %20 = memref.load %arg1[%c12] : memref<98xf32, #tpu.memory_space<smem>>
    %c13 = arith.constant 13 : index
    %21 = memref.load %arg1[%c13] : memref<98xf32, #tpu.memory_space<smem>>
    %c14 = arith.constant 14 : index
    %22 = memref.load %arg1[%c14] : memref<98xf32, #tpu.memory_space<smem>>
    %c15 = arith.constant 15 : index
    %23 = memref.load %arg1[%c15] : memref<98xf32, #tpu.memory_space<smem>>
    %c16 = arith.constant 16 : index
    %24 = memref.load %arg1[%c16] : memref<98xf32, #tpu.memory_space<smem>>
    %c17 = arith.constant 17 : index
    %25 = memref.load %arg1[%c17] : memref<98xf32, #tpu.memory_space<smem>>
    %c18 = arith.constant 18 : index
    %26 = memref.load %arg1[%c18] : memref<98xf32, #tpu.memory_space<smem>>
    %c19_14 = arith.constant 19 : index
    %27 = memref.load %arg1[%c19_14] : memref<98xf32, #tpu.memory_space<smem>>
    %c20 = arith.constant 20 : index
    %28 = memref.load %arg1[%c20] : memref<98xf32, #tpu.memory_space<smem>>
    %c21 = arith.constant 21 : index
    %29 = memref.load %arg1[%c21] : memref<98xf32, #tpu.memory_space<smem>>
    %c22 = arith.constant 22 : index
    %30 = memref.load %arg1[%c22] : memref<98xf32, #tpu.memory_space<smem>>
    %c23 = arith.constant 23 : index
    %31 = memref.load %arg1[%c23] : memref<98xf32, #tpu.memory_space<smem>>
    %c24 = arith.constant 24 : index
    %32 = memref.load %arg1[%c24] : memref<98xf32, #tpu.memory_space<smem>>
    %c25 = arith.constant 25 : index
    %33 = memref.load %arg1[%c25] : memref<98xf32, #tpu.memory_space<smem>>
    %c26 = arith.constant 26 : index
    %34 = memref.load %arg1[%c26] : memref<98xf32, #tpu.memory_space<smem>>
    %c27 = arith.constant 27 : index
    %35 = memref.load %arg1[%c27] : memref<98xf32, #tpu.memory_space<smem>>
    %c28 = arith.constant 28 : index
    %36 = memref.load %arg1[%c28] : memref<98xf32, #tpu.memory_space<smem>>
    %c29 = arith.constant 29 : index
    %37 = memref.load %arg1[%c29] : memref<98xf32, #tpu.memory_space<smem>>
    %c30 = arith.constant 30 : index
    %38 = memref.load %arg1[%c30] : memref<98xf32, #tpu.memory_space<smem>>
    %c31 = arith.constant 31 : index
    %39 = memref.load %arg1[%c31] : memref<98xf32, #tpu.memory_space<smem>>
    %c32 = arith.constant 32 : index
    %40 = memref.load %arg1[%c32] : memref<98xf32, #tpu.memory_space<smem>>
    %c33 = arith.constant 33 : index
    %41 = memref.load %arg1[%c33] : memref<98xf32, #tpu.memory_space<smem>>
    %c34 = arith.constant 34 : index
    %42 = memref.load %arg1[%c34] : memref<98xf32, #tpu.memory_space<smem>>
    %c35 = arith.constant 35 : index
    %43 = memref.load %arg1[%c35] : memref<98xf32, #tpu.memory_space<smem>>
    %c36 = arith.constant 36 : index
    %44 = memref.load %arg1[%c36] : memref<98xf32, #tpu.memory_space<smem>>
    %c37 = arith.constant 37 : index
    %45 = memref.load %arg1[%c37] : memref<98xf32, #tpu.memory_space<smem>>
    %c38 = arith.constant 38 : index
    %46 = memref.load %arg1[%c38] : memref<98xf32, #tpu.memory_space<smem>>
    %c39 = arith.constant 39 : index
    %47 = memref.load %arg1[%c39] : memref<98xf32, #tpu.memory_space<smem>>
    %c40 = arith.constant 40 : index
    %48 = memref.load %arg1[%c40] : memref<98xf32, #tpu.memory_space<smem>>
    %c41 = arith.constant 41 : index
    %49 = memref.load %arg1[%c41] : memref<98xf32, #tpu.memory_space<smem>>
    %c42 = arith.constant 42 : index
    %50 = memref.load %arg1[%c42] : memref<98xf32, #tpu.memory_space<smem>>
    %c43 = arith.constant 43 : index
    %51 = memref.load %arg1[%c43] : memref<98xf32, #tpu.memory_space<smem>>
    %c44 = arith.constant 44 : index
    %52 = memref.load %arg1[%c44] : memref<98xf32, #tpu.memory_space<smem>>
    %c45 = arith.constant 45 : index
    %53 = memref.load %arg1[%c45] : memref<98xf32, #tpu.memory_space<smem>>
    %c46 = arith.constant 46 : index
    %54 = memref.load %arg1[%c46] : memref<98xf32, #tpu.memory_space<smem>>
    %c47 = arith.constant 47 : index
    %55 = memref.load %arg1[%c47] : memref<98xf32, #tpu.memory_space<smem>>
    %c48 = arith.constant 48 : index
    %56 = memref.load %arg1[%c48] : memref<98xf32, #tpu.memory_space<smem>>
    %c49 = arith.constant 49 : index
    %57 = memref.load %arg1[%c49] : memref<98xf32, #tpu.memory_space<smem>>
    %c50 = arith.constant 50 : index
    %58 = memref.load %arg1[%c50] : memref<98xf32, #tpu.memory_space<smem>>
    %c51 = arith.constant 51 : index
    %59 = memref.load %arg1[%c51] : memref<98xf32, #tpu.memory_space<smem>>
    %c52 = arith.constant 52 : index
    %60 = memref.load %arg1[%c52] : memref<98xf32, #tpu.memory_space<smem>>
    %c53 = arith.constant 53 : index
    %61 = memref.load %arg1[%c53] : memref<98xf32, #tpu.memory_space<smem>>
    %c54 = arith.constant 54 : index
    %62 = memref.load %arg1[%c54] : memref<98xf32, #tpu.memory_space<smem>>
    %c55 = arith.constant 55 : index
    %63 = memref.load %arg1[%c55] : memref<98xf32, #tpu.memory_space<smem>>
    %c56 = arith.constant 56 : index
    %64 = memref.load %arg1[%c56] : memref<98xf32, #tpu.memory_space<smem>>
    %c57 = arith.constant 57 : index
    %65 = memref.load %arg1[%c57] : memref<98xf32, #tpu.memory_space<smem>>
    %c58 = arith.constant 58 : index
    %66 = memref.load %arg1[%c58] : memref<98xf32, #tpu.memory_space<smem>>
    %c59 = arith.constant 59 : index
    %67 = memref.load %arg1[%c59] : memref<98xf32, #tpu.memory_space<smem>>
    %c60 = arith.constant 60 : index
    %68 = memref.load %arg1[%c60] : memref<98xf32, #tpu.memory_space<smem>>
    %c61 = arith.constant 61 : index
    %69 = memref.load %arg1[%c61] : memref<98xf32, #tpu.memory_space<smem>>
    %c62 = arith.constant 62 : index
    %70 = memref.load %arg1[%c62] : memref<98xf32, #tpu.memory_space<smem>>
    %c63 = arith.constant 63 : index
    %71 = memref.load %arg1[%c63] : memref<98xf32, #tpu.memory_space<smem>>
    %c64 = arith.constant 64 : index
    %72 = memref.load %arg1[%c64] : memref<98xf32, #tpu.memory_space<smem>>
    %c65 = arith.constant 65 : index
    %73 = memref.load %arg1[%c65] : memref<98xf32, #tpu.memory_space<smem>>
    %c66 = arith.constant 66 : index
    %74 = memref.load %arg1[%c66] : memref<98xf32, #tpu.memory_space<smem>>
    %c67 = arith.constant 67 : index
    %75 = memref.load %arg1[%c67] : memref<98xf32, #tpu.memory_space<smem>>
    %c68 = arith.constant 68 : index
    %76 = memref.load %arg1[%c68] : memref<98xf32, #tpu.memory_space<smem>>
    %c69 = arith.constant 69 : index
    %77 = memref.load %arg1[%c69] : memref<98xf32, #tpu.memory_space<smem>>
    %c70 = arith.constant 70 : index
    %78 = memref.load %arg1[%c70] : memref<98xf32, #tpu.memory_space<smem>>
    %c71 = arith.constant 71 : index
    %79 = memref.load %arg1[%c71] : memref<98xf32, #tpu.memory_space<smem>>
    %c72 = arith.constant 72 : index
    %80 = memref.load %arg1[%c72] : memref<98xf32, #tpu.memory_space<smem>>
    %c73 = arith.constant 73 : index
    %81 = memref.load %arg1[%c73] : memref<98xf32, #tpu.memory_space<smem>>
    %c74 = arith.constant 74 : index
    %82 = memref.load %arg1[%c74] : memref<98xf32, #tpu.memory_space<smem>>
    %c75 = arith.constant 75 : index
    %83 = memref.load %arg1[%c75] : memref<98xf32, #tpu.memory_space<smem>>
    %c76 = arith.constant 76 : index
    %84 = memref.load %arg1[%c76] : memref<98xf32, #tpu.memory_space<smem>>
    %c77 = arith.constant 77 : index
    %85 = memref.load %arg1[%c77] : memref<98xf32, #tpu.memory_space<smem>>
    %c78 = arith.constant 78 : index
    %86 = memref.load %arg1[%c78] : memref<98xf32, #tpu.memory_space<smem>>
    %c79 = arith.constant 79 : index
    %87 = memref.load %arg1[%c79] : memref<98xf32, #tpu.memory_space<smem>>
    %c80 = arith.constant 80 : index
    %88 = memref.load %arg1[%c80] : memref<98xf32, #tpu.memory_space<smem>>
    %c81 = arith.constant 81 : index
    %89 = memref.load %arg1[%c81] : memref<98xf32, #tpu.memory_space<smem>>
    %c82 = arith.constant 82 : index
    %90 = memref.load %arg1[%c82] : memref<98xf32, #tpu.memory_space<smem>>
    %c83 = arith.constant 83 : index
    %91 = memref.load %arg1[%c83] : memref<98xf32, #tpu.memory_space<smem>>
    %c84 = arith.constant 84 : index
    %92 = memref.load %arg1[%c84] : memref<98xf32, #tpu.memory_space<smem>>
    %c85 = arith.constant 85 : index
    %93 = memref.load %arg1[%c85] : memref<98xf32, #tpu.memory_space<smem>>
    %c86 = arith.constant 86 : index
    %94 = memref.load %arg1[%c86] : memref<98xf32, #tpu.memory_space<smem>>
    %c87 = arith.constant 87 : index
    %95 = memref.load %arg1[%c87] : memref<98xf32, #tpu.memory_space<smem>>
    %c88 = arith.constant 88 : index
    %96 = memref.load %arg1[%c88] : memref<98xf32, #tpu.memory_space<smem>>
    %c89 = arith.constant 89 : index
    %97 = memref.load %arg1[%c89] : memref<98xf32, #tpu.memory_space<smem>>
    %c90 = arith.constant 90 : index
    %98 = memref.load %arg1[%c90] : memref<98xf32, #tpu.memory_space<smem>>
    %c91 = arith.constant 91 : index
    %99 = memref.load %arg1[%c91] : memref<98xf32, #tpu.memory_space<smem>>
    %c92 = arith.constant 92 : index
    %100 = memref.load %arg1[%c92] : memref<98xf32, #tpu.memory_space<smem>>
    %c93 = arith.constant 93 : index
    %101 = memref.load %arg1[%c93] : memref<98xf32, #tpu.memory_space<smem>>
    %c94 = arith.constant 94 : index
    %102 = memref.load %arg1[%c94] : memref<98xf32, #tpu.memory_space<smem>>
    %c95 = arith.constant 95 : index
    %103 = memref.load %arg1[%c95] : memref<98xf32, #tpu.memory_space<smem>>
    %c96 = arith.constant 96 : index
    %104 = memref.load %arg1[%c96] : memref<98xf32, #tpu.memory_space<smem>>
    %c97 = arith.constant 97 : index
    %105 = memref.load %arg1[%c97] : memref<98xf32, #tpu.memory_space<smem>>
    %c0_15 = arith.constant 0 : index
    %c0_16 = arith.constant 0 : index
    %c0_17 = arith.constant 0 : index
    %c0_18 = arith.constant 0 : index
    %106 = vector.load %arg2[%c0_15, %c0_16, %c0_17, %c0_18] : memref<2x4x16x16xf32, #tpu.memory_space<vmem>>, vector<1x1x16x16xf32>
    %107 = vector.shape_cast %106 : vector<1x1x16x16xf32> to vector<16x16xf32>
    %c0_19 = arith.constant 0 : index
    %c1_20 = arith.constant 1 : index
    %c0_21 = arith.constant 0 : index
    %c0_22 = arith.constant 0 : index
    %108 = vector.load %arg2[%c0_19, %c1_20, %c0_21, %c0_22] : memref<2x4x16x16xf32, #tpu.memory_space<vmem>>, vector<1x1x16x16xf32>
    %109 = vector.shape_cast %108 : vector<1x1x16x16xf32> to vector<16x16xf32>
    %110 = arith.addf %107, %109 : vector<16x16xf32>
    %111 = arith.maximumf %107, %109 : vector<16x16xf32>
    %c0_23 = arith.constant 0 : index
    %c2_24 = arith.constant 2 : index
    %c0_25 = arith.constant 0 : index
    %c0_26 = arith.constant 0 : index
    %112 = vector.load %arg2[%c0_23, %c2_24, %c0_25, %c0_26] : memref<2x4x16x16xf32, #tpu.memory_space<vmem>>, vector<1x1x16x16xf32>
    %113 = vector.shape_cast %112 : vector<1x1x16x16xf32> to vector<16x16xf32>
    %114 = arith.addf %110, %113 : vector<16x16xf32>
    %115 = arith.maximumf %111, %113 : vector<16x16xf32>
    %c0_27 = arith.constant 0 : index
    %c3_28 = arith.constant 3 : index
    %c0_29 = arith.constant 0 : index
    %c0_30 = arith.constant 0 : index
    %116 = vector.load %arg2[%c0_27, %c3_28, %c0_29, %c0_30] : memref<2x4x16x16xf32, #tpu.memory_space<vmem>>, vector<1x1x16x16xf32>
    %117 = vector.shape_cast %116 : vector<1x1x16x16xf32> to vector<16x16xf32>
    %118 = arith.addf %114, %117 : vector<16x16xf32>
    %119 = arith.maximumf %115, %117 : vector<16x16xf32>
    %cst_31 = arith.constant 2.500000e-01 : f32
    %120 = vector.broadcast %cst_31 : f32 to vector<16x16xf32>
    %121 = arith.mulf %118, %120 : vector<16x16xf32>
    %c0_32 = arith.constant 0 : index
    %c3_33 = arith.constant 3 : index
    %c3_34 = arith.constant 3 : index
    %122 = vector.load %arg4[%c0_32, %c3_33, %c3_34] : memref<2x22x22xf32, #tpu.memory_space<vmem>>, vector<1x16x16xf32>
    %123 = vector.shape_cast %122 : vector<1x16x16xf32> to vector<16x16xf32>
    %124 = vector.shape_cast %121 : vector<16x16xf32> to vector<1x16x16xf32>
    tpu.vector_store %arg4[%c0_32, %c3_33, %c3_34], %124 {strides = array<i32>} : memref<2x22x22xf32, #tpu.memory_space<vmem>>, vector<1x16x16xf32>,
    %c1_35 = arith.constant 1 : index
    %c3_36 = arith.constant 3 : index
    %c3_37 = arith.constant 3 : index
    %125 = vector.load %arg4[%c1_35, %c3_36, %c3_37] : memref<2x22x22xf32, #tpu.memory_space<vmem>>, vector<1x16x16xf32>
    %126 = vector.shape_cast %125 : vector<1x16x16xf32> to vector<16x16xf32>
    %127 = vector.shape_cast %119 : vector<16x16xf32> to vector<1x16x16xf32>
    tpu.vector_store %arg4[%c1_35, %c3_36, %c3_37], %127 {strides = array<i32>} : memref<2x22x22xf32, #tpu.memory_space<vmem>>, vector<1x16x16xf32>,
    %cst_38 = arith.constant 0.000000e+00 : f32
    %128 = vector.broadcast %cst_38 : f32 to vector<16x16xf32>
    %cst_39 = arith.constant 0.000000e+00 : f32
    %129 = vector.broadcast %cst_39 : f32 to vector<16x16xf32>
    %cst_40 = arith.constant 0.000000e+00 : f32
    %130 = vector.broadcast %cst_40 : f32 to vector<16x16xf32>
    %cst_41 = arith.constant 0.000000e+00 : f32
    %131 = vector.broadcast %cst_41 : f32 to vector<16x16xf32>
    %c0_42 = arith.constant 0 : index
    %c0_43 = arith.constant 0 : index
    %c0_44 = arith.constant 0 : index
    %132 = vector.load %arg4[%c0_42, %c0_43, %c0_44] : memref<2x22x22xf32, #tpu.memory_space<vmem>>, vector<1x16x22xf32>
    %133 = vector.shape_cast %132 : vector<1x16x22xf32> to vector<16x22xf32>
    %134 = vector.extract_strided_slice %133 {offsets = [0, 0], sizes = [16, 16], strides = [1, 1]} : vector<16x22xf32> to vector<16x16xf32>
    %135 = vector.broadcast %8 : f32 to vector<16x16xf32>
    %136 = arith.mulf %135, %134 : vector<16x16xf32>
    %137 = arith.addf %128, %136 : vector<16x16xf32>
    %138 = vector.extract_strided_slice %133 {offsets = [0, 1], sizes = [16, 16], strides = [1, 1]} : vector<16x22xf32> to vector<16x16xf32>
    %139 = vector.broadcast %9 : f32 to vector<16x16xf32>
    %140 = arith.mulf %139, %138 : vector<16x16xf32>
    %141 = arith.addf %129, %140 : vector<16x16xf32>
    %142 = vector.extract_strided_slice %133 {offsets = [0, 2], sizes = [16, 16], strides = [1, 1]} : vector<16x22xf32> to vector<16x16xf32>
    %143 = vector.broadcast %10 : f32 to vector<16x16xf32>
    %144 = arith.mulf %143, %142 : vector<16x16xf32>
    %145 = arith.addf %130, %144 : vector<16x16xf32>
    %146 = vector.extract_strided_slice %133 {offsets = [0, 3], sizes = [16, 16], strides = [1, 1]} : vector<16x22xf32> to vector<16x16xf32>
    %147 = vector.broadcast %11 : f32 to vector<16x16xf32>
    %148 = arith.mulf %147, %146 : vector<16x16xf32>
    %149 = arith.addf %131, %148 : vector<16x16xf32>
    %150 = vector.extract_strided_slice %133 {offsets = [0, 4], sizes = [16, 16], strides = [1, 1]} : vector<16x22xf32> to vector<16x16xf32>
    %151 = vector.broadcast %12 : f32 to vector<16x16xf32>
    %152 = arith.mulf %151, %150 : vector<16x16xf32>
    %153 = arith.addf %137, %152 : vector<16x16xf32>
    %154 = vector.extract_strided_slice %133 {offsets = [0, 5], sizes = [16, 16], strides = [1, 1]} : vector<16x22xf32> to vector<16x16xf32>
    %155 = vector.broadcast %13 : f32 to vector<16x16xf32>
    %156 = arith.mulf %155, %154 : vector<16x16xf32>
    %157 = arith.addf %141, %156 : vector<16x16xf32>
    %158 = vector.extract_strided_slice %133 {offsets = [0, 6], sizes = [16, 16], strides = [1, 1]} : vector<16x22xf32> to vector<16x16xf32>
    %159 = vector.broadcast %14 : f32 to vector<16x16xf32>
    %160 = arith.mulf %159, %158 : vector<16x16xf32>
    %161 = arith.addf %145, %160 : vector<16x16xf32>
    %c0_45 = arith.constant 0 : index
    %c1_46 = arith.constant 1 : index
    %c0_47 = arith.constant 0 : index
    %162 = vector.load %arg4[%c0_45, %c1_46, %c0_47] : memref<2x22x22xf32, #tpu.memory_space<vmem>>, vector<1x16x22xf32>
    %163 = vector.shape_cast %162 : vector<1x16x22xf32> to vector<16x22xf32>
    %164 = vector.extract_strided_slice %163 {offsets = [0, 0], sizes = [16, 16], strides = [1, 1]} : vector<16x22xf32> to vector<16x16xf32>
    %165 = vector.broadcast %15 : f32 to vector<16x16xf32>
    %166 = arith.mulf %165, %164 : vector<16x16xf32>
    %167 = arith.addf %149, %166 : vector<16x16xf32>
    %168 = vector.extract_strided_slice %163 {offsets = [0, 1], sizes = [16, 16], strides = [1, 1]} : vector<16x22xf32> to vector<16x16xf32>
    %169 = vector.broadcast %16 : f32 to vector<16x16xf32>
    %170 = arith.mulf %169, %168 : vector<16x16xf32>
    %171 = arith.addf %153, %170 : vector<16x16xf32>
    %172 = vector.extract_strided_slice %163 {offsets = [0, 2], sizes = [16, 16], strides = [1, 1]} : vector<16x22xf32> to vector<16x16xf32>
    %173 = vector.broadcast %17 : f32 to vector<16x16xf32>
    %174 = arith.mulf %173, %172 : vector<16x16xf32>
    %175 = arith.addf %157, %174 : vector<16x16xf32>
    %176 = vector.extract_strided_slice %163 {offsets = [0, 3], sizes = [16, 16], strides = [1, 1]} : vector<16x22xf32> to vector<16x16xf32>
    %177 = vector.broadcast %18 : f32 to vector<16x16xf32>
    %178 = arith.mulf %177, %176 : vector<16x16xf32>
    %179 = arith.addf %161, %178 : vector<16x16xf32>
    %180 = vector.extract_strided_slice %163 {offsets = [0, 4], sizes = [16, 16], strides = [1, 1]} : vector<16x22xf32> to vector<16x16xf32>
    %181 = vector.broadcast %19 : f32 to vector<16x16xf32>
    %182 = arith.mulf %181, %180 : vector<16x16xf32>
    %183 = arith.addf %167, %182 : vector<16x16xf32>
    %184 = vector.extract_strided_slice %163 {offsets = [0, 5], sizes = [16, 16], strides = [1, 1]} : vector<16x22xf32> to vector<16x16xf32>
    %185 = vector.broadcast %20 : f32 to vector<16x16xf32>
    %186 = arith.mulf %185, %184 : vector<16x16xf32>
    %187 = arith.addf %171, %186 : vector<16x16xf32>
    %188 = vector.extract_strided_slice %163 {offsets = [0, 6], sizes = [16, 16], strides = [1, 1]} : vector<16x22xf32> to vector<16x16xf32>
    %189 = vector.broadcast %21 : f32 to vector<16x16xf32>
    %190 = arith.mulf %189, %188 : vector<16x16xf32>
    %191 = arith.addf %175, %190 : vector<16x16xf32>
    %c0_48 = arith.constant 0 : index
    %c2_49 = arith.constant 2 : index
    %c0_50 = arith.constant 0 : index
    %192 = vector.load %arg4[%c0_48, %c2_49, %c0_50] : memref<2x22x22xf32, #tpu.memory_space<vmem>>, vector<1x16x22xf32>
    %193 = vector.shape_cast %192 : vector<1x16x22xf32> to vector<16x22xf32>
    %194 = vector.extract_strided_slice %193 {offsets = [0, 0], sizes = [16, 16], strides = [1, 1]} : vector<16x22xf32> to vector<16x16xf32>
    %195 = vector.broadcast %22 : f32 to vector<16x16xf32>
    %196 = arith.mulf %195, %194 : vector<16x16xf32>
    %197 = arith.addf %179, %196 : vector<16x16xf32>
    %198 = vector.extract_strided_slice %193 {offsets = [0, 1], sizes = [16, 16], strides = [1, 1]} : vector<16x22xf32> to vector<16x16xf32>
    %199 = vector.broadcast %23 : f32 to vector<16x16xf32>
    %200 = arith.mulf %199, %198 : vector<16x16xf32>
    %201 = arith.addf %183, %200 : vector<16x16xf32>
    %202 = vector.extract_strided_slice %193 {offsets = [0, 2], sizes = [16, 16], strides = [1, 1]} : vector<16x22xf32> to vector<16x16xf32>
    %203 = vector.broadcast %24 : f32 to vector<16x16xf32>
    %204 = arith.mulf %203, %202 : vector<16x16xf32>
    %205 = arith.addf %187, %204 : vector<16x16xf32>
    %206 = vector.extract_strided_slice %193 {offsets = [0, 3], sizes = [16, 16], strides = [1, 1]} : vector<16x22xf32> to vector<16x16xf32>
    %207 = vector.broadcast %25 : f32 to vector<16x16xf32>
    %208 = arith.mulf %207, %206 : vector<16x16xf32>
    %209 = arith.addf %191, %208 : vector<16x16xf32>
    %210 = vector.extract_strided_slice %193 {offsets = [0, 4], sizes = [16, 16], strides = [1, 1]} : vector<16x22xf32> to vector<16x16xf32>
    %211 = vector.broadcast %26 : f32 to vector<16x16xf32>
    %212 = arith.mulf %211, %210 : vector<16x16xf32>
    %213 = arith.addf %197, %212 : vector<16x16xf32>
    %214 = vector.extract_strided_slice %193 {offsets = [0, 5], sizes = [16, 16], strides = [1, 1]} : vector<16x22xf32> to vector<16x16xf32>
    %215 = vector.broadcast %27 : f32 to vector<16x16xf32>
    %216 = arith.mulf %215, %214 : vector<16x16xf32>
    %217 = arith.addf %201, %216 : vector<16x16xf32>
    %218 = vector.extract_strided_slice %193 {offsets = [0, 6], sizes = [16, 16], strides = [1, 1]} : vector<16x22xf32> to vector<16x16xf32>
    %219 = vector.broadcast %28 : f32 to vector<16x16xf32>
    %220 = arith.mulf %219, %218 : vector<16x16xf32>
    %221 = arith.addf %205, %220 : vector<16x16xf32>
    %c0_51 = arith.constant 0 : index
    %c3_52 = arith.constant 3 : index
    %c0_53 = arith.constant 0 : index
    %222 = vector.load %arg4[%c0_51, %c3_52, %c0_53] : memref<2x22x22xf32, #tpu.memory_space<vmem>>, vector<1x16x22xf32>
    %223 = vector.shape_cast %222 : vector<1x16x22xf32> to vector<16x22xf32>
    %224 = vector.extract_strided_slice %223 {offsets = [0, 0], sizes = [16, 16], strides = [1, 1]} : vector<16x22xf32> to vector<16x16xf32>
    %225 = vector.broadcast %29 : f32 to vector<16x16xf32>
    %226 = arith.mulf %225, %224 : vector<16x16xf32>
    %227 = arith.addf %209, %226 : vector<16x16xf32>
    %228 = vector.extract_strided_slice %223 {offsets = [0, 1], sizes = [16, 16], strides = [1, 1]} : vector<16x22xf32> to vector<16x16xf32>
    %229 = vector.broadcast %30 : f32 to vector<16x16xf32>
    %230 = arith.mulf %229, %228 : vector<16x16xf32>
    %231 = arith.addf %213, %230 : vector<16x16xf32>
    %232 = vector.extract_strided_slice %223 {offsets = [0, 2], sizes = [16, 16], strides = [1, 1]} : vector<16x22xf32> to vector<16x16xf32>
    %233 = vector.broadcast %31 : f32 to vector<16x16xf32>
    %234 = arith.mulf %233, %232 : vector<16x16xf32>
    %235 = arith.addf %217, %234 : vector<16x16xf32>
    %236 = vector.extract_strided_slice %223 {offsets = [0, 3], sizes = [16, 16], strides = [1, 1]} : vector<16x22xf32> to vector<16x16xf32>
    %237 = vector.broadcast %32 : f32 to vector<16x16xf32>
    %238 = arith.mulf %237, %236 : vector<16x16xf32>
    %239 = arith.addf %221, %238 : vector<16x16xf32>
    %240 = vector.extract_strided_slice %223 {offsets = [0, 4], sizes = [16, 16], strides = [1, 1]} : vector<16x22xf32> to vector<16x16xf32>
    %241 = vector.broadcast %33 : f32 to vector<16x16xf32>
    %242 = arith.mulf %241, %240 : vector<16x16xf32>
    %243 = arith.addf %227, %242 : vector<16x16xf32>
    %244 = vector.extract_strided_slice %223 {offsets = [0, 5], sizes = [16, 16], strides = [1, 1]} : vector<16x22xf32> to vector<16x16xf32>
    %245 = vector.broadcast %34 : f32 to vector<16x16xf32>
    %246 = arith.mulf %245, %244 : vector<16x16xf32>
    %247 = arith.addf %231, %246 : vector<16x16xf32>
    %248 = vector.extract_strided_slice %223 {offsets = [0, 6], sizes = [16, 16], strides = [1, 1]} : vector<16x22xf32> to vector<16x16xf32>
    %249 = vector.broadcast %35 : f32 to vector<16x16xf32>
    %250 = arith.mulf %249, %248 : vector<16x16xf32>
    %251 = arith.addf %235, %250 : vector<16x16xf32>
    %c0_54 = arith.constant 0 : index
    %c4_55 = arith.constant 4 : index
    %c0_56 = arith.constant 0 : index
    %252 = vector.load %arg4[%c0_54, %c4_55, %c0_56] : memref<2x22x22xf32, #tpu.memory_space<vmem>>, vector<1x16x22xf32>
    %253 = vector.shape_cast %252 : vector<1x16x22xf32> to vector<16x22xf32>
    %254 = vector.extract_strided_slice %253 {offsets = [0, 0], sizes = [16, 16], strides = [1, 1]} : vector<16x22xf32> to vector<16x16xf32>
    %255 = vector.broadcast %36 : f32 to vector<16x16xf32>
    %256 = arith.mulf %255, %254 : vector<16x16xf32>
    %257 = arith.addf %239, %256 : vector<16x16xf32>
    %258 = vector.extract_strided_slice %253 {offsets = [0, 1], sizes = [16, 16], strides = [1, 1]} : vector<16x22xf32> to vector<16x16xf32>
    %259 = vector.broadcast %37 : f32 to vector<16x16xf32>
    %260 = arith.mulf %259, %258 : vector<16x16xf32>
    %261 = arith.addf %243, %260 : vector<16x16xf32>
    %262 = vector.extract_strided_slice %253 {offsets = [0, 2], sizes = [16, 16], strides = [1, 1]} : vector<16x22xf32> to vector<16x16xf32>
    %263 = vector.broadcast %38 : f32 to vector<16x16xf32>
    %264 = arith.mulf %263, %262 : vector<16x16xf32>
    %265 = arith.addf %247, %264 : vector<16x16xf32>
    %266 = vector.extract_strided_slice %253 {offsets = [0, 3], sizes = [16, 16], strides = [1, 1]} : vector<16x22xf32> to vector<16x16xf32>
    %267 = vector.broadcast %39 : f32 to vector<16x16xf32>
    %268 = arith.mulf %267, %266 : vector<16x16xf32>
    %269 = arith.addf %251, %268 : vector<16x16xf32>
    %270 = vector.extract_strided_slice %253 {offsets = [0, 4], sizes = [16, 16], strides = [1, 1]} : vector<16x22xf32> to vector<16x16xf32>
    %271 = vector.broadcast %40 : f32 to vector<16x16xf32>
    %272 = arith.mulf %271, %270 : vector<16x16xf32>
    %273 = arith.addf %257, %272 : vector<16x16xf32>
    %274 = vector.extract_strided_slice %253 {offsets = [0, 5], sizes = [16, 16], strides = [1, 1]} : vector<16x22xf32> to vector<16x16xf32>
    %275 = vector.broadcast %41 : f32 to vector<16x16xf32>
    %276 = arith.mulf %275, %274 : vector<16x16xf32>
    %277 = arith.addf %261, %276 : vector<16x16xf32>
    %278 = vector.extract_strided_slice %253 {offsets = [0, 6], sizes = [16, 16], strides = [1, 1]} : vector<16x22xf32> to vector<16x16xf32>
    %279 = vector.broadcast %42 : f32 to vector<16x16xf32>
    %280 = arith.mulf %279, %278 : vector<16x16xf32>
    %281 = arith.addf %265, %280 : vector<16x16xf32>
    %c0_57 = arith.constant 0 : index
    %c5_58 = arith.constant 5 : index
    %c0_59 = arith.constant 0 : index
    %282 = vector.load %arg4[%c0_57, %c5_58, %c0_59] : memref<2x22x22xf32, #tpu.memory_space<vmem>>, vector<1x16x22xf32>
    %283 = vector.shape_cast %282 : vector<1x16x22xf32> to vector<16x22xf32>
    %284 = vector.extract_strided_slice %283 {offsets = [0, 0], sizes = [16, 16], strides = [1, 1]} : vector<16x22xf32> to vector<16x16xf32>
    %285 = vector.broadcast %43 : f32 to vector<16x16xf32>
    %286 = arith.mulf %285, %284 : vector<16x16xf32>
    %287 = arith.addf %269, %286 : vector<16x16xf32>
    %288 = vector.extract_strided_slice %283 {offsets = [0, 1], sizes = [16, 16], strides = [1, 1]} : vector<16x22xf32> to vector<16x16xf32>
    %289 = vector.broadcast %44 : f32 to vector<16x16xf32>
    %290 = arith.mulf %289, %288 : vector<16x16xf32>
    %291 = arith.addf %273, %290 : vector<16x16xf32>
    %292 = vector.extract_strided_slice %283 {offsets = [0, 2], sizes = [16, 16], strides = [1, 1]} : vector<16x22xf32> to vector<16x16xf32>
    %293 = vector.broadcast %45 : f32 to vector<16x16xf32>
    %294 = arith.mulf %293, %292 : vector<16x16xf32>
    %295 = arith.addf %277, %294 : vector<16x16xf32>
    %296 = vector.extract_strided_slice %283 {offsets = [0, 3], sizes = [16, 16], strides = [1, 1]} : vector<16x22xf32> to vector<16x16xf32>
    %297 = vector.broadcast %46 : f32 to vector<16x16xf32>
    %298 = arith.mulf %297, %296 : vector<16x16xf32>
    %299 = arith.addf %281, %298 : vector<16x16xf32>
    %300 = vector.extract_strided_slice %283 {offsets = [0, 4], sizes = [16, 16], strides = [1, 1]} : vector<16x22xf32> to vector<16x16xf32>
    %301 = vector.broadcast %47 : f32 to vector<16x16xf32>
    %302 = arith.mulf %301, %300 : vector<16x16xf32>
    %303 = arith.addf %287, %302 : vector<16x16xf32>
    %304 = vector.extract_strided_slice %283 {offsets = [0, 5], sizes = [16, 16], strides = [1, 1]} : vector<16x22xf32> to vector<16x16xf32>
    %305 = vector.broadcast %48 : f32 to vector<16x16xf32>
    %306 = arith.mulf %305, %304 : vector<16x16xf32>
    %307 = arith.addf %291, %306 : vector<16x16xf32>
    %308 = vector.extract_strided_slice %283 {offsets = [0, 6], sizes = [16, 16], strides = [1, 1]} : vector<16x22xf32> to vector<16x16xf32>
    %309 = vector.broadcast %49 : f32 to vector<16x16xf32>
    %310 = arith.mulf %309, %308 : vector<16x16xf32>
    %311 = arith.addf %295, %310 : vector<16x16xf32>
    %c0_60 = arith.constant 0 : index
    %c6_61 = arith.constant 6 : index
    %c0_62 = arith.constant 0 : index
    %312 = vector.load %arg4[%c0_60, %c6_61, %c0_62] : memref<2x22x22xf32, #tpu.memory_space<vmem>>, vector<1x16x22xf32>
    %313 = vector.shape_cast %312 : vector<1x16x22xf32> to vector<16x22xf32>
    %314 = vector.extract_strided_slice %313 {offsets = [0, 0], sizes = [16, 16], strides = [1, 1]} : vector<16x22xf32> to vector<16x16xf32>
    %315 = vector.broadcast %50 : f32 to vector<16x16xf32>
    %316 = arith.mulf %315, %314 : vector<16x16xf32>
    %317 = arith.addf %299, %316 : vector<16x16xf32>
    %318 = vector.extract_strided_slice %313 {offsets = [0, 1], sizes = [16, 16], strides = [1, 1]} : vector<16x22xf32> to vector<16x16xf32>
    %319 = vector.broadcast %51 : f32 to vector<16x16xf32>
    %320 = arith.mulf %319, %318 : vector<16x16xf32>
    %321 = arith.addf %303, %320 : vector<16x16xf32>
    %322 = vector.extract_strided_slice %313 {offsets = [0, 2], sizes = [16, 16], strides = [1, 1]} : vector<16x22xf32> to vector<16x16xf32>
    %323 = vector.broadcast %52 : f32 to vector<16x16xf32>
    %324 = arith.mulf %323, %322 : vector<16x16xf32>
    %325 = arith.addf %307, %324 : vector<16x16xf32>
    %326 = vector.extract_strided_slice %313 {offsets = [0, 3], sizes = [16, 16], strides = [1, 1]} : vector<16x22xf32> to vector<16x16xf32>
    %327 = vector.broadcast %53 : f32 to vector<16x16xf32>
    %328 = arith.mulf %327, %326 : vector<16x16xf32>
    %329 = arith.addf %311, %328 : vector<16x16xf32>
    %330 = vector.extract_strided_slice %313 {offsets = [0, 4], sizes = [16, 16], strides = [1, 1]} : vector<16x22xf32> to vector<16x16xf32>
    %331 = vector.broadcast %54 : f32 to vector<16x16xf32>
    %332 = arith.mulf %331, %330 : vector<16x16xf32>
    %333 = arith.addf %317, %332 : vector<16x16xf32>
    %334 = vector.extract_strided_slice %313 {offsets = [0, 5], sizes = [16, 16], strides = [1, 1]} : vector<16x22xf32> to vector<16x16xf32>
    %335 = vector.broadcast %55 : f32 to vector<16x16xf32>
    %336 = arith.mulf %335, %334 : vector<16x16xf32>
    %337 = arith.addf %321, %336 : vector<16x16xf32>
    %338 = vector.extract_strided_slice %313 {offsets = [0, 6], sizes = [16, 16], strides = [1, 1]} : vector<16x22xf32> to vector<16x16xf32>
    %339 = vector.broadcast %56 : f32 to vector<16x16xf32>
    %340 = arith.mulf %339, %338 : vector<16x16xf32>
    %341 = arith.addf %325, %340 : vector<16x16xf32>
    %c1_63 = arith.constant 1 : index
    %c0_64 = arith.constant 0 : index
    %c0_65 = arith.constant 0 : index
    %342 = vector.load %arg4[%c1_63, %c0_64, %c0_65] : memref<2x22x22xf32, #tpu.memory_space<vmem>>, vector<1x16x22xf32>
    %343 = vector.shape_cast %342 : vector<1x16x22xf32> to vector<16x22xf32>
    %344 = vector.extract_strided_slice %343 {offsets = [0, 0], sizes = [16, 16], strides = [1, 1]} : vector<16x22xf32> to vector<16x16xf32>
    %345 = vector.broadcast %57 : f32 to vector<16x16xf32>
    %346 = arith.mulf %345, %344 : vector<16x16xf32>
    %347 = arith.addf %329, %346 : vector<16x16xf32>
    %348 = vector.extract_strided_slice %343 {offsets = [0, 1], sizes = [16, 16], strides = [1, 1]} : vector<16x22xf32> to vector<16x16xf32>
    %349 = vector.broadcast %58 : f32 to vector<16x16xf32>
    %350 = arith.mulf %349, %348 : vector<16x16xf32>
    %351 = arith.addf %333, %350 : vector<16x16xf32>
    %352 = vector.extract_strided_slice %343 {offsets = [0, 2], sizes = [16, 16], strides = [1, 1]} : vector<16x22xf32> to vector<16x16xf32>
    %353 = vector.broadcast %59 : f32 to vector<16x16xf32>
    %354 = arith.mulf %353, %352 : vector<16x16xf32>
    %355 = arith.addf %337, %354 : vector<16x16xf32>
    %356 = vector.extract_strided_slice %343 {offsets = [0, 3], sizes = [16, 16], strides = [1, 1]} : vector<16x22xf32> to vector<16x16xf32>
    %357 = vector.broadcast %60 : f32 to vector<16x16xf32>
    %358 = arith.mulf %357, %356 : vector<16x16xf32>
    %359 = arith.addf %341, %358 : vector<16x16xf32>
    %360 = vector.extract_strided_slice %343 {offsets = [0, 4], sizes = [16, 16], strides = [1, 1]} : vector<16x22xf32> to vector<16x16xf32>
    %361 = vector.broadcast %61 : f32 to vector<16x16xf32>
    %362 = arith.mulf %361, %360 : vector<16x16xf32>
    %363 = arith.addf %347, %362 : vector<16x16xf32>
    %364 = vector.extract_strided_slice %343 {offsets = [0, 5], sizes = [16, 16], strides = [1, 1]} : vector<16x22xf32> to vector<16x16xf32>
    %365 = vector.broadcast %62 : f32 to vector<16x16xf32>
    %366 = arith.mulf %365, %364 : vector<16x16xf32>
    %367 = arith.addf %351, %366 : vector<16x16xf32>
    %368 = vector.extract_strided_slice %343 {offsets = [0, 6], sizes = [16, 16], strides = [1, 1]} : vector<16x22xf32> to vector<16x16xf32>
    %369 = vector.broadcast %63 : f32 to vector<16x16xf32>
    %370 = arith.mulf %369, %368 : vector<16x16xf32>
    %371 = arith.addf %355, %370 : vector<16x16xf32>
    %c1_66 = arith.constant 1 : index
    %c1_67 = arith.constant 1 : index
    %c0_68 = arith.constant 0 : index
    %372 = vector.load %arg4[%c1_66, %c1_67, %c0_68] : memref<2x22x22xf32, #tpu.memory_space<vmem>>, vector<1x16x22xf32>
    %373 = vector.shape_cast %372 : vector<1x16x22xf32> to vector<16x22xf32>
    %374 = vector.extract_strided_slice %373 {offsets = [0, 0], sizes = [16, 16], strides = [1, 1]} : vector<16x22xf32> to vector<16x16xf32>
    %375 = vector.broadcast %64 : f32 to vector<16x16xf32>
    %376 = arith.mulf %375, %374 : vector<16x16xf32>
    %377 = arith.addf %359, %376 : vector<16x16xf32>
    %378 = vector.extract_strided_slice %373 {offsets = [0, 1], sizes = [16, 16], strides = [1, 1]} : vector<16x22xf32> to vector<16x16xf32>
    %379 = vector.broadcast %65 : f32 to vector<16x16xf32>
    %380 = arith.mulf %379, %378 : vector<16x16xf32>
    %381 = arith.addf %363, %380 : vector<16x16xf32>
    %382 = vector.extract_strided_slice %373 {offsets = [0, 2], sizes = [16, 16], strides = [1, 1]} : vector<16x22xf32> to vector<16x16xf32>
    %383 = vector.broadcast %66 : f32 to vector<16x16xf32>
    %384 = arith.mulf %383, %382 : vector<16x16xf32>
    %385 = arith.addf %367, %384 : vector<16x16xf32>
    %386 = vector.extract_strided_slice %373 {offsets = [0, 3], sizes = [16, 16], strides = [1, 1]} : vector<16x22xf32> to vector<16x16xf32>
    %387 = vector.broadcast %67 : f32 to vector<16x16xf32>
    %388 = arith.mulf %387, %386 : vector<16x16xf32>
    %389 = arith.addf %371, %388 : vector<16x16xf32>
    %390 = vector.extract_strided_slice %373 {offsets = [0, 4], sizes = [16, 16], strides = [1, 1]} : vector<16x22xf32> to vector<16x16xf32>
    %391 = vector.broadcast %68 : f32 to vector<16x16xf32>
    %392 = arith.mulf %391, %390 : vector<16x16xf32>
    %393 = arith.addf %377, %392 : vector<16x16xf32>
    %394 = vector.extract_strided_slice %373 {offsets = [0, 5], sizes = [16, 16], strides = [1, 1]} : vector<16x22xf32> to vector<16x16xf32>
    %395 = vector.broadcast %69 : f32 to vector<16x16xf32>
    %396 = arith.mulf %395, %394 : vector<16x16xf32>
    %397 = arith.addf %381, %396 : vector<16x16xf32>
    %398 = vector.extract_strided_slice %373 {offsets = [0, 6], sizes = [16, 16], strides = [1, 1]} : vector<16x22xf32> to vector<16x16xf32>
    %399 = vector.broadcast %70 : f32 to vector<16x16xf32>
    %400 = arith.mulf %399, %398 : vector<16x16xf32>
    %401 = arith.addf %385, %400 : vector<16x16xf32>
    %c1_69 = arith.constant 1 : index
    %c2_70 = arith.constant 2 : index
    %c0_71 = arith.constant 0 : index
    %402 = vector.load %arg4[%c1_69, %c2_70, %c0_71] : memref<2x22x22xf32, #tpu.memory_space<vmem>>, vector<1x16x22xf32>
    %403 = vector.shape_cast %402 : vector<1x16x22xf32> to vector<16x22xf32>
    %404 = vector.extract_strided_slice %403 {offsets = [0, 0], sizes = [16, 16], strides = [1, 1]} : vector<16x22xf32> to vector<16x16xf32>
    %405 = vector.broadcast %71 : f32 to vector<16x16xf32>
    %406 = arith.mulf %405, %404 : vector<16x16xf32>
    %407 = arith.addf %389, %406 : vector<16x16xf32>
    %408 = vector.extract_strided_slice %403 {offsets = [0, 1], sizes = [16, 16], strides = [1, 1]} : vector<16x22xf32> to vector<16x16xf32>
    %409 = vector.broadcast %72 : f32 to vector<16x16xf32>
    %410 = arith.mulf %409, %408 : vector<16x16xf32>
    %411 = arith.addf %393, %410 : vector<16x16xf32>
    %412 = vector.extract_strided_slice %403 {offsets = [0, 2], sizes = [16, 16], strides = [1, 1]} : vector<16x22xf32> to vector<16x16xf32>
    %413 = vector.broadcast %73 : f32 to vector<16x16xf32>
    %414 = arith.mulf %413, %412 : vector<16x16xf32>
    %415 = arith.addf %397, %414 : vector<16x16xf32>
    %416 = vector.extract_strided_slice %403 {offsets = [0, 3], sizes = [16, 16], strides = [1, 1]} : vector<16x22xf32> to vector<16x16xf32>
    %417 = vector.broadcast %74 : f32 to vector<16x16xf32>
    %418 = arith.mulf %417, %416 : vector<16x16xf32>
    %419 = arith.addf %401, %418 : vector<16x16xf32>
    %420 = vector.extract_strided_slice %403 {offsets = [0, 4], sizes = [16, 16], strides = [1, 1]} : vector<16x22xf32> to vector<16x16xf32>
    %421 = vector.broadcast %75 : f32 to vector<16x16xf32>
    %422 = arith.mulf %421, %420 : vector<16x16xf32>
    %423 = arith.addf %407, %422 : vector<16x16xf32>
    %424 = vector.extract_strided_slice %403 {offsets = [0, 5], sizes = [16, 16], strides = [1, 1]} : vector<16x22xf32> to vector<16x16xf32>
    %425 = vector.broadcast %76 : f32 to vector<16x16xf32>
    %426 = arith.mulf %425, %424 : vector<16x16xf32>
    %427 = arith.addf %411, %426 : vector<16x16xf32>
    %428 = vector.extract_strided_slice %403 {offsets = [0, 6], sizes = [16, 16], strides = [1, 1]} : vector<16x22xf32> to vector<16x16xf32>
    %429 = vector.broadcast %77 : f32 to vector<16x16xf32>
    %430 = arith.mulf %429, %428 : vector<16x16xf32>
    %431 = arith.addf %415, %430 : vector<16x16xf32>
    %c1_72 = arith.constant 1 : index
    %c3_73 = arith.constant 3 : index
    %c0_74 = arith.constant 0 : index
    %432 = vector.load %arg4[%c1_72, %c3_73, %c0_74] : memref<2x22x22xf32, #tpu.memory_space<vmem>>, vector<1x16x22xf32>
    %433 = vector.shape_cast %432 : vector<1x16x22xf32> to vector<16x22xf32>
    %434 = vector.extract_strided_slice %433 {offsets = [0, 0], sizes = [16, 16], strides = [1, 1]} : vector<16x22xf32> to vector<16x16xf32>
    %435 = vector.broadcast %78 : f32 to vector<16x16xf32>
    %436 = arith.mulf %435, %434 : vector<16x16xf32>
    %437 = arith.addf %419, %436 : vector<16x16xf32>
    %438 = vector.extract_strided_slice %433 {offsets = [0, 1], sizes = [16, 16], strides = [1, 1]} : vector<16x22xf32> to vector<16x16xf32>
    %439 = vector.broadcast %79 : f32 to vector<16x16xf32>
    %440 = arith.mulf %439, %438 : vector<16x16xf32>
    %441 = arith.addf %423, %440 : vector<16x16xf32>
    %442 = vector.extract_strided_slice %433 {offsets = [0, 2], sizes = [16, 16], strides = [1, 1]} : vector<16x22xf32> to vector<16x16xf32>
    %443 = vector.broadcast %80 : f32 to vector<16x16xf32>
    %444 = arith.mulf %443, %442 : vector<16x16xf32>
    %445 = arith.addf %427, %444 : vector<16x16xf32>
    %446 = vector.extract_strided_slice %433 {offsets = [0, 3], sizes = [16, 16], strides = [1, 1]} : vector<16x22xf32> to vector<16x16xf32>
    %447 = vector.broadcast %81 : f32 to vector<16x16xf32>
    %448 = arith.mulf %447, %446 : vector<16x16xf32>
    %449 = arith.addf %431, %448 : vector<16x16xf32>
    %450 = vector.extract_strided_slice %433 {offsets = [0, 4], sizes = [16, 16], strides = [1, 1]} : vector<16x22xf32> to vector<16x16xf32>
    %451 = vector.broadcast %82 : f32 to vector<16x16xf32>
    %452 = arith.mulf %451, %450 : vector<16x16xf32>
    %453 = arith.addf %437, %452 : vector<16x16xf32>
    %454 = vector.extract_strided_slice %433 {offsets = [0, 5], sizes = [16, 16], strides = [1, 1]} : vector<16x22xf32> to vector<16x16xf32>
    %455 = vector.broadcast %83 : f32 to vector<16x16xf32>
    %456 = arith.mulf %455, %454 : vector<16x16xf32>
    %457 = arith.addf %441, %456 : vector<16x16xf32>
    %458 = vector.extract_strided_slice %433 {offsets = [0, 6], sizes = [16, 16], strides = [1, 1]} : vector<16x22xf32> to vector<16x16xf32>
    %459 = vector.broadcast %84 : f32 to vector<16x16xf32>
    %460 = arith.mulf %459, %458 : vector<16x16xf32>
    %461 = arith.addf %445, %460 : vector<16x16xf32>
    %c1_75 = arith.constant 1 : index
    %c4_76 = arith.constant 4 : index
    %c0_77 = arith.constant 0 : index
    %462 = vector.load %arg4[%c1_75, %c4_76, %c0_77] : memref<2x22x22xf32, #tpu.memory_space<vmem>>, vector<1x16x22xf32>
    %463 = vector.shape_cast %462 : vector<1x16x22xf32> to vector<16x22xf32>
    %464 = vector.extract_strided_slice %463 {offsets = [0, 0], sizes = [16, 16], strides = [1, 1]} : vector<16x22xf32> to vector<16x16xf32>
    %465 = vector.broadcast %85 : f32 to vector<16x16xf32>
    %466 = arith.mulf %465, %464 : vector<16x16xf32>
    %467 = arith.addf %449, %466 : vector<16x16xf32>
    %468 = vector.extract_strided_slice %463 {offsets = [0, 1], sizes = [16, 16], strides = [1, 1]} : vector<16x22xf32> to vector<16x16xf32>
    %469 = vector.broadcast %86 : f32 to vector<16x16xf32>
    %470 = arith.mulf %469, %468 : vector<16x16xf32>
    %471 = arith.addf %453, %470 : vector<16x16xf32>
    %472 = vector.extract_strided_slice %463 {offsets = [0, 2], sizes = [16, 16], strides = [1, 1]} : vector<16x22xf32> to vector<16x16xf32>
    %473 = vector.broadcast %87 : f32 to vector<16x16xf32>
    %474 = arith.mulf %473, %472 : vector<16x16xf32>
    %475 = arith.addf %457, %474 : vector<16x16xf32>
    %476 = vector.extract_strided_slice %463 {offsets = [0, 3], sizes = [16, 16], strides = [1, 1]} : vector<16x22xf32> to vector<16x16xf32>
    %477 = vector.broadcast %88 : f32 to vector<16x16xf32>
    %478 = arith.mulf %477, %476 : vector<16x16xf32>
    %479 = arith.addf %461, %478 : vector<16x16xf32>
    %480 = vector.extract_strided_slice %463 {offsets = [0, 4], sizes = [16, 16], strides = [1, 1]} : vector<16x22xf32> to vector<16x16xf32>
    %481 = vector.broadcast %89 : f32 to vector<16x16xf32>
    %482 = arith.mulf %481, %480 : vector<16x16xf32>
    %483 = arith.addf %467, %482 : vector<16x16xf32>
    %484 = vector.extract_strided_slice %463 {offsets = [0, 5], sizes = [16, 16], strides = [1, 1]} : vector<16x22xf32> to vector<16x16xf32>
    %485 = vector.broadcast %90 : f32 to vector<16x16xf32>
    %486 = arith.mulf %485, %484 : vector<16x16xf32>
    %487 = arith.addf %471, %486 : vector<16x16xf32>
    %488 = vector.extract_strided_slice %463 {offsets = [0, 6], sizes = [16, 16], strides = [1, 1]} : vector<16x22xf32> to vector<16x16xf32>
    %489 = vector.broadcast %91 : f32 to vector<16x16xf32>
    %490 = arith.mulf %489, %488 : vector<16x16xf32>
    %491 = arith.addf %475, %490 : vector<16x16xf32>
    %c1_78 = arith.constant 1 : index
    %c5_79 = arith.constant 5 : index
    %c0_80 = arith.constant 0 : index
    %492 = vector.load %arg4[%c1_78, %c5_79, %c0_80] : memref<2x22x22xf32, #tpu.memory_space<vmem>>, vector<1x16x22xf32>
    %493 = vector.shape_cast %492 : vector<1x16x22xf32> to vector<16x22xf32>
    %494 = vector.extract_strided_slice %493 {offsets = [0, 0], sizes = [16, 16], strides = [1, 1]} : vector<16x22xf32> to vector<16x16xf32>
    %495 = vector.broadcast %92 : f32 to vector<16x16xf32>
    %496 = arith.mulf %495, %494 : vector<16x16xf32>
    %497 = arith.addf %479, %496 : vector<16x16xf32>
    %498 = vector.extract_strided_slice %493 {offsets = [0, 1], sizes = [16, 16], strides = [1, 1]} : vector<16x22xf32> to vector<16x16xf32>
    %499 = vector.broadcast %93 : f32 to vector<16x16xf32>
    %500 = arith.mulf %499, %498 : vector<16x16xf32>
    %501 = arith.addf %483, %500 : vector<16x16xf32>
    %502 = vector.extract_strided_slice %493 {offsets = [0, 2], sizes = [16, 16], strides = [1, 1]} : vector<16x22xf32> to vector<16x16xf32>
    %503 = vector.broadcast %94 : f32 to vector<16x16xf32>
    %504 = arith.mulf %503, %502 : vector<16x16xf32>
    %505 = arith.addf %487, %504 : vector<16x16xf32>
    %506 = vector.extract_strided_slice %493 {offsets = [0, 3], sizes = [16, 16], strides = [1, 1]} : vector<16x22xf32> to vector<16x16xf32>
    %507 = vector.broadcast %95 : f32 to vector<16x16xf32>
    %508 = arith.mulf %507, %506 : vector<16x16xf32>
    %509 = arith.addf %491, %508 : vector<16x16xf32>
    %510 = vector.extract_strided_slice %493 {offsets = [0, 4], sizes = [16, 16], strides = [1, 1]} : vector<16x22xf32> to vector<16x16xf32>
    %511 = vector.broadcast %96 : f32 to vector<16x16xf32>
    %512 = arith.mulf %511, %510 : vector<16x16xf32>
    %513 = arith.addf %497, %512 : vector<16x16xf32>
    %514 = vector.extract_strided_slice %493 {offsets = [0, 5], sizes = [16, 16], strides = [1, 1]} : vector<16x22xf32> to vector<16x16xf32>
    %515 = vector.broadcast %97 : f32 to vector<16x16xf32>
    %516 = arith.mulf %515, %514 : vector<16x16xf32>
    %517 = arith.addf %501, %516 : vector<16x16xf32>
    %518 = vector.extract_strided_slice %493 {offsets = [0, 6], sizes = [16, 16], strides = [1, 1]} : vector<16x22xf32> to vector<16x16xf32>
    %519 = vector.broadcast %98 : f32 to vector<16x16xf32>
    %520 = arith.mulf %519, %518 : vector<16x16xf32>
    %521 = arith.addf %505, %520 : vector<16x16xf32>
    %c1_81 = arith.constant 1 : index
    %c6_82 = arith.constant 6 : index
    %c0_83 = arith.constant 0 : index
    %522 = vector.load %arg4[%c1_81, %c6_82, %c0_83] : memref<2x22x22xf32, #tpu.memory_space<vmem>>, vector<1x16x22xf32>
    %523 = vector.shape_cast %522 : vector<1x16x22xf32> to vector<16x22xf32>
    %524 = vector.extract_strided_slice %523 {offsets = [0, 0], sizes = [16, 16], strides = [1, 1]} : vector<16x22xf32> to vector<16x16xf32>
    %525 = vector.broadcast %99 : f32 to vector<16x16xf32>
    %526 = arith.mulf %525, %524 : vector<16x16xf32>
    %527 = arith.addf %509, %526 : vector<16x16xf32>
    %528 = vector.extract_strided_slice %523 {offsets = [0, 1], sizes = [16, 16], strides = [1, 1]} : vector<16x22xf32> to vector<16x16xf32>
    %529 = vector.broadcast %100 : f32 to vector<16x16xf32>
    %530 = arith.mulf %529, %528 : vector<16x16xf32>
    %531 = arith.addf %513, %530 : vector<16x16xf32>
    %532 = vector.extract_strided_slice %523 {offsets = [0, 2], sizes = [16, 16], strides = [1, 1]} : vector<16x22xf32> to vector<16x16xf32>
    %533 = vector.broadcast %101 : f32 to vector<16x16xf32>
    %534 = arith.mulf %533, %532 : vector<16x16xf32>
    %535 = arith.addf %517, %534 : vector<16x16xf32>
    %536 = vector.extract_strided_slice %523 {offsets = [0, 3], sizes = [16, 16], strides = [1, 1]} : vector<16x22xf32> to vector<16x16xf32>
    %537 = vector.broadcast %102 : f32 to vector<16x16xf32>
    %538 = arith.mulf %537, %536 : vector<16x16xf32>
    %539 = arith.addf %521, %538 : vector<16x16xf32>
    %540 = vector.extract_strided_slice %523 {offsets = [0, 4], sizes = [16, 16], strides = [1, 1]} : vector<16x22xf32> to vector<16x16xf32>
    %541 = vector.broadcast %103 : f32 to vector<16x16xf32>
    %542 = arith.mulf %541, %540 : vector<16x16xf32>
    %543 = arith.addf %527, %542 : vector<16x16xf32>
    %544 = vector.extract_strided_slice %523 {offsets = [0, 5], sizes = [16, 16], strides = [1, 1]} : vector<16x22xf32> to vector<16x16xf32>
    %545 = vector.broadcast %104 : f32 to vector<16x16xf32>
    %546 = arith.mulf %545, %544 : vector<16x16xf32>
    %547 = arith.addf %531, %546 : vector<16x16xf32>
    %548 = vector.extract_strided_slice %523 {offsets = [0, 6], sizes = [16, 16], strides = [1, 1]} : vector<16x22xf32> to vector<16x16xf32>
    %549 = vector.broadcast %105 : f32 to vector<16x16xf32>
    %550 = arith.mulf %549, %548 : vector<16x16xf32>
    %551 = arith.addf %535, %550 : vector<16x16xf32>
    %552 = arith.addf %547, %551 : vector<16x16xf32>
    %553 = arith.addf %539, %543 : vector<16x16xf32>
    %554 = arith.addf %552, %553 : vector<16x16xf32>
    %555 = arith.negf %554 : vector<16x16xf32>
    %556 = math.exp %555 : vector<16x16xf32>
    %cst_84 = arith.constant 1.000000e+00 : f32
    %557 = vector.broadcast %cst_84 : f32 to vector<16x16xf32>
    %558 = arith.addf %557, %556 : vector<16x16xf32>
    %559 = arith.divf %557, %558 : vector<16x16xf32>
    %c0_85 = arith.constant 0 : index
    %c0_86 = arith.constant 0 : index
    %c0_87 = arith.constant 0 : index
    %c0_88 = arith.constant 0 : index
    %560 = vector.load %arg3[%c0_85, %c0_86, %c0_87, %c0_88] : memref<2x1x16x16xf32, #tpu.memory_space<vmem>>, vector<1x1x16x16xf32>
    %561 = vector.shape_cast %560 : vector<1x1x16x16xf32> to vector<16x16xf32>
    %562 = vector.shape_cast %559 : vector<16x16xf32> to vector<1x1x16x16xf32>
    tpu.vector_store %arg3[%c0_85, %c0_86, %c0_87, %c0_88], %562 {strides = array<i32>} : memref<2x1x16x16xf32, #tpu.memory_space<vmem>>, vector<1x1x16x16xf32>,
    %c1_89 = arith.constant 1 : index
    %c0_90 = arith.constant 0 : index
    %c0_91 = arith.constant 0 : index
    %c0_92 = arith.constant 0 : index
    %563 = vector.load %arg2[%c1_89, %c0_90, %c0_91, %c0_92] : memref<2x4x16x16xf32, #tpu.memory_space<vmem>>, vector<1x1x16x16xf32>
    %564 = vector.shape_cast %563 : vector<1x1x16x16xf32> to vector<16x16xf32>
    %c1_93 = arith.constant 1 : index
    %c1_94 = arith.constant 1 : index
    %c0_95 = arith.constant 0 : index
    %c0_96 = arith.constant 0 : index
    %565 = vector.load %arg2[%c1_93, %c1_94, %c0_95, %c0_96] : memref<2x4x16x16xf32, #tpu.memory_space<vmem>>, vector<1x1x16x16xf32>
    %566 = vector.shape_cast %565 : vector<1x1x16x16xf32> to vector<16x16xf32>
    %567 = arith.addf %564, %566 : vector<16x16xf32>
    %568 = arith.maximumf %564, %566 : vector<16x16xf32>
    %c1_97 = arith.constant 1 : index
    %c2_98 = arith.constant 2 : index
    %c0_99 = arith.constant 0 : index
    %c0_100 = arith.constant 0 : index
    %569 = vector.load %arg2[%c1_97, %c2_98, %c0_99, %c0_100] : memref<2x4x16x16xf32, #tpu.memory_space<vmem>>, vector<1x1x16x16xf32>
    %570 = vector.shape_cast %569 : vector<1x1x16x16xf32> to vector<16x16xf32>
    %571 = arith.addf %567, %570 : vector<16x16xf32>
    %572 = arith.maximumf %568, %570 : vector<16x16xf32>
    %c1_101 = arith.constant 1 : index
    %c3_102 = arith.constant 3 : index
    %c0_103 = arith.constant 0 : index
    %c0_104 = arith.constant 0 : index
    %573 = vector.load %arg2[%c1_101, %c3_102, %c0_103, %c0_104] : memref<2x4x16x16xf32, #tpu.memory_space<vmem>>, vector<1x1x16x16xf32>
    %574 = vector.shape_cast %573 : vector<1x1x16x16xf32> to vector<16x16xf32>
    %575 = arith.addf %571, %574 : vector<16x16xf32>
    %576 = arith.maximumf %572, %574 : vector<16x16xf32>
    %cst_105 = arith.constant 2.500000e-01 : f32
    %577 = vector.broadcast %cst_105 : f32 to vector<16x16xf32>
    %578 = arith.mulf %575, %577 : vector<16x16xf32>
    %c0_106 = arith.constant 0 : index
    %c3_107 = arith.constant 3 : index
    %c3_108 = arith.constant 3 : index
    %579 = vector.load %arg4[%c0_106, %c3_107, %c3_108] : memref<2x22x22xf32, #tpu.memory_space<vmem>>, vector<1x16x16xf32>
    %580 = vector.shape_cast %579 : vector<1x16x16xf32> to vector<16x16xf32>
    %581 = vector.shape_cast %578 : vector<16x16xf32> to vector<1x16x16xf32>
    tpu.vector_store %arg4[%c0_106, %c3_107, %c3_108], %581 {strides = array<i32>} : memref<2x22x22xf32, #tpu.memory_space<vmem>>, vector<1x16x16xf32>,
    %c1_109 = arith.constant 1 : index
    %c3_110 = arith.constant 3 : index
    %c3_111 = arith.constant 3 : index
    %582 = vector.load %arg4[%c1_109, %c3_110, %c3_111] : memref<2x22x22xf32, #tpu.memory_space<vmem>>, vector<1x16x16xf32>
    %583 = vector.shape_cast %582 : vector<1x16x16xf32> to vector<16x16xf32>
    %584 = vector.shape_cast %576 : vector<16x16xf32> to vector<1x16x16xf32>
    tpu.vector_store %arg4[%c1_109, %c3_110, %c3_111], %584 {strides = array<i32>} : memref<2x22x22xf32, #tpu.memory_space<vmem>>, vector<1x16x16xf32>,
    %cst_112 = arith.constant 0.000000e+00 : f32
    %585 = vector.broadcast %cst_112 : f32 to vector<16x16xf32>
    %cst_113 = arith.constant 0.000000e+00 : f32
    %586 = vector.broadcast %cst_113 : f32 to vector<16x16xf32>
    %cst_114 = arith.constant 0.000000e+00 : f32
    %587 = vector.broadcast %cst_114 : f32 to vector<16x16xf32>
    %cst_115 = arith.constant 0.000000e+00 : f32
    %588 = vector.broadcast %cst_115 : f32 to vector<16x16xf32>
    %c0_116 = arith.constant 0 : index
    %c0_117 = arith.constant 0 : index
    %c0_118 = arith.constant 0 : index
    %589 = vector.load %arg4[%c0_116, %c0_117, %c0_118] : memref<2x22x22xf32, #tpu.memory_space<vmem>>, vector<1x16x22xf32>
    %590 = vector.shape_cast %589 : vector<1x16x22xf32> to vector<16x22xf32>
    %591 = vector.extract_strided_slice %590 {offsets = [0, 0], sizes = [16, 16], strides = [1, 1]} : vector<16x22xf32> to vector<16x16xf32>
    %592 = vector.broadcast %8 : f32 to vector<16x16xf32>
    %593 = arith.mulf %592, %591 : vector<16x16xf32>
    %594 = arith.addf %585, %593 : vector<16x16xf32>
    %595 = vector.extract_strided_slice %590 {offsets = [0, 1], sizes = [16, 16], strides = [1, 1]} : vector<16x22xf32> to vector<16x16xf32>
    %596 = vector.broadcast %9 : f32 to vector<16x16xf32>
    %597 = arith.mulf %596, %595 : vector<16x16xf32>
    %598 = arith.addf %586, %597 : vector<16x16xf32>
    %599 = vector.extract_strided_slice %590 {offsets = [0, 2], sizes = [16, 16], strides = [1, 1]} : vector<16x22xf32> to vector<16x16xf32>
    %600 = vector.broadcast %10 : f32 to vector<16x16xf32>
    %601 = arith.mulf %600, %599 : vector<16x16xf32>
    %602 = arith.addf %587, %601 : vector<16x16xf32>
    %603 = vector.extract_strided_slice %590 {offsets = [0, 3], sizes = [16, 16], strides = [1, 1]} : vector<16x22xf32> to vector<16x16xf32>
    %604 = vector.broadcast %11 : f32 to vector<16x16xf32>
    %605 = arith.mulf %604, %603 : vector<16x16xf32>
    %606 = arith.addf %588, %605 : vector<16x16xf32>
    %607 = vector.extract_strided_slice %590 {offsets = [0, 4], sizes = [16, 16], strides = [1, 1]} : vector<16x22xf32> to vector<16x16xf32>
    %608 = vector.broadcast %12 : f32 to vector<16x16xf32>
    %609 = arith.mulf %608, %607 : vector<16x16xf32>
    %610 = arith.addf %594, %609 : vector<16x16xf32>
    %611 = vector.extract_strided_slice %590 {offsets = [0, 5], sizes = [16, 16], strides = [1, 1]} : vector<16x22xf32> to vector<16x16xf32>
    %612 = vector.broadcast %13 : f32 to vector<16x16xf32>
    %613 = arith.mulf %612, %611 : vector<16x16xf32>
    %614 = arith.addf %598, %613 : vector<16x16xf32>
    %615 = vector.extract_strided_slice %590 {offsets = [0, 6], sizes = [16, 16], strides = [1, 1]} : vector<16x22xf32> to vector<16x16xf32>
    %616 = vector.broadcast %14 : f32 to vector<16x16xf32>
    %617 = arith.mulf %616, %615 : vector<16x16xf32>
    %618 = arith.addf %602, %617 : vector<16x16xf32>
    %c0_119 = arith.constant 0 : index
    %c1_120 = arith.constant 1 : index
    %c0_121 = arith.constant 0 : index
    %619 = vector.load %arg4[%c0_119, %c1_120, %c0_121] : memref<2x22x22xf32, #tpu.memory_space<vmem>>, vector<1x16x22xf32>
    %620 = vector.shape_cast %619 : vector<1x16x22xf32> to vector<16x22xf32>
    %621 = vector.extract_strided_slice %620 {offsets = [0, 0], sizes = [16, 16], strides = [1, 1]} : vector<16x22xf32> to vector<16x16xf32>
    %622 = vector.broadcast %15 : f32 to vector<16x16xf32>
    %623 = arith.mulf %622, %621 : vector<16x16xf32>
    %624 = arith.addf %606, %623 : vector<16x16xf32>
    %625 = vector.extract_strided_slice %620 {offsets = [0, 1], sizes = [16, 16], strides = [1, 1]} : vector<16x22xf32> to vector<16x16xf32>
    %626 = vector.broadcast %16 : f32 to vector<16x16xf32>
    %627 = arith.mulf %626, %625 : vector<16x16xf32>
    %628 = arith.addf %610, %627 : vector<16x16xf32>
    %629 = vector.extract_strided_slice %620 {offsets = [0, 2], sizes = [16, 16], strides = [1, 1]} : vector<16x22xf32> to vector<16x16xf32>
    %630 = vector.broadcast %17 : f32 to vector<16x16xf32>
    %631 = arith.mulf %630, %629 : vector<16x16xf32>
    %632 = arith.addf %614, %631 : vector<16x16xf32>
    %633 = vector.extract_strided_slice %620 {offsets = [0, 3], sizes = [16, 16], strides = [1, 1]} : vector<16x22xf32> to vector<16x16xf32>
    %634 = vector.broadcast %18 : f32 to vector<16x16xf32>
    %635 = arith.mulf %634, %633 : vector<16x16xf32>
    %636 = arith.addf %618, %635 : vector<16x16xf32>
    %637 = vector.extract_strided_slice %620 {offsets = [0, 4], sizes = [16, 16], strides = [1, 1]} : vector<16x22xf32> to vector<16x16xf32>
    %638 = vector.broadcast %19 : f32 to vector<16x16xf32>
    %639 = arith.mulf %638, %637 : vector<16x16xf32>
    %640 = arith.addf %624, %639 : vector<16x16xf32>
    %641 = vector.extract_strided_slice %620 {offsets = [0, 5], sizes = [16, 16], strides = [1, 1]} : vector<16x22xf32> to vector<16x16xf32>
    %642 = vector.broadcast %20 : f32 to vector<16x16xf32>
    %643 = arith.mulf %642, %641 : vector<16x16xf32>
    %644 = arith.addf %628, %643 : vector<16x16xf32>
    %645 = vector.extract_strided_slice %620 {offsets = [0, 6], sizes = [16, 16], strides = [1, 1]} : vector<16x22xf32> to vector<16x16xf32>
    %646 = vector.broadcast %21 : f32 to vector<16x16xf32>
    %647 = arith.mulf %646, %645 : vector<16x16xf32>
    %648 = arith.addf %632, %647 : vector<16x16xf32>
    %c0_122 = arith.constant 0 : index
    %c2_123 = arith.constant 2 : index
    %c0_124 = arith.constant 0 : index
    %649 = vector.load %arg4[%c0_122, %c2_123, %c0_124] : memref<2x22x22xf32, #tpu.memory_space<vmem>>, vector<1x16x22xf32>
    %650 = vector.shape_cast %649 : vector<1x16x22xf32> to vector<16x22xf32>
    %651 = vector.extract_strided_slice %650 {offsets = [0, 0], sizes = [16, 16], strides = [1, 1]} : vector<16x22xf32> to vector<16x16xf32>
    %652 = vector.broadcast %22 : f32 to vector<16x16xf32>
    %653 = arith.mulf %652, %651 : vector<16x16xf32>
    %654 = arith.addf %636, %653 : vector<16x16xf32>
    %655 = vector.extract_strided_slice %650 {offsets = [0, 1], sizes = [16, 16], strides = [1, 1]} : vector<16x22xf32> to vector<16x16xf32>
    %656 = vector.broadcast %23 : f32 to vector<16x16xf32>
    %657 = arith.mulf %656, %655 : vector<16x16xf32>
    %658 = arith.addf %640, %657 : vector<16x16xf32>
    %659 = vector.extract_strided_slice %650 {offsets = [0, 2], sizes = [16, 16], strides = [1, 1]} : vector<16x22xf32> to vector<16x16xf32>
    %660 = vector.broadcast %24 : f32 to vector<16x16xf32>
    %661 = arith.mulf %660, %659 : vector<16x16xf32>
    %662 = arith.addf %644, %661 : vector<16x16xf32>
    %663 = vector.extract_strided_slice %650 {offsets = [0, 3], sizes = [16, 16], strides = [1, 1]} : vector<16x22xf32> to vector<16x16xf32>
    %664 = vector.broadcast %25 : f32 to vector<16x16xf32>
    %665 = arith.mulf %664, %663 : vector<16x16xf32>
    %666 = arith.addf %648, %665 : vector<16x16xf32>
    %667 = vector.extract_strided_slice %650 {offsets = [0, 4], sizes = [16, 16], strides = [1, 1]} : vector<16x22xf32> to vector<16x16xf32>
    %668 = vector.broadcast %26 : f32 to vector<16x16xf32>
    %669 = arith.mulf %668, %667 : vector<16x16xf32>
    %670 = arith.addf %654, %669 : vector<16x16xf32>
    %671 = vector.extract_strided_slice %650 {offsets = [0, 5], sizes = [16, 16], strides = [1, 1]} : vector<16x22xf32> to vector<16x16xf32>
    %672 = vector.broadcast %27 : f32 to vector<16x16xf32>
    %673 = arith.mulf %672, %671 : vector<16x16xf32>
    %674 = arith.addf %658, %673 : vector<16x16xf32>
    %675 = vector.extract_strided_slice %650 {offsets = [0, 6], sizes = [16, 16], strides = [1, 1]} : vector<16x22xf32> to vector<16x16xf32>
    %676 = vector.broadcast %28 : f32 to vector<16x16xf32>
    %677 = arith.mulf %676, %675 : vector<16x16xf32>
    %678 = arith.addf %662, %677 : vector<16x16xf32>
    %c0_125 = arith.constant 0 : index
    %c3_126 = arith.constant 3 : index
    %c0_127 = arith.constant 0 : index
    %679 = vector.load %arg4[%c0_125, %c3_126, %c0_127] : memref<2x22x22xf32, #tpu.memory_space<vmem>>, vector<1x16x22xf32>
    %680 = vector.shape_cast %679 : vector<1x16x22xf32> to vector<16x22xf32>
    %681 = vector.extract_strided_slice %680 {offsets = [0, 0], sizes = [16, 16], strides = [1, 1]} : vector<16x22xf32> to vector<16x16xf32>
    %682 = vector.broadcast %29 : f32 to vector<16x16xf32>
    %683 = arith.mulf %682, %681 : vector<16x16xf32>
    %684 = arith.addf %666, %683 : vector<16x16xf32>
    %685 = vector.extract_strided_slice %680 {offsets = [0, 1], sizes = [16, 16], strides = [1, 1]} : vector<16x22xf32> to vector<16x16xf32>
    %686 = vector.broadcast %30 : f32 to vector<16x16xf32>
    %687 = arith.mulf %686, %685 : vector<16x16xf32>
    %688 = arith.addf %670, %687 : vector<16x16xf32>
    %689 = vector.extract_strided_slice %680 {offsets = [0, 2], sizes = [16, 16], strides = [1, 1]} : vector<16x22xf32> to vector<16x16xf32>
    %690 = vector.broadcast %31 : f32 to vector<16x16xf32>
    %691 = arith.mulf %690, %689 : vector<16x16xf32>
    %692 = arith.addf %674, %691 : vector<16x16xf32>
    %693 = vector.extract_strided_slice %680 {offsets = [0, 3], sizes = [16, 16], strides = [1, 1]} : vector<16x22xf32> to vector<16x16xf32>
    %694 = vector.broadcast %32 : f32 to vector<16x16xf32>
    %695 = arith.mulf %694, %693 : vector<16x16xf32>
    %696 = arith.addf %678, %695 : vector<16x16xf32>
    %697 = vector.extract_strided_slice %680 {offsets = [0, 4], sizes = [16, 16], strides = [1, 1]} : vector<16x22xf32> to vector<16x16xf32>
    %698 = vector.broadcast %33 : f32 to vector<16x16xf32>
    %699 = arith.mulf %698, %697 : vector<16x16xf32>
    %700 = arith.addf %684, %699 : vector<16x16xf32>
    %701 = vector.extract_strided_slice %680 {offsets = [0, 5], sizes = [16, 16], strides = [1, 1]} : vector<16x22xf32> to vector<16x16xf32>
    %702 = vector.broadcast %34 : f32 to vector<16x16xf32>
    %703 = arith.mulf %702, %701 : vector<16x16xf32>
    %704 = arith.addf %688, %703 : vector<16x16xf32>
    %705 = vector.extract_strided_slice %680 {offsets = [0, 6], sizes = [16, 16], strides = [1, 1]} : vector<16x22xf32> to vector<16x16xf32>
    %706 = vector.broadcast %35 : f32 to vector<16x16xf32>
    %707 = arith.mulf %706, %705 : vector<16x16xf32>
    %708 = arith.addf %692, %707 : vector<16x16xf32>
    %c0_128 = arith.constant 0 : index
    %c4_129 = arith.constant 4 : index
    %c0_130 = arith.constant 0 : index
    %709 = vector.load %arg4[%c0_128, %c4_129, %c0_130] : memref<2x22x22xf32, #tpu.memory_space<vmem>>, vector<1x16x22xf32>
    %710 = vector.shape_cast %709 : vector<1x16x22xf32> to vector<16x22xf32>
    %711 = vector.extract_strided_slice %710 {offsets = [0, 0], sizes = [16, 16], strides = [1, 1]} : vector<16x22xf32> to vector<16x16xf32>
    %712 = vector.broadcast %36 : f32 to vector<16x16xf32>
    %713 = arith.mulf %712, %711 : vector<16x16xf32>
    %714 = arith.addf %696, %713 : vector<16x16xf32>
    %715 = vector.extract_strided_slice %710 {offsets = [0, 1], sizes = [16, 16], strides = [1, 1]} : vector<16x22xf32> to vector<16x16xf32>
    %716 = vector.broadcast %37 : f32 to vector<16x16xf32>
    %717 = arith.mulf %716, %715 : vector<16x16xf32>
    %718 = arith.addf %700, %717 : vector<16x16xf32>
    %719 = vector.extract_strided_slice %710 {offsets = [0, 2], sizes = [16, 16], strides = [1, 1]} : vector<16x22xf32> to vector<16x16xf32>
    %720 = vector.broadcast %38 : f32 to vector<16x16xf32>
    %721 = arith.mulf %720, %719 : vector<16x16xf32>
    %722 = arith.addf %704, %721 : vector<16x16xf32>
    %723 = vector.extract_strided_slice %710 {offsets = [0, 3], sizes = [16, 16], strides = [1, 1]} : vector<16x22xf32> to vector<16x16xf32>
    %724 = vector.broadcast %39 : f32 to vector<16x16xf32>
    %725 = arith.mulf %724, %723 : vector<16x16xf32>
    %726 = arith.addf %708, %725 : vector<16x16xf32>
    %727 = vector.extract_strided_slice %710 {offsets = [0, 4], sizes = [16, 16], strides = [1, 1]} : vector<16x22xf32> to vector<16x16xf32>
    %728 = vector.broadcast %40 : f32 to vector<16x16xf32>
    %729 = arith.mulf %728, %727 : vector<16x16xf32>
    %730 = arith.addf %714, %729 : vector<16x16xf32>
    %731 = vector.extract_strided_slice %710 {offsets = [0, 5], sizes = [16, 16], strides = [1, 1]} : vector<16x22xf32> to vector<16x16xf32>
    %732 = vector.broadcast %41 : f32 to vector<16x16xf32>
    %733 = arith.mulf %732, %731 : vector<16x16xf32>
    %734 = arith.addf %718, %733 : vector<16x16xf32>
    %735 = vector.extract_strided_slice %710 {offsets = [0, 6], sizes = [16, 16], strides = [1, 1]} : vector<16x22xf32> to vector<16x16xf32>
    %736 = vector.broadcast %42 : f32 to vector<16x16xf32>
    %737 = arith.mulf %736, %735 : vector<16x16xf32>
    %738 = arith.addf %722, %737 : vector<16x16xf32>
    %c0_131 = arith.constant 0 : index
    %c5_132 = arith.constant 5 : index
    %c0_133 = arith.constant 0 : index
    %739 = vector.load %arg4[%c0_131, %c5_132, %c0_133] : memref<2x22x22xf32, #tpu.memory_space<vmem>>, vector<1x16x22xf32>
    %740 = vector.shape_cast %739 : vector<1x16x22xf32> to vector<16x22xf32>
    %741 = vector.extract_strided_slice %740 {offsets = [0, 0], sizes = [16, 16], strides = [1, 1]} : vector<16x22xf32> to vector<16x16xf32>
    %742 = vector.broadcast %43 : f32 to vector<16x16xf32>
    %743 = arith.mulf %742, %741 : vector<16x16xf32>
    %744 = arith.addf %726, %743 : vector<16x16xf32>
    %745 = vector.extract_strided_slice %740 {offsets = [0, 1], sizes = [16, 16], strides = [1, 1]} : vector<16x22xf32> to vector<16x16xf32>
    %746 = vector.broadcast %44 : f32 to vector<16x16xf32>
    %747 = arith.mulf %746, %745 : vector<16x16xf32>
    %748 = arith.addf %730, %747 : vector<16x16xf32>
    %749 = vector.extract_strided_slice %740 {offsets = [0, 2], sizes = [16, 16], strides = [1, 1]} : vector<16x22xf32> to vector<16x16xf32>
    %750 = vector.broadcast %45 : f32 to vector<16x16xf32>
    %751 = arith.mulf %750, %749 : vector<16x16xf32>
    %752 = arith.addf %734, %751 : vector<16x16xf32>
    %753 = vector.extract_strided_slice %740 {offsets = [0, 3], sizes = [16, 16], strides = [1, 1]} : vector<16x22xf32> to vector<16x16xf32>
    %754 = vector.broadcast %46 : f32 to vector<16x16xf32>
    %755 = arith.mulf %754, %753 : vector<16x16xf32>
    %756 = arith.addf %738, %755 : vector<16x16xf32>
    %757 = vector.extract_strided_slice %740 {offsets = [0, 4], sizes = [16, 16], strides = [1, 1]} : vector<16x22xf32> to vector<16x16xf32>
    %758 = vector.broadcast %47 : f32 to vector<16x16xf32>
    %759 = arith.mulf %758, %757 : vector<16x16xf32>
    %760 = arith.addf %744, %759 : vector<16x16xf32>
    %761 = vector.extract_strided_slice %740 {offsets = [0, 5], sizes = [16, 16], strides = [1, 1]} : vector<16x22xf32> to vector<16x16xf32>
    %762 = vector.broadcast %48 : f32 to vector<16x16xf32>
    %763 = arith.mulf %762, %761 : vector<16x16xf32>
    %764 = arith.addf %748, %763 : vector<16x16xf32>
    %765 = vector.extract_strided_slice %740 {offsets = [0, 6], sizes = [16, 16], strides = [1, 1]} : vector<16x22xf32> to vector<16x16xf32>
    %766 = vector.broadcast %49 : f32 to vector<16x16xf32>
    %767 = arith.mulf %766, %765 : vector<16x16xf32>
    %768 = arith.addf %752, %767 : vector<16x16xf32>
    %c0_134 = arith.constant 0 : index
    %c6_135 = arith.constant 6 : index
    %c0_136 = arith.constant 0 : index
    %769 = vector.load %arg4[%c0_134, %c6_135, %c0_136] : memref<2x22x22xf32, #tpu.memory_space<vmem>>, vector<1x16x22xf32>
    %770 = vector.shape_cast %769 : vector<1x16x22xf32> to vector<16x22xf32>
    %771 = vector.extract_strided_slice %770 {offsets = [0, 0], sizes = [16, 16], strides = [1, 1]} : vector<16x22xf32> to vector<16x16xf32>
    %772 = vector.broadcast %50 : f32 to vector<16x16xf32>
    %773 = arith.mulf %772, %771 : vector<16x16xf32>
    %774 = arith.addf %756, %773 : vector<16x16xf32>
    %775 = vector.extract_strided_slice %770 {offsets = [0, 1], sizes = [16, 16], strides = [1, 1]} : vector<16x22xf32> to vector<16x16xf32>
    %776 = vector.broadcast %51 : f32 to vector<16x16xf32>
    %777 = arith.mulf %776, %775 : vector<16x16xf32>
    %778 = arith.addf %760, %777 : vector<16x16xf32>
    %779 = vector.extract_strided_slice %770 {offsets = [0, 2], sizes = [16, 16], strides = [1, 1]} : vector<16x22xf32> to vector<16x16xf32>
    %780 = vector.broadcast %52 : f32 to vector<16x16xf32>
    %781 = arith.mulf %780, %779 : vector<16x16xf32>
    %782 = arith.addf %764, %781 : vector<16x16xf32>
    %783 = vector.extract_strided_slice %770 {offsets = [0, 3], sizes = [16, 16], strides = [1, 1]} : vector<16x22xf32> to vector<16x16xf32>
    %784 = vector.broadcast %53 : f32 to vector<16x16xf32>
    %785 = arith.mulf %784, %783 : vector<16x16xf32>
    %786 = arith.addf %768, %785 : vector<16x16xf32>
    %787 = vector.extract_strided_slice %770 {offsets = [0, 4], sizes = [16, 16], strides = [1, 1]} : vector<16x22xf32> to vector<16x16xf32>
    %788 = vector.broadcast %54 : f32 to vector<16x16xf32>
    %789 = arith.mulf %788, %787 : vector<16x16xf32>
    %790 = arith.addf %774, %789 : vector<16x16xf32>
    %791 = vector.extract_strided_slice %770 {offsets = [0, 5], sizes = [16, 16], strides = [1, 1]} : vector<16x22xf32> to vector<16x16xf32>
    %792 = vector.broadcast %55 : f32 to vector<16x16xf32>
    %793 = arith.mulf %792, %791 : vector<16x16xf32>
    %794 = arith.addf %778, %793 : vector<16x16xf32>
    %795 = vector.extract_strided_slice %770 {offsets = [0, 6], sizes = [16, 16], strides = [1, 1]} : vector<16x22xf32> to vector<16x16xf32>
    %796 = vector.broadcast %56 : f32 to vector<16x16xf32>
    %797 = arith.mulf %796, %795 : vector<16x16xf32>
    %798 = arith.addf %782, %797 : vector<16x16xf32>
    %c1_137 = arith.constant 1 : index
    %c0_138 = arith.constant 0 : index
    %c0_139 = arith.constant 0 : index
    %799 = vector.load %arg4[%c1_137, %c0_138, %c0_139] : memref<2x22x22xf32, #tpu.memory_space<vmem>>, vector<1x16x22xf32>
    %800 = vector.shape_cast %799 : vector<1x16x22xf32> to vector<16x22xf32>
    %801 = vector.extract_strided_slice %800 {offsets = [0, 0], sizes = [16, 16], strides = [1, 1]} : vector<16x22xf32> to vector<16x16xf32>
    %802 = vector.broadcast %57 : f32 to vector<16x16xf32>
    %803 = arith.mulf %802, %801 : vector<16x16xf32>
    %804 = arith.addf %786, %803 : vector<16x16xf32>
    %805 = vector.extract_strided_slice %800 {offsets = [0, 1], sizes = [16, 16], strides = [1, 1]} : vector<16x22xf32> to vector<16x16xf32>
    %806 = vector.broadcast %58 : f32 to vector<16x16xf32>
    %807 = arith.mulf %806, %805 : vector<16x16xf32>
    %808 = arith.addf %790, %807 : vector<16x16xf32>
    %809 = vector.extract_strided_slice %800 {offsets = [0, 2], sizes = [16, 16], strides = [1, 1]} : vector<16x22xf32> to vector<16x16xf32>
    %810 = vector.broadcast %59 : f32 to vector<16x16xf32>
    %811 = arith.mulf %810, %809 : vector<16x16xf32>
    %812 = arith.addf %794, %811 : vector<16x16xf32>
    %813 = vector.extract_strided_slice %800 {offsets = [0, 3], sizes = [16, 16], strides = [1, 1]} : vector<16x22xf32> to vector<16x16xf32>
    %814 = vector.broadcast %60 : f32 to vector<16x16xf32>
    %815 = arith.mulf %814, %813 : vector<16x16xf32>
    %816 = arith.addf %798, %815 : vector<16x16xf32>
    %817 = vector.extract_strided_slice %800 {offsets = [0, 4], sizes = [16, 16], strides = [1, 1]} : vector<16x22xf32> to vector<16x16xf32>
    %818 = vector.broadcast %61 : f32 to vector<16x16xf32>
    %819 = arith.mulf %818, %817 : vector<16x16xf32>
    %820 = arith.addf %804, %819 : vector<16x16xf32>
    %821 = vector.extract_strided_slice %800 {offsets = [0, 5], sizes = [16, 16], strides = [1, 1]} : vector<16x22xf32> to vector<16x16xf32>
    %822 = vector.broadcast %62 : f32 to vector<16x16xf32>
    %823 = arith.mulf %822, %821 : vector<16x16xf32>
    %824 = arith.addf %808, %823 : vector<16x16xf32>
    %825 = vector.extract_strided_slice %800 {offsets = [0, 6], sizes = [16, 16], strides = [1, 1]} : vector<16x22xf32> to vector<16x16xf32>
    %826 = vector.broadcast %63 : f32 to vector<16x16xf32>
    %827 = arith.mulf %826, %825 : vector<16x16xf32>
    %828 = arith.addf %812, %827 : vector<16x16xf32>
    %c1_140 = arith.constant 1 : index
    %c1_141 = arith.constant 1 : index
    %c0_142 = arith.constant 0 : index
    %829 = vector.load %arg4[%c1_140, %c1_141, %c0_142] : memref<2x22x22xf32, #tpu.memory_space<vmem>>, vector<1x16x22xf32>
    %830 = vector.shape_cast %829 : vector<1x16x22xf32> to vector<16x22xf32>
    %831 = vector.extract_strided_slice %830 {offsets = [0, 0], sizes = [16, 16], strides = [1, 1]} : vector<16x22xf32> to vector<16x16xf32>
    %832 = vector.broadcast %64 : f32 to vector<16x16xf32>
    %833 = arith.mulf %832, %831 : vector<16x16xf32>
    %834 = arith.addf %816, %833 : vector<16x16xf32>
    %835 = vector.extract_strided_slice %830 {offsets = [0, 1], sizes = [16, 16], strides = [1, 1]} : vector<16x22xf32> to vector<16x16xf32>
    %836 = vector.broadcast %65 : f32 to vector<16x16xf32>
    %837 = arith.mulf %836, %835 : vector<16x16xf32>
    %838 = arith.addf %820, %837 : vector<16x16xf32>
    %839 = vector.extract_strided_slice %830 {offsets = [0, 2], sizes = [16, 16], strides = [1, 1]} : vector<16x22xf32> to vector<16x16xf32>
    %840 = vector.broadcast %66 : f32 to vector<16x16xf32>
    %841 = arith.mulf %840, %839 : vector<16x16xf32>
    %842 = arith.addf %824, %841 : vector<16x16xf32>
    %843 = vector.extract_strided_slice %830 {offsets = [0, 3], sizes = [16, 16], strides = [1, 1]} : vector<16x22xf32> to vector<16x16xf32>
    %844 = vector.broadcast %67 : f32 to vector<16x16xf32>
    %845 = arith.mulf %844, %843 : vector<16x16xf32>
    %846 = arith.addf %828, %845 : vector<16x16xf32>
    %847 = vector.extract_strided_slice %830 {offsets = [0, 4], sizes = [16, 16], strides = [1, 1]} : vector<16x22xf32> to vector<16x16xf32>
    %848 = vector.broadcast %68 : f32 to vector<16x16xf32>
    %849 = arith.mulf %848, %847 : vector<16x16xf32>
    %850 = arith.addf %834, %849 : vector<16x16xf32>
    %851 = vector.extract_strided_slice %830 {offsets = [0, 5], sizes = [16, 16], strides = [1, 1]} : vector<16x22xf32> to vector<16x16xf32>
    %852 = vector.broadcast %69 : f32 to vector<16x16xf32>
    %853 = arith.mulf %852, %851 : vector<16x16xf32>
    %854 = arith.addf %838, %853 : vector<16x16xf32>
    %855 = vector.extract_strided_slice %830 {offsets = [0, 6], sizes = [16, 16], strides = [1, 1]} : vector<16x22xf32> to vector<16x16xf32>
    %856 = vector.broadcast %70 : f32 to vector<16x16xf32>
    %857 = arith.mulf %856, %855 : vector<16x16xf32>
    %858 = arith.addf %842, %857 : vector<16x16xf32>
    %c1_143 = arith.constant 1 : index
    %c2_144 = arith.constant 2 : index
    %c0_145 = arith.constant 0 : index
    %859 = vector.load %arg4[%c1_143, %c2_144, %c0_145] : memref<2x22x22xf32, #tpu.memory_space<vmem>>, vector<1x16x22xf32>
    %860 = vector.shape_cast %859 : vector<1x16x22xf32> to vector<16x22xf32>
    %861 = vector.extract_strided_slice %860 {offsets = [0, 0], sizes = [16, 16], strides = [1, 1]} : vector<16x22xf32> to vector<16x16xf32>
    %862 = vector.broadcast %71 : f32 to vector<16x16xf32>
    %863 = arith.mulf %862, %861 : vector<16x16xf32>
    %864 = arith.addf %846, %863 : vector<16x16xf32>
    %865 = vector.extract_strided_slice %860 {offsets = [0, 1], sizes = [16, 16], strides = [1, 1]} : vector<16x22xf32> to vector<16x16xf32>
    %866 = vector.broadcast %72 : f32 to vector<16x16xf32>
    %867 = arith.mulf %866, %865 : vector<16x16xf32>
    %868 = arith.addf %850, %867 : vector<16x16xf32>
    %869 = vector.extract_strided_slice %860 {offsets = [0, 2], sizes = [16, 16], strides = [1, 1]} : vector<16x22xf32> to vector<16x16xf32>
    %870 = vector.broadcast %73 : f32 to vector<16x16xf32>
    %871 = arith.mulf %870, %869 : vector<16x16xf32>
    %872 = arith.addf %854, %871 : vector<16x16xf32>
    %873 = vector.extract_strided_slice %860 {offsets = [0, 3], sizes = [16, 16], strides = [1, 1]} : vector<16x22xf32> to vector<16x16xf32>
    %874 = vector.broadcast %74 : f32 to vector<16x16xf32>
    %875 = arith.mulf %874, %873 : vector<16x16xf32>
    %876 = arith.addf %858, %875 : vector<16x16xf32>
    %877 = vector.extract_strided_slice %860 {offsets = [0, 4], sizes = [16, 16], strides = [1, 1]} : vector<16x22xf32> to vector<16x16xf32>
    %878 = vector.broadcast %75 : f32 to vector<16x16xf32>
    %879 = arith.mulf %878, %877 : vector<16x16xf32>
    %880 = arith.addf %864, %879 : vector<16x16xf32>
    %881 = vector.extract_strided_slice %860 {offsets = [0, 5], sizes = [16, 16], strides = [1, 1]} : vector<16x22xf32> to vector<16x16xf32>
    %882 = vector.broadcast %76 : f32 to vector<16x16xf32>
    %883 = arith.mulf %882, %881 : vector<16x16xf32>
    %884 = arith.addf %868, %883 : vector<16x16xf32>
    %885 = vector.extract_strided_slice %860 {offsets = [0, 6], sizes = [16, 16], strides = [1, 1]} : vector<16x22xf32> to vector<16x16xf32>
    %886 = vector.broadcast %77 : f32 to vector<16x16xf32>
    %887 = arith.mulf %886, %885 : vector<16x16xf32>
    %888 = arith.addf %872, %887 : vector<16x16xf32>
    %c1_146 = arith.constant 1 : index
    %c3_147 = arith.constant 3 : index
    %c0_148 = arith.constant 0 : index
    %889 = vector.load %arg4[%c1_146, %c3_147, %c0_148] : memref<2x22x22xf32, #tpu.memory_space<vmem>>, vector<1x16x22xf32>
    %890 = vector.shape_cast %889 : vector<1x16x22xf32> to vector<16x22xf32>
    %891 = vector.extract_strided_slice %890 {offsets = [0, 0], sizes = [16, 16], strides = [1, 1]} : vector<16x22xf32> to vector<16x16xf32>
    %892 = vector.broadcast %78 : f32 to vector<16x16xf32>
    %893 = arith.mulf %892, %891 : vector<16x16xf32>
    %894 = arith.addf %876, %893 : vector<16x16xf32>
    %895 = vector.extract_strided_slice %890 {offsets = [0, 1], sizes = [16, 16], strides = [1, 1]} : vector<16x22xf32> to vector<16x16xf32>
    %896 = vector.broadcast %79 : f32 to vector<16x16xf32>
    %897 = arith.mulf %896, %895 : vector<16x16xf32>
    %898 = arith.addf %880, %897 : vector<16x16xf32>
    %899 = vector.extract_strided_slice %890 {offsets = [0, 2], sizes = [16, 16], strides = [1, 1]} : vector<16x22xf32> to vector<16x16xf32>
    %900 = vector.broadcast %80 : f32 to vector<16x16xf32>
    %901 = arith.mulf %900, %899 : vector<16x16xf32>
    %902 = arith.addf %884, %901 : vector<16x16xf32>
    %903 = vector.extract_strided_slice %890 {offsets = [0, 3], sizes = [16, 16], strides = [1, 1]} : vector<16x22xf32> to vector<16x16xf32>
    %904 = vector.broadcast %81 : f32 to vector<16x16xf32>
    %905 = arith.mulf %904, %903 : vector<16x16xf32>
    %906 = arith.addf %888, %905 : vector<16x16xf32>
    %907 = vector.extract_strided_slice %890 {offsets = [0, 4], sizes = [16, 16], strides = [1, 1]} : vector<16x22xf32> to vector<16x16xf32>
    %908 = vector.broadcast %82 : f32 to vector<16x16xf32>
    %909 = arith.mulf %908, %907 : vector<16x16xf32>
    %910 = arith.addf %894, %909 : vector<16x16xf32>
    %911 = vector.extract_strided_slice %890 {offsets = [0, 5], sizes = [16, 16], strides = [1, 1]} : vector<16x22xf32> to vector<16x16xf32>
    %912 = vector.broadcast %83 : f32 to vector<16x16xf32>
    %913 = arith.mulf %912, %911 : vector<16x16xf32>
    %914 = arith.addf %898, %913 : vector<16x16xf32>
    %915 = vector.extract_strided_slice %890 {offsets = [0, 6], sizes = [16, 16], strides = [1, 1]} : vector<16x22xf32> to vector<16x16xf32>
    %916 = vector.broadcast %84 : f32 to vector<16x16xf32>
    %917 = arith.mulf %916, %915 : vector<16x16xf32>
    %918 = arith.addf %902, %917 : vector<16x16xf32>
    %c1_149 = arith.constant 1 : index
    %c4_150 = arith.constant 4 : index
    %c0_151 = arith.constant 0 : index
    %919 = vector.load %arg4[%c1_149, %c4_150, %c0_151] : memref<2x22x22xf32, #tpu.memory_space<vmem>>, vector<1x16x22xf32>
    %920 = vector.shape_cast %919 : vector<1x16x22xf32> to vector<16x22xf32>
    %921 = vector.extract_strided_slice %920 {offsets = [0, 0], sizes = [16, 16], strides = [1, 1]} : vector<16x22xf32> to vector<16x16xf32>
    %922 = vector.broadcast %85 : f32 to vector<16x16xf32>
    %923 = arith.mulf %922, %921 : vector<16x16xf32>
    %924 = arith.addf %906, %923 : vector<16x16xf32>
    %925 = vector.extract_strided_slice %920 {offsets = [0, 1], sizes = [16, 16], strides = [1, 1]} : vector<16x22xf32> to vector<16x16xf32>
    %926 = vector.broadcast %86 : f32 to vector<16x16xf32>
    %927 = arith.mulf %926, %925 : vector<16x16xf32>
    %928 = arith.addf %910, %927 : vector<16x16xf32>
    %929 = vector.extract_strided_slice %920 {offsets = [0, 2], sizes = [16, 16], strides = [1, 1]} : vector<16x22xf32> to vector<16x16xf32>
    %930 = vector.broadcast %87 : f32 to vector<16x16xf32>
    %931 = arith.mulf %930, %929 : vector<16x16xf32>
    %932 = arith.addf %914, %931 : vector<16x16xf32>
    %933 = vector.extract_strided_slice %920 {offsets = [0, 3], sizes = [16, 16], strides = [1, 1]} : vector<16x22xf32> to vector<16x16xf32>
    %934 = vector.broadcast %88 : f32 to vector<16x16xf32>
    %935 = arith.mulf %934, %933 : vector<16x16xf32>
    %936 = arith.addf %918, %935 : vector<16x16xf32>
    %937 = vector.extract_strided_slice %920 {offsets = [0, 4], sizes = [16, 16], strides = [1, 1]} : vector<16x22xf32> to vector<16x16xf32>
    %938 = vector.broadcast %89 : f32 to vector<16x16xf32>
    %939 = arith.mulf %938, %937 : vector<16x16xf32>
    %940 = arith.addf %924, %939 : vector<16x16xf32>
    %941 = vector.extract_strided_slice %920 {offsets = [0, 5], sizes = [16, 16], strides = [1, 1]} : vector<16x22xf32> to vector<16x16xf32>
    %942 = vector.broadcast %90 : f32 to vector<16x16xf32>
    %943 = arith.mulf %942, %941 : vector<16x16xf32>
    %944 = arith.addf %928, %943 : vector<16x16xf32>
    %945 = vector.extract_strided_slice %920 {offsets = [0, 6], sizes = [16, 16], strides = [1, 1]} : vector<16x22xf32> to vector<16x16xf32>
    %946 = vector.broadcast %91 : f32 to vector<16x16xf32>
    %947 = arith.mulf %946, %945 : vector<16x16xf32>
    %948 = arith.addf %932, %947 : vector<16x16xf32>
    %c1_152 = arith.constant 1 : index
    %c5_153 = arith.constant 5 : index
    %c0_154 = arith.constant 0 : index
    %949 = vector.load %arg4[%c1_152, %c5_153, %c0_154] : memref<2x22x22xf32, #tpu.memory_space<vmem>>, vector<1x16x22xf32>
    %950 = vector.shape_cast %949 : vector<1x16x22xf32> to vector<16x22xf32>
    %951 = vector.extract_strided_slice %950 {offsets = [0, 0], sizes = [16, 16], strides = [1, 1]} : vector<16x22xf32> to vector<16x16xf32>
    %952 = vector.broadcast %92 : f32 to vector<16x16xf32>
    %953 = arith.mulf %952, %951 : vector<16x16xf32>
    %954 = arith.addf %936, %953 : vector<16x16xf32>
    %955 = vector.extract_strided_slice %950 {offsets = [0, 1], sizes = [16, 16], strides = [1, 1]} : vector<16x22xf32> to vector<16x16xf32>
    %956 = vector.broadcast %93 : f32 to vector<16x16xf32>
    %957 = arith.mulf %956, %955 : vector<16x16xf32>
    %958 = arith.addf %940, %957 : vector<16x16xf32>
    %959 = vector.extract_strided_slice %950 {offsets = [0, 2], sizes = [16, 16], strides = [1, 1]} : vector<16x22xf32> to vector<16x16xf32>
    %960 = vector.broadcast %94 : f32 to vector<16x16xf32>
    %961 = arith.mulf %960, %959 : vector<16x16xf32>
    %962 = arith.addf %944, %961 : vector<16x16xf32>
    %963 = vector.extract_strided_slice %950 {offsets = [0, 3], sizes = [16, 16], strides = [1, 1]} : vector<16x22xf32> to vector<16x16xf32>
    %964 = vector.broadcast %95 : f32 to vector<16x16xf32>
    %965 = arith.mulf %964, %963 : vector<16x16xf32>
    %966 = arith.addf %948, %965 : vector<16x16xf32>
    %967 = vector.extract_strided_slice %950 {offsets = [0, 4], sizes = [16, 16], strides = [1, 1]} : vector<16x22xf32> to vector<16x16xf32>
    %968 = vector.broadcast %96 : f32 to vector<16x16xf32>
    %969 = arith.mulf %968, %967 : vector<16x16xf32>
    %970 = arith.addf %954, %969 : vector<16x16xf32>
    %971 = vector.extract_strided_slice %950 {offsets = [0, 5], sizes = [16, 16], strides = [1, 1]} : vector<16x22xf32> to vector<16x16xf32>
    %972 = vector.broadcast %97 : f32 to vector<16x16xf32>
    %973 = arith.mulf %972, %971 : vector<16x16xf32>
    %974 = arith.addf %958, %973 : vector<16x16xf32>
    %975 = vector.extract_strided_slice %950 {offsets = [0, 6], sizes = [16, 16], strides = [1, 1]} : vector<16x22xf32> to vector<16x16xf32>
    %976 = vector.broadcast %98 : f32 to vector<16x16xf32>
    %977 = arith.mulf %976, %975 : vector<16x16xf32>
    %978 = arith.addf %962, %977 : vector<16x16xf32>
    %c1_155 = arith.constant 1 : index
    %c6_156 = arith.constant 6 : index
    %c0_157 = arith.constant 0 : index
    %979 = vector.load %arg4[%c1_155, %c6_156, %c0_157] : memref<2x22x22xf32, #tpu.memory_space<vmem>>, vector<1x16x22xf32>
    %980 = vector.shape_cast %979 : vector<1x16x22xf32> to vector<16x22xf32>
    %981 = vector.extract_strided_slice %980 {offsets = [0, 0], sizes = [16, 16], strides = [1, 1]} : vector<16x22xf32> to vector<16x16xf32>
    %982 = vector.broadcast %99 : f32 to vector<16x16xf32>
    %983 = arith.mulf %982, %981 : vector<16x16xf32>
    %984 = arith.addf %966, %983 : vector<16x16xf32>
    %985 = vector.extract_strided_slice %980 {offsets = [0, 1], sizes = [16, 16], strides = [1, 1]} : vector<16x22xf32> to vector<16x16xf32>
    %986 = vector.broadcast %100 : f32 to vector<16x16xf32>
    %987 = arith.mulf %986, %985 : vector<16x16xf32>
    %988 = arith.addf %970, %987 : vector<16x16xf32>
    %989 = vector.extract_strided_slice %980 {offsets = [0, 2], sizes = [16, 16], strides = [1, 1]} : vector<16x22xf32> to vector<16x16xf32>
    %990 = vector.broadcast %101 : f32 to vector<16x16xf32>
    %991 = arith.mulf %990, %989 : vector<16x16xf32>
    %992 = arith.addf %974, %991 : vector<16x16xf32>
    %993 = vector.extract_strided_slice %980 {offsets = [0, 3], sizes = [16, 16], strides = [1, 1]} : vector<16x22xf32> to vector<16x16xf32>
    %994 = vector.broadcast %102 : f32 to vector<16x16xf32>
    %995 = arith.mulf %994, %993 : vector<16x16xf32>
    %996 = arith.addf %978, %995 : vector<16x16xf32>
    %997 = vector.extract_strided_slice %980 {offsets = [0, 4], sizes = [16, 16], strides = [1, 1]} : vector<16x22xf32> to vector<16x16xf32>
    %998 = vector.broadcast %103 : f32 to vector<16x16xf32>
    %999 = arith.mulf %998, %997 : vector<16x16xf32>
    %1000 = arith.addf %984, %999 : vector<16x16xf32>
    %1001 = vector.extract_strided_slice %980 {offsets = [0, 5], sizes = [16, 16], strides = [1, 1]} : vector<16x22xf32> to vector<16x16xf32>
    %1002 = vector.broadcast %104 : f32 to vector<16x16xf32>
    %1003 = arith.mulf %1002, %1001 : vector<16x16xf32>
    %1004 = arith.addf %988, %1003 : vector<16x16xf32>
    %1005 = vector.extract_strided_slice %980 {offsets = [0, 6], sizes = [16, 16], strides = [1, 1]} : vector<16x22xf32> to vector<16x16xf32>
    %1006 = vector.broadcast %105 : f32 to vector<16x16xf32>
    %1007 = arith.mulf %1006, %1005 : vector<16x16xf32>
    %1008 = arith.addf %992, %1007 : vector<16x16xf32>
    %1009 = arith.addf %1004, %1008 : vector<16x16xf32>
    %1010 = arith.addf %996, %1000 : vector<16x16xf32>
    %1011 = arith.addf %1009, %1010 : vector<16x16xf32>
    %1012 = arith.negf %1011 : vector<16x16xf32>
    %1013 = math.exp %1012 : vector<16x16xf32>
    %cst_158 = arith.constant 1.000000e+00 : f32
    %1014 = vector.broadcast %cst_158 : f32 to vector<16x16xf32>
    %1015 = arith.addf %1014, %1013 : vector<16x16xf32>
    %1016 = arith.divf %1014, %1015 : vector<16x16xf32>
    %c1_159 = arith.constant 1 : index
    %c0_160 = arith.constant 0 : index
    %c0_161 = arith.constant 0 : index
    %c0_162 = arith.constant 0 : index
    %1017 = vector.load %arg3[%c1_159, %c0_160, %c0_161, %c0_162] : memref<2x1x16x16xf32, #tpu.memory_space<vmem>>, vector<1x1x16x16xf32>
    %1018 = vector.shape_cast %1017 : vector<1x1x16x16xf32> to vector<16x16xf32>
    %1019 = vector.shape_cast %1016 : vector<16x16xf32> to vector<1x1x16x16xf32>
    tpu.vector_store %arg3[%c1_159, %c0_160, %c0_161, %c0_162], %1019 {strides = array<i32>} : memref<2x1x16x16xf32, #tpu.memory_space<vmem>>, vector<1x1x16x16xf32>,
    return
  }
  func.func @transform_0(%arg0: i32) -> i32 {
    %c0_i32 = arith.constant 0 : i32
    %c0_i32_0 = arith.constant 0 : i32
    return %c0_i32 : i32
  }
  func.func @transform_1(%arg0: i32) -> (i32, i32, i32, i32) {
    %c0_i32 = arith.constant 0 : i32
    %c0_i32_0 = arith.constant 0 : i32
    %c0_i32_1 = arith.constant 0 : i32
    %c0_i32_2 = arith.constant 0 : i32
    return %arg0, %c0_i32, %c0_i32_0, %c0_i32_1 : i32, i32, i32, i32
  }
  func.func @transform_2(%arg0: i32) -> (i32, i32, i32, i32) {
    %c0_i32 = arith.constant 0 : i32
    %c0_i32_0 = arith.constant 0 : i32
    %c0_i32_1 = arith.constant 0 : i32
    %c0_i32_2 = arith.constant 0 : i32
    return %arg0, %c0_i32, %c0_i32_0, %c0_i32_1 : i32, i32, i32, i32
  }
}

</mosaic_0001>

<bundles_post_ra>
// kernel: spatial_attention.1
= control target key start
LH: loop header
LB: loop body
LE: loop exit
PB: predicated region body
PF: predicated region fallthrough
CT: control target
= control target key end

     0   :  { %7 = vsyncpa [#allocation6], 0  ;;  %s4717_s0 = inlined_call_operand.vmem [shape: f32[98], index: 0, kind: input, shape index: {}]   ;;  %s4718_s1 = inlined_call_operand.hbm [shape: f32[2,4,16,16], index: 1, kind: input, shape index: {}]   ;;  %s4719_s2 = inlined_call_operand.hbm [shape: f32[2,1,16,16], index: 2, kind: output, shape index: {}]  }
   0x1   :  { %8 = vsyncpa [#allocation4], 0 }
   0x2   :  { %9 = vsyncpa [#allocation5], 0  ;;  %s16_s11 = sshll.u32 %s4717_s0, 4  ;;  %s17_s11 = int_to_ptr.vmem [resolvable:$true] %s16_s11 }
   0x3   :  { %s2745_s12 = scalar_lea.vmem %s17_s11, 16  ;;  %p2750_p1 = scmp.lt.s32.totalorder %s17_s11, %s17_s11 }
   0x4   :  { %p2746_p0 = scmp.ne.s32.totalorder %s17_s11, %s2745_s12  ;;  %p2751_p2 = scmp.lt.s32.totalorder %s2745_s12, %s2745_s12 }
   0x6   :  { %p2752_p3 = por %p2751_p2, %p2750_p1 }
   0x8   :  { %p2753_p4 = pnand %p2752_p3, %p2746_p0 }
   0xa   :  { %2756 = shalt.err (!%p2753_p4)
}
   0xb   :  { %s2807_s13 = smov [#allocation3]   ;;  %s2808_s14 = smov [#allocation7]  }
   0xc   :  { %19 = dma.vmem_to_smem %s17_s11, 16, %s2807_s13, [#allocation6]  }
   0xd   :  { %s25_s15 = sshll.u32 %s2808_s14, 4  ;;  %s2757_s18 = scalar_lea.hbm %s4718_s1, 2048  ;;  %s26_s15 = int_to_ptr.vmem [resolvable:$true] %s25_s15 }
   0xe   :  { %p2758_p5 = scmp.ne.s32.totalorder %s4718_s1, %s2757_s18  ;;  %p2761_p6 = scmp.lt.u32.totalorder %s2757_s18, %s4718_s1 }
  0x10   :  { %p2763_p7 = pnand %p2761_p6, %p2758_p5 }
  0x12   :  { %2766 = shalt.err (!%p2763_p7)
}
  0x13   :  { %s2767_s22 = scalar_lea.vmem %s26_s15, 2048  ;;  %p2772_p9 = scmp.lt.s32.totalorder %s26_s15, %s26_s15 }
  0x14   :  { %p2768_p8 = scmp.ne.s32.totalorder %s26_s15, %s2767_s22  ;;  %p2773_p10 = scmp.lt.s32.totalorder %s2767_s22, %s2767_s22 }
  0x16   :  { %p2774_p11 = por %p2773_p10, %p2772_p9 }
  0x18   :  { %p2775_p12 = pnand %p2774_p11, %p2768_p8 }
  0x1a   :  { %2778 = shalt.err (!%p2775_p12)
}
  0x1b   :  { %s2809_s23 = smov 128   ;;  %s2810_s24 = smov 8  }
  0x1c   :  { %31 = dma.hbm_to_vmem [thread:$0]  %s4718_s1, 2048, %s26_s15, [#allocation4], %s2809_s23, %s2809_s23, %s2810_s24  }
  0x1d   :  { %2801 = dma.done.wait [#allocation6], 16  }
  0x1e   :  { %2802 = vsyncadd [#allocation6], 4294967280 }
  0x1f   :  { %2803 = dma.done.wait [#allocation4], 2048  }
  0x20   :  { %2804 = vsyncadd [#allocation4], 4294965248 }
  0x21   :  { %38 = sfence }
  0x22   :  { %v158_v0 = vld [vmem:[#allocation7] sm:$0xff]  ;;  %v161_v1 = vld [vmem:[#allocation7 + $0x10] sm:$0xff]  ;;  %vm39_vm0 = vcmask 174080   ;;  %v159_v4 = vld [vmem:[#allocation7 + $0x8] sm:$0xff]  ;;  %vm44_vm1 = vcmask 23552   ;;  %vm52_vm2 = vcmask 179352  }
  0x23   :  { %v168_v2 = vld [vmem:[#allocation7 + $0x20] sm:$0xff]  ;;  %v163_v3 = vadd.f32 %v161_v1, %v158_v0  ;;  %v162_v5 = vld [vmem:[#allocation7 + $0x18] sm:$0xff]  ;;  %v175_v6 = vld [vmem:[#allocation7 + $0x30] sm:$0xff]  ;;  %v2811_v9 = vmov 0.0   ;;  %v165_v10 = vmax.f32 %v158_v0, %v161_v1  ;;  %vm47_vm3 = vcmask 21504   ;;  %s2812_s1 = smov 3  }
  0x24   :  { %v164_v7 = vadd.f32 %v162_v5, %v159_v4  ;;  %v169_v8 = vld [vmem:[#allocation7 + $0x28] sm:$0xff]  ;;  %40 = vst.msk [vmem:[#allocation2] sm:$0x7] %vm39_vm0, %v2811_v9  ;;  %41 = vst.msk [vmem:[#allocation2 + $0x18] sm:$0x7] %vm39_vm0, %v2811_v9  ;;  %vm55_vm4 = vcmask 177304   ;;  %v166_v13 = vmax.f32 %v159_v4, %v162_v5 }
  0x25   :  { %46 = vst.msk [vmem:[#allocation2 + $0x8] sm:$0xff] %vm44_vm1, %v2811_v9  ;;  %50 = vst.msk [vmem:[#allocation2 + $0x20] sm:$0xff] %vm44_vm1, %v2811_v9  ;;  %v170_v11 = vadd.f32 %v168_v2, %v163_v3  ;;  %v176_v12 = vld [vmem:[#allocation7 + $0x38] sm:$0xff]  ;;  %v172_v15 = vmax.f32 %v165_v10, %v168_v2  ;;  %vm191_vm5 = vcmask 154648   ;;  %s2612_s27 = sld [smem:[#allocation3 + $0x4]]  ;;  %s2613_s28 = sld [smem:[#allocation3 + $0x5]] }
  0x26   :  { %42 = vst.msk [vmem:[#allocation2 + $0x13] sm:$0x7] %vm39_vm0, %v2811_v9  ;;  %43 = vst.msk [vmem:[#allocation2 + $0x2b] sm:$0x7] %vm39_vm0, %v2811_v9  ;;  %v171_v14 = vadd.f32 %v169_v8, %v164_v7  ;;  %v173_v17 = vmax.f32 %v166_v13, %v169_v8  ;;  %s2614_s29 = sld [smem:[#allocation3 + $0x6]]  ;;  %s2615_s30 = sld [smem:[#allocation3 + $0x7]] }
  0x27   :  { %45 = vst.msk [vmem:[#allocation2] sm:$0xff] %vm44_vm1, %v2811_v9  ;;  %49 = vst.msk [vmem:[#allocation2 + $0x18] sm:$0xff] %vm44_vm1, %v2811_v9  ;;  %v177_v16 = vadd.f32 %v175_v6, %v170_v11  ;;  %v179_v19 = vmax.f32 %v172_v15, %v175_v6  ;;  %s2813_s3 = smov 124   ;;  %s2616_s4 = sld [smem:[#allocation3 + $0x8]]  ;;  %vm1421_vm6 = vcmask 130048  }
  0x28   :  { %54 = vst.msk [vmem:[#allocation2 + $0x8] sm:$0xff] %vm52_vm2, %v2811_v9  ;;  %58 = vst.msk [vmem:[#allocation2 + $0x20] sm:$0xff] %vm52_vm2, %v2811_v9  ;;  %v178_v18 = vadd.f32 %v176_v12, %v171_v14  ;;  %v180_v21 = vmax.f32 %v173_v17, %v176_v12  ;;  %s2617_s5 = sld [smem:[#allocation3 + $0x9]]  ;;  %s2618_s6 = sld [smem:[#allocation3 + $0xa]] }
  0x29   :  { %48 = vst.msk [vmem:[#allocation2 + $0x10] sm:$0x3f] %vm47_vm3, %v2811_v9  ;;  %51 = vst.msk [vmem:[#allocation2 + $0x28] sm:$0x3f] %vm47_vm3, %v2811_v9  ;;  %v181_v20 = vmul.f32 0.25, %v177_v16  ;;  %196 = vrot.lane.b32.xlu1 %v179_v19, %s2812_s1  ;;  %s2619_s7 = sld [smem:[#allocation3 + $0xb]] }
  0x2a   :  { %53 = vst.msk [vmem:[#allocation2] sm:$0xff] %vm52_vm2, %v2811_v9  ;;  %57 = vst.msk [vmem:[#allocation2 + $0x18] sm:$0xff] %vm52_vm2, %v2811_v9  ;;  %v182_v22 = vmul.f32 0.25, %v178_v18  ;;  %s2814_s8 = smov 127   ;;  %s2620_s9 = sld [smem:[#allocation3 + $0xc]] }
  0x2b   :  { %56 = vst.msk [vmem:[#allocation2 + $0x10] sm:$0x3f] %vm55_vm4, %v2811_v9  ;;  %59 = vst.msk [vmem:[#allocation2 + $0x28] sm:$0x3f] %vm55_vm4, %v2811_v9  ;;  %185 = vrot.lane.b32.xlu0 %v181_v20, %s2812_s1  ;;  %v2871_v27 = vstv %s2612_s27  ;;  %v2874_v30 = vstv %s2613_s28  ;;  %s2621_s10 = sld [smem:[#allocation3 + $0xd]]  ;;  %s2622_s11 = sld [smem:[#allocation3 + $0xe]] }
  0x2c   :  { %4924 = vst [vmem:[#allocation12_spill] sm:$0xff] %v2871_v27  ;;  %4925 = vst [vmem:[#allocation13_spill] sm:$0xff] %v2874_v30  ;;  %v2879_v34 = vstv %s2614_s29  ;;  %v2885_v38 = vstv %s2615_s30  ;;  %s2623_s12 = sld [smem:[#allocation3 + $0xf]]  ;;  %s2815_s13 = smov 123  }
  0x2d   :  { %198 = vrot.lane.b32.xlu1 %v180_v21, %s2812_s1  ;;  %4926 = vst [vmem:[#allocation14_spill] sm:$0xff] %v2879_v34  ;;  %4927 = vst [vmem:[#allocation15_spill] sm:$0xff] %v2885_v38  ;;  %v2891_v42 = vstv %s2616_s4  ;;  %s2624_s14 = sld [smem:[#allocation3 + $0x10]]  ;;  %s2625_s15 = sld [smem:[#allocation3 + $0x11]] }
  0x2e   :  { %4928 = vst [vmem:[#allocation16_spill] sm:$0xff] %v2891_v42  ;;  %v2897_v45 = vstv %s2617_s5  ;;  %v2903_v48 = vstv %s2618_s6  ;;  %s2816_s16 = smov 2   ;;  %s2626_s17 = sld [smem:[#allocation3 + $0x12]] }
  0x2f   :  { %187 = vrot.lane.b32.xlu0 %v182_v22, %s2812_s1  ;;  %4929 = vst [vmem:[#allocation17_spill] sm:$0xff] %v2897_v45  ;;  %4930 = vst [vmem:[#allocation18_spill] sm:$0xff] %v2903_v48  ;;  %v2909_v51 = vstv %s2619_s7  ;;  %s2627_s18 = sld [smem:[#allocation3 + $0x13]]  ;;  %s2817_s19 = smov 126  }
  0x30   :  { %4931 = vst [vmem:[#allocation19_spill] sm:$0xff] %v2909_v51  ;;  %v2915_v54 = vstv %s2620_s9  ;;  %s2628_s20 = sld [smem:[#allocation3 + $0x14]]  ;;  %s2629_s0 = sld [smem:[#allocation3 + $0x15]] }
  0x31   :  { %4932 = vst [vmem:[#allocation20_spill] sm:$0xff] %v2915_v54  ;;  %v2921_v57 = vstv %s2621_s10  ;;  %v2927_v61 = vstv %s2622_s11  ;;  %s2630_s21 = sld [smem:[#allocation3 + $0x16]]  ;;  %s2631_s22 = sld [smem:[#allocation3 + $0x17]] }
  0x32   :  { %4933 = vst [vmem:[#allocation21_spill] sm:$0xff] %v2921_v57  ;;  %4934 = vst [vmem:[#allocation22_spill] sm:$0xff] %v2927_v61  ;;  %v2933_v1 = vstv %s2623_s12  ;;  %s2818_s25 = smov 122   ;;  %s2632_s26 = sld [smem:[#allocation3 + $0x18]] }
  0x33   :  { %4935 = vst [vmem:[#allocation23_spill] sm:$0xff] %v2933_v1  ;;  %v2939_v4 = vstv %s2624_s14  ;;  %v2945_v7 = vstv %s2625_s15  ;;  %s2819_s27 = smov 1   ;;  %s2633_s28 = sld [smem:[#allocation3 + $0x19]] }
  0x34   :  { %4936 = vst [vmem:[#allocation24_spill] sm:$0xff] %v2939_v4  ;;  %4937 = vst [vmem:[#allocation25_spill] sm:$0xff] %v2945_v7  ;;  %v2951_v10 = vstv %s2626_s17  ;;  %s2634_s29 = sld [smem:[#allocation3 + $0x1a]]  ;;  %s2635_s30 = sld [smem:[#allocation3 + $0x1b]] }
  0x35   :  { %4938 = vst [vmem:[#allocation26_spill] sm:$0xff] %v2951_v10  ;;  %v2957_v13 = vstv %s2627_s18  ;;  %s2820_s4 = smov 125   ;;  %s2640_s5 = sld [smem:[#allocation3 + $0x20]] }
  0x36   :  { %4939 = vst [vmem:[#allocation27_spill] sm:$0xff] %v2957_v13  ;;  %v2963_v16 = vstv %s2628_s20  ;;  %v2969_v20 = vstv %s2629_s0  ;;  %s2641_s6 = sld [smem:[#allocation3 + $0x21]]  ;;  %s2642_s7 = sld [smem:[#allocation3 + $0x22]] }
  0x37   :  { %4940 = vst [vmem:[#allocation28_spill] sm:$0xff] %v2963_v16  ;;  %4941 = vst [vmem:[#allocation29_spill] sm:$0xff] %v2969_v20  ;;  %s2643_s9 = sld [smem:[#allocation3 + $0x23]]  ;;  %s2644_s10 = sld [smem:[#allocation3 + $0x24]] }
  0x38   :  { %s2645_s11 = sld [smem:[#allocation3 + $0x25]]  ;;  %s2646_s12 = sld [smem:[#allocation3 + $0x26]] }
  0x39   :  { %s2647_s14 = sld [smem:[#allocation3 + $0x27]]  ;;  %s2648_s15 = sld [smem:[#allocation3 + $0x28]] }
  0x3a   :  { %s2649_s17 = sld [smem:[#allocation3 + $0x29]]  ;;  %s2650_s18 = sld [smem:[#allocation3 + $0x2a]] }
  0x3b   :  { %s2651_s20 = sld [smem:[#allocation3 + $0x2b]]  ;;  %s2652_s0 = sld [smem:[#allocation3 + $0x2c]] }
  0x9b   :  { %v197_v23 = vpop.permute.xlu1 %196 }
  0x9c   :  { %203 = vst.msk [vmem:[#allocation2 + $0x1b] sm:$0xff] %vm191_vm5, %v197_v23 }
  0x9d   :  { %v186_v24 = vpop.permute.xlu0 %185 }
  0x9e   :  { %192 = vst.msk [vmem:[#allocation2 + $0x3] sm:$0xff] %vm191_vm5, %v186_v24  ;;  %v2975_v24 = vstv %s2630_s21  ;;  %s2653_s21 = sld [smem:[#allocation3 + $0x2d]] }
  0x9f   :  { %v199_v25 = vpop.permute.xlu1 %198  ;;  %4942 = vst [vmem:[#allocation30_spill] sm:$0xff] %v2975_v24 }
  0xa0   :  { %204 = vst.msk [vmem:[#allocation2 + $0x23] sm:$0xff] %vm191_vm5, %v199_v25 }
  0xa1   :  { %v188_v26 = vpop.permute.xlu0 %187 }
  0xa2   :  { %193 = vst.msk [vmem:[#allocation2 + $0xb] sm:$0xff] %vm191_vm5, %v188_v26 }
  0xa5   :  { %v205_v28 = vld [vmem:[#allocation2] sm:$0xff] }
  0xa6   :  { %v228_v29 = vmul.f32 %v2871_v27, %v205_v28  ;;  %v241_v33 = vmul.f32 %v2874_v30, %v205_v28  ;;  %v254_v36 = vmul.f32 %v2879_v34, %v205_v28  ;;  %v266_v37 = vld [vmem:[#allocation2 + $0x1] sm:$0xff]  ;;  %v2981_v28 = vstv %s2631_s22  ;;  %s2654_s22 = sld [smem:[#allocation3 + $0x2e]] }
  0xa7   :  { %v269_v40 = vmul.f32 %v2885_v38, %v266_v37  ;;  %v282_v44 = vmul.f32 %v2891_v42, %v266_v37  ;;  %v295_v47 = vmul.f32 %v2897_v45, %v266_v37  ;;  %v308_v50 = vmul.f32 %v2903_v48, %v266_v37  ;;  %v359_v60 = vld [vmem:[#allocation2 + $0x2] sm:$0xff]  ;;  %4943 = vst [vmem:[#allocation31_spill] sm:$0xff] %v2981_v28 }
  0xa8   :  { %232 = vrot.lane.b32.xlu0 %v228_v29, %s2813_s3  ;;  %v321_v53 = vmul.f32 %v2909_v51, %v266_v37  ;;  %v334_v56 = vmul.f32 %v2915_v54, %v266_v37  ;;  %v347_v59 = vmul.f32 %v2921_v57, %v266_v37  ;;  %v362_v63 = vmul.f32 %v2927_v61, %v359_v60  ;;  %v452_v19 = vld [vmem:[#allocation2 + $0x3] sm:$0xff] }
  0xa9   :  { %v206_v31 = vld [vmem:[#allocation2 + $0x8] sm:$0xff]  ;;  %v375_v3 = vmul.f32 %v2933_v1, %v359_v60  ;;  %v388_v6 = vmul.f32 %v2939_v4, %v359_v60  ;;  %v401_v9 = vmul.f32 %v2945_v7, %v359_v60  ;;  %v414_v12 = vmul.f32 %v2951_v10, %v359_v60 }
  0xaa   :  { %v229_v32 = vmul.f32 %v2871_v27, %v206_v31  ;;  %v242_v35 = vmul.f32 %v2874_v30, %v206_v31  ;;  %v255_v39 = vmul.f32 %v2879_v34, %v206_v31  ;;  %v267_v41 = vld [vmem:[#allocation2 + $0x9] sm:$0xff]  ;;  %v427_v15 = vmul.f32 %v2957_v13, %v359_v60 }
  0xab   :  { %v270_v43 = vmul.f32 %v2885_v38, %v267_v41  ;;  %v283_v46 = vmul.f32 %v2891_v42, %v267_v41  ;;  %v296_v49 = vmul.f32 %v2897_v45, %v267_v41  ;;  %v309_v52 = vmul.f32 %v2903_v48, %v267_v41  ;;  %v360_v0 = vld [vmem:[#allocation2 + $0xa] sm:$0xff]  ;;  %v1286_v38 = vld [vmem:[#allocation2 + $0x1e] sm:$0xff] }
  0xac   :  { %234 = vrot.lane.b32.xlu1 %v229_v32, %s2813_s3  ;;  %245 = vrot.lane.b32.xlu0 %v241_v33, %s2813_s3  ;;  %v322_v55 = vmul.f32 %v2909_v51, %v267_v41  ;;  %v335_v58 = vmul.f32 %v2915_v54, %v267_v41  ;;  %v348_v62 = vmul.f32 %v2921_v57, %v267_v41  ;;  %v453_v23 = vld [vmem:[#allocation2 + $0xb] sm:$0xff]  ;;  %v2987_v32 = vstv %s2632_s26  ;;  %s2655_s26 = sld [smem:[#allocation3 + $0x2f]]  ;;  %v1039_v57 = vld [vmem:[#allocation2 + $0x1b] sm:$0xff]  ;;  %v1040_v51 = vld [vmem:[#allocation2 + $0x23] sm:$0xff] }
  0xad   :  { %v363_v2 = vmul.f32 %v2927_v61, %v360_v0  ;;  %v376_v5 = vmul.f32 %v2933_v1, %v360_v0  ;;  %v389_v8 = vmul.f32 %v2939_v4, %v360_v0  ;;  %v402_v11 = vmul.f32 %v2945_v7, %v360_v0  ;;  %4944 = vst [vmem:[#allocation32_spill] sm:$0xff] %v2987_v32 }
  0xae   :  { %v415_v14 = vmul.f32 %v2951_v10, %v360_v0  ;;  %v428_v17 = vmul.f32 %v2957_v13, %v360_v0  ;;  %v440_v18 = vmul.f32 %v2963_v16, %v359_v60  ;;  %v441_v21 = vmul.f32 %v2963_v16, %v360_v0  ;;  %v606_v0 = vld [vmem:[#allocation2 + $0x5] sm:$0xff] }
  0xaf   :  { %v455_v22 = vmul.f32 %v2969_v20, %v452_v19  ;;  %v456_v25 = vmul.f32 %v2969_v20, %v453_v23  ;;  %v468_v26 = vmul.f32 %v2975_v24, %v452_v19  ;;  %v469_v29 = vmul.f32 %v2975_v24, %v453_v23 }
  0xb0   :  { %247 = vrot.lane.b32.xlu1 %v242_v35, %s2813_s3  ;;  %258 = vrot.lane.b32.xlu0 %v254_v36, %s2813_s3  ;;  %v481_v31 = vmul.f32 %v2981_v28, %v452_v19  ;;  %v482_v33 = vmul.f32 %v2981_v28, %v453_v23  ;;  %v494_v35 = vmul.f32 %v2987_v32, %v452_v19  ;;  %v2993_v36 = vstv %s2633_s28  ;;  %s2656_s28 = sld [smem:[#allocation3 + $0x30]] }
  0xb1   :  { %4945 = vst [vmem:[#allocation33_spill] sm:$0xff] %v2993_v36  ;;  %v495_v37 = vmul.f32 %v2987_v32, %v453_v23  ;;  %v508_v41 = vmul.f32 %v2993_v36, %v453_v23  ;;  %v3023_v60 = vstv %s2642_s7  ;;  %s2661_s7 = sld [smem:[#allocation3 + $0x35]] }
  0xb2   :  { %4950 = vst [vmem:[#allocation38_spill] sm:$0xff] %v3023_v60 }
  0xb4   :  { %260 = vrot.lane.b32.xlu1 %v255_v39, %s2813_s3  ;;  %273 = vrot.lane.b32.xlu0 %v269_v40, %s2812_s1  ;;  %v507_v39 = vmul.f32 %v2993_v36, %v452_v19  ;;  %v2999_v40 = vstv %s2634_s29  ;;  %s2657_s29 = sld [smem:[#allocation3 + $0x31]]  ;;  %v947_v36 = vld [vmem:[#allocation2 + $0x22] sm:$0xff] }
  0xb5   :  { %4946 = vst [vmem:[#allocation34_spill] sm:$0xff] %v2999_v40 }
  0xb8   :  { %275 = vrot.lane.b32.xlu1 %v270_v43, %s2812_s1  ;;  %286 = vrot.lane.b32.xlu0 %v282_v44, %s2814_s8  ;;  %v520_v43 = vmul.f32 %v2999_v40, %v452_v19  ;;  %v3005_v44 = vstv %s2635_s30  ;;  %s2658_s30 = sld [smem:[#allocation3 + $0x32]] }
  0xb9   :  { %4947 = vst [vmem:[#allocation35_spill] sm:$0xff] %v3005_v44 }
  0xbc   :  { %288 = vrot.lane.b32.xlu1 %v283_v46, %s2814_s8  ;;  %299 = vrot.lane.b32.xlu0 %v295_v47, %s2814_s8  ;;  %v521_v46 = vmul.f32 %v2999_v40, %v453_v23  ;;  %v533_v47 = vmul.f32 %v3005_v44, %v452_v19 }
  0xc0   :  { %301 = vrot.lane.b32.xlu1 %v296_v49, %s2814_s8  ;;  %312 = vrot.lane.b32.xlu0 %v308_v50, %s2814_s8  ;;  %v545_v49 = vld [vmem:[#allocation2 + $0x4] sm:$0xff]  ;;  %v3011_v50 = vstv %s2640_s5  ;;  %s2659_s5 = sld [smem:[#allocation3 + $0x33]] }
  0xc1   :  { %4948 = vst [vmem:[#allocation36_spill] sm:$0xff] %v3011_v50 }
  0xc4   :  { %314 = vrot.lane.b32.xlu1 %v309_v52, %s2814_s8  ;;  %325 = vrot.lane.b32.xlu0 %v321_v53, %s2814_s8  ;;  %v534_v52 = vmul.f32 %v3005_v44, %v453_v23  ;;  %v568_v53 = vmul.f32 %v3011_v50, %v545_v49  ;;  %v946_v44 = vld [vmem:[#allocation2 + $0x1a] sm:$0xff] }
  0xc8   :  { %327 = vrot.lane.b32.xlu1 %v322_v55, %s2814_s8  ;;  %338 = vrot.lane.b32.xlu0 %v334_v56, %s2815_s13  ;;  %v546_v55 = vld [vmem:[#allocation2 + $0xc] sm:$0xff]  ;;  %v3017_v56 = vstv %s2641_s6  ;;  %s2660_s6 = sld [smem:[#allocation3 + $0x34]] }
  0xc9   :  { %4949 = vst [vmem:[#allocation37_spill] sm:$0xff] %v3017_v56 }
  0xcc   :  { %340 = vrot.lane.b32.xlu1 %v335_v58, %s2815_s13  ;;  %351 = vrot.lane.b32.xlu0 %v347_v59, %s2815_s13  ;;  %v569_v58 = vmul.f32 %v3011_v50, %v546_v55  ;;  %v581_v59 = vmul.f32 %v3017_v56, %v545_v49 }
  0xd0   :  { %353 = vrot.lane.b32.xlu1 %v348_v62, %s2815_s13  ;;  %366 = vrot.lane.b32.xlu0 %v362_v63, %s2816_s16  ;;  %v582_v62 = vmul.f32 %v3017_v56, %v546_v55  ;;  %v594_v63 = vmul.f32 %v3023_v60, %v545_v49  ;;  %v3242_v56 = vld [vmem:[#allocation2 + $0x21] sm:$0xff] }
  0xd4   :  { %368 = vrot.lane.b32.xlu1 %v363_v2, %s2816_s16  ;;  %379 = vrot.lane.b32.xlu0 %v375_v3, %s2816_s16  ;;  %v3029_v2 = vstv %s2643_s9  ;;  %v595_v3 = vmul.f32 %v3023_v60, %v546_v55  ;;  %v699_v55 = vld [vmem:[#allocation2 + $0x6] sm:$0xff]  ;;  %s2662_s9 = sld [smem:[#allocation3 + $0x36]] }
  0xd5   :  { %4951 = vst [vmem:[#allocation39_spill] sm:$0xff] %v3029_v2 }
  0xd8   :  { %381 = vrot.lane.b32.xlu1 %v376_v5, %s2816_s16  ;;  %392 = vrot.lane.b32.xlu0 %v388_v6, %s2817_s19  ;;  %v609_v5 = vmul.f32 %v3029_v2, %v606_v0  ;;  %v607_v6 = vld [vmem:[#allocation2 + $0xd] sm:$0xff] }
  0xdc   :  { %394 = vrot.lane.b32.xlu1 %v389_v8, %s2817_s19  ;;  %405 = vrot.lane.b32.xlu0 %v401_v9, %s2817_s19  ;;  %v3035_v8 = vstv %s2644_s10  ;;  %v610_v9 = vmul.f32 %v3029_v2, %v607_v6  ;;  %s2663_s10 = sld [smem:[#allocation3 + $0x37]] }
  0xdd   :  { %4952 = vst [vmem:[#allocation40_spill] sm:$0xff] %v3035_v8 }
  0xe0   :  { %407 = vrot.lane.b32.xlu1 %v402_v11, %s2817_s19  ;;  %418 = vrot.lane.b32.xlu0 %v414_v12, %s2817_s19  ;;  %v622_v11 = vmul.f32 %v3035_v8, %v606_v0  ;;  %v3041_v12 = vstv %s2645_s11  ;;  %s2668_s11 = sld [smem:[#allocation3 + $0x3c]] }
  0xe1   :  { %4953 = vst [vmem:[#allocation41_spill] sm:$0xff] %v3041_v12 }
  0xe4   :  { %420 = vrot.lane.b32.xlu1 %v415_v14, %s2817_s19  ;;  %431 = vrot.lane.b32.xlu0 %v427_v15, %s2817_s19  ;;  %v623_v15 = vmul.f32 %v3035_v8, %v607_v6 }
  0xe8   :  { %433 = vrot.lane.b32.xlu1 %v428_v17, %s2817_s19  ;;  %444 = vrot.lane.b32.xlu0 %v440_v18, %s2818_s25  ;;  %v635_v17 = vmul.f32 %v3041_v12, %v606_v0  ;;  %v3049_v18 = vstv %s2646_s12  ;;  %s2669_s12 = sld [smem:[#allocation3 + $0x3d]] }
  0xe9   :  { %4955 = vst [vmem:[#allocation43_spill] sm:$0xff] %v3049_v18  ;;  %v648_v23 = vmul.f32 %v3049_v18, %v606_v0 }
  0xec   :  { %446 = vrot.lane.b32.xlu1 %v441_v21, %s2818_s25  ;;  %459 = vrot.lane.b32.xlu0 %v455_v22, %s2819_s27  ;;  %v636_v22 = vmul.f32 %v3041_v12, %v607_v6  ;;  %v3159_v12 = vstv %s2657_s29  ;;  %s2680_s29 = sld [smem:[#allocation3 + $0x48]] }
  0xed   :  { %4977 = vst [vmem:[#allocation65_spill] sm:$0xff] %v3159_v12 }
  0xf0   :  { %461 = vrot.lane.b32.xlu1 %v456_v25, %s2819_s27  ;;  %472 = vrot.lane.b32.xlu0 %v468_v26, %s2819_s27  ;;  %v3059_v25 = vstv %s2647_s14  ;;  %s2670_s14 = sld [smem:[#allocation3 + $0x3e]] }
  0xf1   :  { %4957 = vst [vmem:[#allocation45_spill] sm:$0xff] %v3059_v25 }
  0xf4   :  { %474 = vrot.lane.b32.xlu1 %v469_v29, %s2819_s27  ;;  %485 = vrot.lane.b32.xlu0 %v481_v31, %s2819_s27  ;;  %v649_v31 = vmul.f32 %v3049_v18, %v607_v6  ;;  %v792_v18 = vld [vmem:[#allocation2 + $0x18] sm:$0xff] }
  0xf5   :  { %v795_v60 = vmul.f32 %v3159_v12, %v792_v18 }
  0xf8   :  { %487 = vrot.lane.b32.xlu1 %v482_v33, %s2819_s27  ;;  %498 = vrot.lane.b32.xlu0 %v494_v35, %s2820_s4  ;;  %v661_v33 = vmul.f32 %v3059_v25, %v606_v0  ;;  %v3069_v35 = vstv %s2648_s15  ;;  %s2671_s15 = sld [smem:[#allocation3 + $0x3f]] }
  0xf9   :  { %4959 = vst [vmem:[#allocation47_spill] sm:$0xff] %v3069_v35 }
  0xfc   :  { %500 = vrot.lane.b32.xlu1 %v495_v37, %s2820_s4  ;;  %511 = vrot.lane.b32.xlu0 %v507_v39, %s2820_s4 }
  0xfe   :  { %v3268_v40 = vstv %s2671_s15  ;;  %s2690_s15 = sld [smem:[#allocation3 + $0x52]] }
  0xff   :  { %4997 = vst [vmem:[#allocation85_spill] sm:$0xff] %v3268_v40  ;;  %v950_v28 = vmul.f32 %v3268_v40, %v947_v36 }
 0x100   :  { %513 = vrot.lane.b32.xlu1 %v508_v41, %s2820_s4  ;;  %524 = vrot.lane.b32.xlu0 %v520_v43, %s2820_s4  ;;  %v662_v41 = vmul.f32 %v3059_v25, %v607_v6  ;;  %v674_v43 = vmul.f32 %v3069_v35, %v606_v0  ;;  %v3229_v25 = vld [vmem:[#allocation2 + $0x19] sm:$0xff] }
 0x104   :  { %526 = vrot.lane.b32.xlu1 %v521_v46, %s2820_s4  ;;  %537 = vrot.lane.b32.xlu0 %v533_v47, %s2820_s4  ;;  %v3079_v46 = vstv %s2649_s17  ;;  %s2672_s17 = sld [smem:[#allocation3 + $0x40]] }
 0x105   :  { %4961 = vst [vmem:[#allocation49_spill] sm:$0xff] %v3079_v46 }
 0x108   :  { %539 = vrot.lane.b32.xlu1 %v534_v52, %s2820_s4  ;;  %572 = vrot.lane.b32.xlu0 %v568_v53, %s2813_s3  ;;  %v675_v52 = vmul.f32 %v3069_v35, %v607_v6  ;;  %v687_v53 = vmul.f32 %v3079_v46, %v606_v0  ;;  %v3139_v35 = vstv %s2655_s26  ;;  %s2678_s26 = sld [smem:[#allocation3 + $0x46]] }
 0x109   :  { %4973 = vst [vmem:[#allocation61_spill] sm:$0xff] %v3139_v35  ;;  %v767_v8 = vmul.f32 %v3139_v35, %v699_v55 }
 0x10a   :  { %v3279_v32 = vstv %s2672_s17  ;;  %s2691_s17 = sld [smem:[#allocation3 + $0x53]] }
 0x10b   :  { %4999 = vst [vmem:[#allocation87_spill] sm:$0xff] %v3279_v32  ;;  %v962_v24 = vmul.f32 %v3279_v32, %v946_v44 }
 0x10c   :  { %574 = vrot.lane.b32.xlu1 %v569_v58, %s2813_s3  ;;  %585 = vrot.lane.b32.xlu0 %v581_v59, %s2813_s3  ;;  %v3089_v58 = vstv %s2650_s18  ;;  %s2673_s18 = sld [smem:[#allocation3 + $0x41]] }
 0x10d   :  { %4963 = vst [vmem:[#allocation51_spill] sm:$0xff] %v3089_v58 }
 0x10e   :  { %v3339_v54 = vstv %s2678_s26  ;;  %s2701_s26 = sld [smem:[#allocation3 + $0x5d]] }
 0x10f   :  { %5011 = vst [vmem:[#allocation99_spill] sm:$0xff] %v3339_v54 }
 0x110   :  { %587 = vrot.lane.b32.xlu1 %v582_v62, %s2813_s3  ;;  %598 = vrot.lane.b32.xlu0 %v594_v63, %s2813_s3  ;;  %v688_v63 = vmul.f32 %v3079_v46, %v607_v6 }
 0x112   :  { %v3289_v20 = vstv %s2673_s18  ;;  %s2696_s18 = sld [smem:[#allocation3 + $0x58]] }
 0x113   :  { %5001 = vst [vmem:[#allocation89_spill] sm:$0xff] %v3289_v20  ;;  %v975_v16 = vmul.f32 %v3289_v20, %v946_v44 }
 0x114   :  { %600 = vrot.lane.b32.xlu1 %v595_v3, %s2813_s3  ;;  %613 = vrot.lane.b32.xlu0 %v609_v5, %s2812_s1  ;;  %v702_v3 = vmul.f32 %v3089_v58, %v699_v55  ;;  %v700_v5 = vld [vmem:[#allocation2 + $0xe] sm:$0xff] }
 0x118   :  { %615 = vrot.lane.b32.xlu1 %v610_v9, %s2812_s1  ;;  %626 = vrot.lane.b32.xlu0 %v622_v11, %s2814_s8  ;;  %v3099_v9 = vstv %s2651_s20  ;;  %s2674_s20 = sld [smem:[#allocation3 + $0x42]] }
 0x119   :  { %4965 = vst [vmem:[#allocation53_spill] sm:$0xff] %v3099_v9 }
 0x11a   :  { %v3045_v14 = vpop.permute.xlu0 %232 }
 0x11b   :  { %4954 = vst [vmem:[#allocation42_spill] sm:$0xff] %v3045_v14 }
 0x11c   :  { %628 = vrot.lane.b32.xlu1 %v623_v15, %s2814_s8  ;;  %639 = vrot.lane.b32.xlu0 %v635_v17, %s2814_s8  ;;  %v703_v15 = vmul.f32 %v3089_v58, %v700_v5  ;;  %v715_v17 = vmul.f32 %v3099_v9, %v699_v55  ;;  %v3149_v58 = vstv %s2656_s28  ;;  %s2679_s28 = sld [smem:[#allocation3 + $0x47]] }
 0x11d   :  { %4975 = vst [vmem:[#allocation63_spill] sm:$0xff] %v3149_v58  ;;  %v780_v46 = vmul.f32 %v3149_v58, %v699_v55 }
 0x11e   :  { %v3053_v19 = vpop.permute.xlu1 %234  ;;  %v3055_v21 = vpop.permute.xlu0 %245  ;;  %v3299_v13 = vstv %s2674_s20  ;;  %s2697_s20 = sld [smem:[#allocation3 + $0x59]] }
 0x11f   :  { %4956 = vst [vmem:[#allocation44_spill] sm:$0xff] %v3053_v19  ;;  %5003 = vst [vmem:[#allocation91_spill] sm:$0xff] %v3299_v13  ;;  %v988_v10 = vmul.f32 %v3299_v13, %v946_v44 }
 0x120   :  { %641 = vrot.lane.b32.xlu1 %v636_v22, %s2814_s8  ;;  %652 = vrot.lane.b32.xlu0 %v648_v23, %s2814_s8  ;;  %v3109_v22 = vstv %s2652_s0  ;;  %s2675_s0 = sld [smem:[#allocation3 + $0x43]] }
 0x121   :  { %4967 = vst [vmem:[#allocation55_spill] sm:$0xff] %v3109_v22 }
 0x122   :  { %v3063_v26 = vpop.permute.xlu1 %247  ;;  %v3065_v29 = vpop.permute.xlu0 %258 }
 0x123   :  { %4958 = vst [vmem:[#allocation46_spill] sm:$0xff] %v3065_v29  ;;  %v3539_v29 = vstv %s2701_s26  ;;  %s2664_s26 = sld [smem:[#allocation3 + $0x38]] }
 0x124   :  { %654 = vrot.lane.b32.xlu1 %v649_v31, %s2814_s8  ;;  %665 = vrot.lane.b32.xlu0 %v661_v33, %s2814_s8  ;;  %v716_v31 = vmul.f32 %v3099_v9, %v700_v5  ;;  %v728_v33 = vmul.f32 %v3109_v22, %v699_v55  ;;  %5051 = vst [vmem:[#allocation139_spill] sm:$0xff] %v3539_v29 }
 0x126   :  { %v3073_v37 = vpop.permute.xlu1 %260  ;;  %v3075_v39 = vpop.permute.xlu0 %273 }
 0x127   :  { %4960 = vst [vmem:[#allocation48_spill] sm:$0xff] %v3073_v37  ;;  %v1287_v37 = vld [vmem:[#allocation2 + $0x26] sm:$0xff] }
 0x128   :  { %667 = vrot.lane.b32.xlu1 %v662_v41, %s2814_s8  ;;  %678 = vrot.lane.b32.xlu0 %v674_v43, %s2815_s13  ;;  %v3119_v41 = vstv %s2653_s21  ;;  %s2676_s21 = sld [smem:[#allocation3 + $0x44]] }
 0x129   :  { %4969 = vst [vmem:[#allocation57_spill] sm:$0xff] %v3119_v41 }
 0x12a   :  { %v3083_v47 = vpop.permute.xlu1 %275  ;;  %v3085_v49 = vpop.permute.xlu0 %286 }
 0x12b   :  { %4962 = vst [vmem:[#allocation50_spill] sm:$0xff] %v3085_v49  ;;  %v3199_v49 = vstv %s2661_s7  ;;  %s2684_s7 = sld [smem:[#allocation3 + $0x4c]] }
 0x12c   :  { %680 = vrot.lane.b32.xlu1 %v675_v52, %s2815_s13  ;;  %691 = vrot.lane.b32.xlu0 %v687_v53, %s2815_s13  ;;  %v729_v53 = vmul.f32 %v3109_v22, %v700_v5  ;;  %4985 = vst [vmem:[#allocation73_spill] sm:$0xff] %v3199_v49  ;;  %v847_v14 = vmul.f32 %v3199_v49, %v792_v18 }
 0x12e   :  { %v3093_v59 = vpop.permute.xlu1 %288  ;;  %v3095_v62 = vpop.permute.xlu0 %299  ;;  %v3319_v7 = vstv %s2676_s21  ;;  %s2699_s21 = sld [smem:[#allocation3 + $0x5b]] }
 0x12f   :  { %4964 = vst [vmem:[#allocation52_spill] sm:$0xff] %v3093_v59  ;;  %v3169_v59 = vstv %s2658_s30  ;;  %5007 = vst [vmem:[#allocation95_spill] sm:$0xff] %v3319_v7  ;;  %v1014_v4 = vmul.f32 %v3319_v7, %v946_v44  ;;  %s2681_s30 = sld [smem:[#allocation3 + $0x49]] }
 0x130   :  { %693 = vrot.lane.b32.xlu1 %v688_v63, %s2815_s13  ;;  %706 = vrot.lane.b32.xlu0 %v702_v3, %s2816_s16  ;;  %v741_v63 = vmul.f32 %v3119_v41, %v699_v55  ;;  %v3129_v3 = vstv %s2654_s22  ;;  %4979 = vst [vmem:[#allocation67_spill] sm:$0xff] %v3169_v59  ;;  %s2677_s22 = sld [smem:[#allocation3 + $0x45]] }
 0x131   :  { %4971 = vst [vmem:[#allocation59_spill] sm:$0xff] %v3129_v3 }
 0x132   :  { %v3103_v0 = vpop.permute.xlu1 %301  ;;  %v3105_v11 = vpop.permute.xlu0 %312 }
 0x133   :  { %4966 = vst [vmem:[#allocation54_spill] sm:$0xff] %v3105_v11 }
 0x134   :  { %708 = vrot.lane.b32.xlu1 %v703_v15, %s2816_s16  ;;  %719 = vrot.lane.b32.xlu0 %v715_v17, %s2816_s16 }
 0x136   :  { %v3113_v6 = vpop.permute.xlu1 %314  ;;  %v3115_v23 = vpop.permute.xlu0 %325  ;;  %v3329_v1 = vstv %s2677_s22  ;;  %s2700_s22 = sld [smem:[#allocation3 + $0x5c]] }
 0x137   :  { %4968 = vst [vmem:[#allocation56_spill] sm:$0xff] %v3113_v6  ;;  %5009 = vst [vmem:[#allocation97_spill] sm:$0xff] %v3329_v1  ;;  %v1027_v61 = vmul.f32 %v3329_v1, %v946_v44 }
 0x138   :  { %721 = vrot.lane.b32.xlu1 %v716_v31, %s2816_s16  ;;  %732 = vrot.lane.b32.xlu0 %v728_v33, %s2817_s19  ;;  %v742_v31 = vmul.f32 %v3119_v41, %v700_v5  ;;  %v754_v33 = vmul.f32 %v3129_v3, %v699_v55 }
 0x13a   :  { %v3123_v43 = vpop.permute.xlu1 %327  ;;  %v3125_v52 = vpop.permute.xlu0 %338 }
 0x13b   :  { %4970 = vst [vmem:[#allocation58_spill] sm:$0xff] %v3125_v52  ;;  %v3179_v52 = vstv %s2659_s5  ;;  %s2682_s5 = sld [smem:[#allocation3 + $0x4a]] }
 0x13c   :  { %734 = vrot.lane.b32.xlu1 %v729_v53, %s2817_s19  ;;  %745 = vrot.lane.b32.xlu0 %v741_v63, %s2817_s19  ;;  %v755_v63 = vmul.f32 %v3129_v3, %v700_v5  ;;  %4981 = vst [vmem:[#allocation69_spill] sm:$0xff] %v3179_v52  ;;  %v3529_v11 = vstv %s2700_s22  ;;  %s2636_s22 = sld [smem:[#allocation3 + $0x1c]] }
 0x13d   :  { %5049 = vst [vmem:[#allocation137_spill] sm:$0xff] %v3529_v11 }
 0x13e   :  { %v3133_v15 = vpop.permute.xlu1 %340  ;;  %v3135_v17 = vpop.permute.xlu0 %351 }
 0x13f   :  { %4972 = vst [vmem:[#allocation60_spill] sm:$0xff] %v3133_v15  ;;  %v793_v15 = vld [vmem:[#allocation2 + $0x20] sm:$0xff] }
 0x140   :  { %747 = vrot.lane.b32.xlu1 %v742_v31, %s2817_s19  ;;  %758 = vrot.lane.b32.xlu0 %v754_v33, %s2817_s19  ;;  %v768_v33 = vmul.f32 %v3139_v35, %v700_v5  ;;  %v3209_v35 = vstv %s2662_s9  ;;  %s2685_s9 = sld [smem:[#allocation3 + $0x4d]] }
 0x141   :  { %4987 = vst [vmem:[#allocation75_spill] sm:$0xff] %v3209_v35  ;;  %v860_v9 = vmul.f32 %v3209_v35, %v792_v18  ;;  %v3379_v48 = vstv %s2682_s5  ;;  %s2705_s5 = sld [smem:[#allocation3 + $0x61]] }
 0x142   :  { %v3143_v22 = vpop.permute.xlu1 %353  ;;  %v3145_v53 = vpop.permute.xlu0 %366  ;;  %5019 = vst [vmem:[#allocation107_spill] sm:$0xff] %v3379_v48 }
 0x143   :  { %4974 = vst [vmem:[#allocation62_spill] sm:$0xff] %v3145_v53  ;;  %v3518_v53 = vstv %s2699_s21  ;;  %s60_s21 = sld [smem:[#allocation3]] }
 0x144   :  { %760 = vrot.lane.b32.xlu1 %v755_v63, %s2817_s19  ;;  %771 = vrot.lane.b32.xlu0 %v767_v8, %s2817_s19  ;;  %v781_v8 = vmul.f32 %v3149_v58, %v700_v5  ;;  %v821_v58 = vmul.f32 %v3179_v52, %v792_v18  ;;  %5047 = vst [vmem:[#allocation135_spill] sm:$0xff] %v3518_v53 }
 0x145   :  { %v1290_v34 = vmul.f32 %v3518_v53, %v1287_v37 }
 0x146   :  { %v3153_v41 = vpop.permute.xlu1 %368  ;;  %v3155_v31 = vpop.permute.xlu0 %379 }
 0x147   :  { %4976 = vst [vmem:[#allocation64_spill] sm:$0xff] %v3153_v41 }
 0x148   :  { %773 = vrot.lane.b32.xlu1 %v768_v33, %s2817_s19  ;;  %784 = vrot.lane.b32.xlu0 %v780_v46, %s2818_s25  ;;  %v796_v46 = vmul.f32 %v3159_v12, %v793_v15 }
 0x14a   :  { %v3163_v3 = vpop.permute.xlu1 %381  ;;  %v3165_v63 = vpop.permute.xlu0 %392 }
 0x14b   :  { %4978 = vst [vmem:[#allocation66_spill] sm:$0xff] %v3165_v63  ;;  %v808_v63 = vmul.f32 %v3169_v59, %v792_v18 }
 0x14c   :  { %786 = vrot.lane.b32.xlu1 %v781_v8, %s2818_s25  ;;  %799 = vrot.lane.b32.xlu0 %v795_v60, %s2819_s27  ;;  %v809_v60 = vmul.f32 %v3169_v59, %v793_v15 }
 0x14e   :  { %v3173_v55 = vpop.permute.xlu1 %394  ;;  %v3175_v33 = vpop.permute.xlu0 %405 }
 0x14f   :  { %4980 = vst [vmem:[#allocation68_spill] sm:$0xff] %v3173_v55  ;;  %v3189_v55 = vstv %s2660_s6  ;;  %s2683_s6 = sld [smem:[#allocation3 + $0x4b]] }
 0x150   :  { %801 = vrot.lane.b32.xlu1 %v796_v46, %s2819_s27  ;;  %812 = vrot.lane.b32.xlu0 %v808_v63, %s2819_s27  ;;  %4983 = vst [vmem:[#allocation71_spill] sm:$0xff] %v3189_v55  ;;  %v822_v63 = vmul.f32 %v3179_v52, %v793_v15  ;;  %v834_v19 = vmul.f32 %v3189_v55, %v792_v18 }
 0x152   :  { %v3183_v5 = vpop.permute.xlu1 %407  ;;  %v3185_v8 = vpop.permute.xlu0 %418 }
 0x153   :  { %4982 = vst [vmem:[#allocation70_spill] sm:$0xff] %v3185_v8  ;;  %v3479_v8 = vld [vmem:[#allocation2 + $0x1d] sm:$0xff] }
 0x154   :  { %814 = vrot.lane.b32.xlu1 %v809_v60, %s2819_s27  ;;  %825 = vrot.lane.b32.xlu0 %v821_v58, %s2819_s27  ;;  %v835_v58 = vmul.f32 %v3189_v55, %v793_v15  ;;  %5039 = vst [vmem:[#allocation127_spill] sm:$0xff] %v3479_v8 }
 0x156   :  { %v3193_v12 = vpop.permute.xlu1 %420  ;;  %v3195_v46 = vpop.permute.xlu0 %431 }
 0x157   :  { %4984 = vst [vmem:[#allocation72_spill] sm:$0xff] %v3193_v12 }
 0x158   :  { %827 = vrot.lane.b32.xlu1 %v822_v63, %s2819_s27  ;;  %838 = vrot.lane.b32.xlu0 %v834_v19, %s2820_s4  ;;  %v848_v19 = vmul.f32 %v3199_v49, %v793_v15  ;;  %v3231_v49 = vstv %s2668_s11  ;;  %s2687_s11 = sld [smem:[#allocation3 + $0x4f]] }
 0x159   :  { %4991 = vst [vmem:[#allocation79_spill] sm:$0xff] %v3231_v49  ;;  %v909_v50 = vmul.f32 %v3231_v49, %v3242_v56 }
 0x15a   :  { %v3203_v59 = vpop.permute.xlu1 %433  ;;  %v3205_v60 = vpop.permute.xlu0 %444 }
 0x15b   :  { %4986 = vst [vmem:[#allocation74_spill] sm:$0xff] %v3205_v60  ;;  %v3219_v60 = vstv %s2663_s10  ;;  %s2686_s10 = sld [smem:[#allocation3 + $0x4e]] }
 0x15c   :  { %840 = vrot.lane.b32.xlu1 %v835_v58, %s2820_s4  ;;  %851 = vrot.lane.b32.xlu0 %v847_v14, %s2820_s4  ;;  %4989 = vst [vmem:[#allocation77_spill] sm:$0xff] %v3219_v60  ;;  %v861_v14 = vmul.f32 %v3209_v35, %v793_v15  ;;  %v874_v2 = vmul.f32 %v3219_v60, %v793_v15 }
 0x15d   :  { %v908_v35 = vmul.f32 %v3231_v49, %v3229_v25 }
 0x15e   :  { %v3213_v52 = vpop.permute.xlu1 %446  ;;  %v3215_v63 = vpop.permute.xlu0 %459  ;;  %v3429_v12 = vstv %s2687_s11  ;;  %s2665_s11 = sld [smem:[#allocation3 + $0x39]] }
 0x15f   :  { %4988 = vst [vmem:[#allocation76_spill] sm:$0xff] %v3213_v52  ;;  %v873_v52 = vmul.f32 %v3219_v60, %v792_v18  ;;  %v3244_v18 = vstv %s2669_s12  ;;  %v3256_v60 = vstv %s2670_s14  ;;  %s2688_s12 = sld [smem:[#allocation3 + $0x50]]  ;;  %5029 = vst [vmem:[#allocation117_spill] sm:$0xff] %v3429_v12  ;;  %s2689_s14 = sld [smem:[#allocation3 + $0x51]] }
 0x160   :  { %853 = vrot.lane.b32.xlu1 %v848_v19, %s2820_s4  ;;  %864 = vrot.lane.b32.xlu0 %v860_v9, %s2820_s4  ;;  %4993 = vst [vmem:[#allocation81_spill] sm:$0xff] %v3244_v18  ;;  %v921_v15 = vmul.f32 %v3244_v18, %v3229_v25  ;;  %4995 = vst [vmem:[#allocation83_spill] sm:$0xff] %v3256_v60  ;;  %v934_v49 = vmul.f32 %v3256_v60, %v3229_v25 }
 0x162   :  { %v3223_v55 = vpop.permute.xlu1 %461  ;;  %v3225_v58 = vpop.permute.xlu0 %472 }
 0x163   :  { %4990 = vst [vmem:[#allocation78_spill] sm:$0xff] %v3225_v58  ;;  %v3459_v58 = vstv %s2690_s15  ;;  %s2695_s15 = sld [smem:[#allocation3 + $0x57]] }
 0x164   :  { %866 = vrot.lane.b32.xlu1 %v861_v14, %s2820_s4  ;;  %877 = vrot.lane.b32.xlu0 %v873_v52, %s2820_s4  ;;  %5035 = vst [vmem:[#allocation123_spill] sm:$0xff] %v3459_v58 }
 0x166   :  { %v3235_v19 = vpop.permute.xlu1 %474  ;;  %v3237_v9 = vpop.permute.xlu0 %485 }
 0x167   :  { %4992 = vst [vmem:[#allocation80_spill] sm:$0xff] %v3235_v19  ;;  %v3409_v19 = vstv %s2685_s9  ;;  %s2637_s9 = sld [smem:[#allocation3 + $0x1d]] }
 0x168   :  { %879 = vrot.lane.b32.xlu1 %v874_v2, %s2820_s4  ;;  %912 = vrot.lane.b32.xlu0 %v908_v35, %s2813_s3  ;;  %5025 = vst [vmem:[#allocation113_spill] sm:$0xff] %v3409_v19 }
 0x16a   :  { %v3248_v14 = vpop.permute.xlu1 %487  ;;  %v3250_v52 = vpop.permute.xlu0 %498 }
 0x16b   :  { %4994 = vst [vmem:[#allocation82_spill] sm:$0xff] %v3250_v52  ;;  %v922_v52 = vmul.f32 %v3244_v18, %v3242_v56  ;;  %v949_v18 = vmul.f32 %v3268_v40, %v946_v44 }
 0x16c   :  { %914 = vrot.lane.b32.xlu1 %v909_v50, %s2813_s3  ;;  %925 = vrot.lane.b32.xlu0 %v921_v15, %s2813_s3 }
 0x16e   :  { %v3260_v2 = vpop.permute.xlu1 %500  ;;  %v3262_v35 = vpop.permute.xlu0 %511 }
 0x16f   :  { %4996 = vst [vmem:[#allocation84_spill] sm:$0xff] %v3260_v2  ;;  %v935_v2 = vmul.f32 %v3256_v60, %v3242_v56 }
 0x170   :  { %927 = vrot.lane.b32.xlu1 %v922_v52, %s2813_s3  ;;  %938 = vrot.lane.b32.xlu0 %v934_v49, %s2813_s3 }
 0x172   :  { %v3272_v50 = vpop.permute.xlu1 %513  ;;  %v3274_v15 = vpop.permute.xlu0 %524 }
 0x173   :  { %4998 = vst [vmem:[#allocation86_spill] sm:$0xff] %v3274_v15  ;;  %v1133_v15 = vld [vmem:[#allocation2 + $0x24] sm:$0xff] }
 0x174   :  { %940 = vrot.lane.b32.xlu1 %v935_v2, %s2813_s3  ;;  %953 = vrot.lane.b32.xlu0 %v949_v18, %s2812_s1  ;;  %v963_v18 = vmul.f32 %v3279_v32, %v947_v36 }
 0x176   :  { %v3283_v52 = vpop.permute.xlu1 %526  ;;  %v3285_v49 = vpop.permute.xlu0 %537 }
 0x177   :  { %5000 = vst [vmem:[#allocation88_spill] sm:$0xff] %v3283_v52  ;;  %v3399_v52 = vstv %s2684_s7  ;;  %s2611_s7 = sld [smem:[#allocation3 + $0x3]] }
 0x178   :  { %955 = vrot.lane.b32.xlu1 %v950_v28, %s2812_s1  ;;  %966 = vrot.lane.b32.xlu0 %v962_v24, %s2814_s8  ;;  %v976_v24 = vmul.f32 %v3289_v20, %v947_v36  ;;  %5023 = vst [vmem:[#allocation111_spill] sm:$0xff] %v3399_v52  ;;  %v1120_v45 = vmul.f32 %v3399_v52, %v1039_v57 }
 0x17a   :  { %v3293_v60 = vpop.permute.xlu1 %539  ;;  %v3295_v2 = vpop.permute.xlu0 %572 }
 0x17b   :  { %5002 = vst [vmem:[#allocation90_spill] sm:$0xff] %v3295_v2  ;;  %v3309_v2 = vstv %s2675_s0  ;;  %s2698_s0 = sld [smem:[#allocation3 + $0x5a]] }
 0x17c   :  { %968 = vrot.lane.b32.xlu1 %v963_v18, %s2814_s8  ;;  %979 = vrot.lane.b32.xlu0 %v975_v16, %s2814_s8  ;;  %5005 = vst [vmem:[#allocation93_spill] sm:$0xff] %v3309_v2  ;;  %v989_v16 = vmul.f32 %v3299_v13, %v947_v36 }
 0x17e   :  { %v3303_v40 = vpop.permute.xlu1 %574  ;;  %v3305_v28 = vpop.permute.xlu0 %585 }
 0x17f   :  { %5004 = vst [vmem:[#allocation92_spill] sm:$0xff] %v3303_v40  ;;  %v1001_v40 = vmul.f32 %v3309_v2, %v946_v44 }
 0x180   :  { %981 = vrot.lane.b32.xlu1 %v976_v24, %s2814_s8  ;;  %992 = vrot.lane.b32.xlu0 %v988_v10, %s2814_s8  ;;  %v1002_v10 = vmul.f32 %v3309_v2, %v947_v36 }
 0x182   :  { %v3313_v32 = vpop.permute.xlu1 %587  ;;  %v3315_v18 = vpop.permute.xlu0 %598 }
 0x183   :  { %5006 = vst [vmem:[#allocation94_spill] sm:$0xff] %v3315_v18  ;;  %v1094_v18 = vmul.f32 %v3379_v48, %v1039_v57 }
 0x184   :  { %994 = vrot.lane.b32.xlu1 %v989_v16, %s2814_s8  ;;  %1005 = vrot.lane.b32.xlu0 %v1001_v40, %s2814_s8  ;;  %v1015_v40 = vmul.f32 %v3319_v7, %v947_v36  ;;  %v3349_v7 = vstv %s2679_s28  ;;  %s2702_s28 = sld [smem:[#allocation3 + $0x5e]] }
 0x185   :  { %5013 = vst [vmem:[#allocation101_spill] sm:$0xff] %v3349_v7 }
 0x186   :  { %v3323_v20 = vpop.permute.xlu1 %600  ;;  %v3325_v24 = vpop.permute.xlu0 %613 }
 0x187   :  { %5008 = vst [vmem:[#allocation96_spill] sm:$0xff] %v3323_v20  ;;  %v3359_v20 = vstv %s2680_s29  ;;  %s2703_s29 = sld [smem:[#allocation3 + $0x5f]] }
 0x188   :  { %1007 = vrot.lane.b32.xlu1 %v1002_v10, %s2814_s8  ;;  %1018 = vrot.lane.b32.xlu0 %v1014_v4, %s2815_s13  ;;  %v1028_v4 = vmul.f32 %v3329_v1, %v947_v36  ;;  %5015 = vst [vmem:[#allocation103_spill] sm:$0xff] %v3359_v20  ;;  %v1068_v1 = vmul.f32 %v3359_v20, %v1039_v57 }
 0x18a   :  { %v3333_v13 = vpop.permute.xlu1 %615  ;;  %v3335_v16 = vpop.permute.xlu0 %626  ;;  %v3549_v30 = vstv %s2702_s28  ;;  %s2692_s28 = sld [smem:[#allocation3 + $0x54]] }
 0x18b   :  { %5010 = vst [vmem:[#allocation98_spill] sm:$0xff] %v3335_v16  ;;  %v1042_v16 = vmul.f32 %v3339_v54, %v1039_v57  ;;  %5054 = vst [vmem:[#allocation142_spill] sm:$0xff] %v3549_v30  ;;  %v1328_v27 = vmul.f32 %v3549_v30, %v1286_v38 }
 0x18c   :  { %1020 = vrot.lane.b32.xlu1 %v1015_v40, %s2815_s13  ;;  %1031 = vrot.lane.b32.xlu0 %v1027_v61, %s2815_s13  ;;  %v1043_v61 = vmul.f32 %v3339_v54, %v1040_v51 }
 0x18e   :  { %v3343_v2 = vpop.permute.xlu1 %628  ;;  %v3345_v10 = vpop.permute.xlu0 %639 }
 0x18f   :  { %5012 = vst [vmem:[#allocation100_spill] sm:$0xff] %v3343_v2  ;;  %v1055_v2 = vmul.f32 %v3349_v7, %v1039_v57 }
 0x190   :  { %1033 = vrot.lane.b32.xlu1 %v1028_v4, %s2815_s13  ;;  %1046 = vrot.lane.b32.xlu0 %v1042_v16, %s2816_s16  ;;  %v1056_v16 = vmul.f32 %v3349_v7, %v1040_v51 }
 0x192   :  { %v3353_v44 = vpop.permute.xlu1 %641  ;;  %v3355_v40 = vpop.permute.xlu0 %652 }
 0x193   :  { %5014 = vst [vmem:[#allocation102_spill] sm:$0xff] %v3355_v40  ;;  %v3369_v40 = vstv %s2681_s30  ;;  %s2704_s30 = sld [smem:[#allocation3 + $0x60]] }
 0x194   :  { %1048 = vrot.lane.b32.xlu1 %v1043_v61, %s2816_s16  ;;  %1059 = vrot.lane.b32.xlu0 %v1055_v2, %s2816_s16  ;;  %5017 = vst [vmem:[#allocation105_spill] sm:$0xff] %v3369_v40  ;;  %v1069_v2 = vmul.f32 %v3359_v20, %v1040_v51 }
 0x196   :  { %v3363_v36 = vpop.permute.xlu1 %654  ;;  %v3365_v4 = vpop.permute.xlu0 %665 }
 0x197   :  { %5016 = vst [vmem:[#allocation104_spill] sm:$0xff] %v3363_v36  ;;  %v1081_v36 = vmul.f32 %v3369_v40, %v1039_v57 }
 0x198   :  { %1061 = vrot.lane.b32.xlu1 %v1056_v16, %s2816_s16  ;;  %1072 = vrot.lane.b32.xlu0 %v1068_v1, %s2817_s19  ;;  %v1082_v1 = vmul.f32 %v3369_v40, %v1040_v51 }
 0x19a   :  { %v3373_v54 = vpop.permute.xlu1 %667  ;;  %v3375_v61 = vpop.permute.xlu0 %678 }
 0x19b   :  { %5018 = vst [vmem:[#allocation106_spill] sm:$0xff] %v3375_v61  ;;  %v3389_v61 = vstv %s2683_s6  ;;  %s2609_s6 = sld [smem:[#allocation3 + $0x1]] }
 0x19c   :  { %1074 = vrot.lane.b32.xlu1 %v1069_v2, %s2817_s19  ;;  %1085 = vrot.lane.b32.xlu0 %v1081_v36, %s2817_s19  ;;  %5021 = vst [vmem:[#allocation109_spill] sm:$0xff] %v3389_v61  ;;  %v1095_v36 = vmul.f32 %v3379_v48, %v1040_v51 }
 0x19e   :  { %v3383_v7 = vpop.permute.xlu1 %680  ;;  %v3385_v16 = vpop.permute.xlu0 %691 }
 0x19f   :  { %5020 = vst [vmem:[#allocation108_spill] sm:$0xff] %v3383_v7  ;;  %v1107_v7 = vmul.f32 %v3389_v61, %v1039_v57 }
 0x1a0   :  { %1087 = vrot.lane.b32.xlu1 %v1082_v1, %s2817_s19  ;;  %1098 = vrot.lane.b32.xlu0 %v1094_v18, %s2817_s19  ;;  %v1108_v18 = vmul.f32 %v3389_v61, %v1040_v51  ;;  %v3419_v61 = vstv %s2686_s10  ;;  %s2639_s10 = sld [smem:[#allocation3 + $0x1f]] }
 0x1a1   :  { %5027 = vst [vmem:[#allocation115_spill] sm:$0xff] %v3419_v61 }
 0x1a2   :  { %v3393_v20 = vpop.permute.xlu1 %693  ;;  %v3395_v2 = vpop.permute.xlu0 %706 }
 0x1a3   :  { %5022 = vst [vmem:[#allocation110_spill] sm:$0xff] %v3395_v2  ;;  %v1132_v2 = vld [vmem:[#allocation2 + $0x1c] sm:$0xff] }
 0x1a4   :  { %1100 = vrot.lane.b32.xlu1 %v1095_v36, %s2817_s19  ;;  %1111 = vrot.lane.b32.xlu0 %v1107_v7, %s2817_s19  ;;  %v1121_v7 = vmul.f32 %v3399_v52, %v1040_v51  ;;  %v1161_v52 = vmul.f32 %v3429_v12, %v1132_v2  ;;  %v1200_v41 = vmul.f32 %v3459_v58, %v1132_v2 }
 0x1a6   :  { %v3403_v40 = vpop.permute.xlu1 %708  ;;  %v3405_v1 = vpop.permute.xlu0 %719 }
 0x1a7   :  { %5024 = vst [vmem:[#allocation112_spill] sm:$0xff] %v3403_v40  ;;  %v1135_v40 = vmul.f32 %v3409_v19, %v1132_v2 }
 0x1a8   :  { %1113 = vrot.lane.b32.xlu1 %v1108_v18, %s2817_s19  ;;  %1124 = vrot.lane.b32.xlu0 %v1120_v45, %s2818_s25  ;;  %v1136_v45 = vmul.f32 %v3409_v19, %v1133_v15 }
 0x1aa   :  { %v3413_v48 = vpop.permute.xlu1 %721  ;;  %v3415_v36 = vpop.permute.xlu0 %732 }
 0x1ab   :  { %5026 = vst [vmem:[#allocation114_spill] sm:$0xff] %v3415_v36  ;;  %v1148_v36 = vmul.f32 %v3419_v61, %v1132_v2 }
 0x1ac   :  { %1126 = vrot.lane.b32.xlu1 %v1121_v7, %s2818_s25  ;;  %1139 = vrot.lane.b32.xlu0 %v1135_v40, %s2819_s27  ;;  %v1149_v40 = vmul.f32 %v3419_v61, %v1133_v15 }
 0x1ae   :  { %v3423_v57 = vpop.permute.xlu1 %734  ;;  %v3425_v18 = vpop.permute.xlu0 %745 }
 0x1af   :  { %5028 = vst [vmem:[#allocation116_spill] sm:$0xff] %v3423_v57  ;;  %v3439_v57 = vstv %s2688_s12  ;;  %s2667_s12 = sld [smem:[#allocation3 + $0x3b]] }
 0x1b0   :  { %1141 = vrot.lane.b32.xlu1 %v1136_v45, %s2819_s27  ;;  %1152 = vrot.lane.b32.xlu0 %v1148_v36, %s2819_s27  ;;  %5031 = vst [vmem:[#allocation119_spill] sm:$0xff] %v3439_v57  ;;  %v1162_v36 = vmul.f32 %v3429_v12, %v1133_v15  ;;  %v1174_v42 = vmul.f32 %v3439_v57, %v1132_v2 }
 0x1b2   :  { %v3433_v51 = vpop.permute.xlu1 %747  ;;  %v3435_v7 = vpop.permute.xlu0 %758 }
 0x1b3   :  { %5030 = vst [vmem:[#allocation118_spill] sm:$0xff] %v3435_v7  ;;  %v3449_v7 = vstv %s2689_s14  ;;  %s2693_s14 = sld [smem:[#allocation3 + $0x55]] }
 0x1b4   :  { %1154 = vrot.lane.b32.xlu1 %v1149_v40, %s2819_s27  ;;  %1165 = vrot.lane.b32.xlu0 %v1161_v52, %s2819_s27  ;;  %5033 = vst [vmem:[#allocation121_spill] sm:$0xff] %v3449_v7  ;;  %v1175_v52 = vmul.f32 %v3439_v57, %v1133_v15 }
 0x1b6   :  { %v3443_v19 = vpop.permute.xlu1 %760  ;;  %v3445_v45 = vpop.permute.xlu0 %771 }
 0x1b7   :  { %5032 = vst [vmem:[#allocation120_spill] sm:$0xff] %v3443_v19  ;;  %v1187_v19 = vmul.f32 %v3449_v7, %v1132_v2 }
 0x1b8   :  { %1167 = vrot.lane.b32.xlu1 %v1162_v36, %s2819_s27  ;;  %1178 = vrot.lane.b32.xlu0 %v1174_v42, %s2820_s4  ;;  %v1188_v42 = vmul.f32 %v3449_v7, %v1133_v15  ;;  %v3481_v7 = vstv %s2696_s18  ;;  %s2638_s18 = sld [smem:[#allocation3 + $0x1e]] }
 0x1b9   :  { %5040 = vst [vmem:[#allocation128_spill] sm:$0xff] %v3481_v7 }
 0x1ba   :  { %v3453_v61 = vpop.permute.xlu1 %773  ;;  %v3455_v40 = vpop.permute.xlu0 %784 }
 0x1bb   :  { %5034 = vst [vmem:[#allocation122_spill] sm:$0xff] %v3455_v40  ;;  %v3469_v40 = vstv %s2691_s17  ;;  %s2610_s17 = sld [smem:[#allocation3 + $0x2]] }
 0x1bc   :  { %1180 = vrot.lane.b32.xlu1 %v1175_v52, %s2820_s4  ;;  %1191 = vrot.lane.b32.xlu0 %v1187_v19, %s2820_s4  ;;  %5037 = vst [vmem:[#allocation125_spill] sm:$0xff] %v3469_v40  ;;  %v1201_v19 = vmul.f32 %v3459_v58, %v1133_v15  ;;  %v1214_v6 = vmul.f32 %v3469_v40, %v1133_v15 }
 0x1bd   :  { %v1248_v58 = vmul.f32 %v3481_v7, %v3479_v8 }
 0x1be   :  { %v3463_v12 = vpop.permute.xlu1 %786  ;;  %v3465_v36 = vpop.permute.xlu0 %799 }
 0x1bf   :  { %5036 = vst [vmem:[#allocation124_spill] sm:$0xff] %v3463_v12  ;;  %v1213_v12 = vmul.f32 %v3469_v40, %v1132_v2  ;;  %v3494_v2 = vstv %s2697_s20  ;;  %v3506_v40 = vstv %s2698_s0  ;;  %s2666_s20 = sld [smem:[#allocation3 + $0x3a]]  ;;  %s2694_s0 = sld [smem:[#allocation3 + $0x56]] }
 0x1c0   :  { %1193 = vrot.lane.b32.xlu1 %v1188_v42, %s2820_s4  ;;  %1204 = vrot.lane.b32.xlu0 %v1200_v41, %s2820_s4  ;;  %5043 = vst [vmem:[#allocation131_spill] sm:$0xff] %v3494_v2  ;;  %v1261_v15 = vmul.f32 %v3494_v2, %v3479_v8  ;;  %5045 = vst [vmem:[#allocation133_spill] sm:$0xff] %v3506_v40 }
 0x1c2   :  { %v3473_v57 = vpop.permute.xlu1 %801  ;;  %v3475_v52 = vpop.permute.xlu0 %812 }
 0x1c3   :  { %5038 = vst [vmem:[#allocation126_spill] sm:$0xff] %v3475_v52  ;;  %v3492_v52 = vld [vmem:[#allocation2 + $0x25] sm:$0xff] }
 0x1c4   :  { %1206 = vrot.lane.b32.xlu1 %v1201_v19, %s2820_s4  ;;  %1217 = vrot.lane.b32.xlu0 %v1213_v12, %s2820_s4  ;;  %5042 = vst [vmem:[#allocation130_spill] sm:$0xff] %v3492_v52 }
 0x1c6   :  { %v3485_v42 = vpop.permute.xlu1 %814  ;;  %v3487_v41 = vpop.permute.xlu0 %825 }
 0x1c7   :  { %5041 = vst [vmem:[#allocation129_spill] sm:$0xff] %v3485_v42  ;;  %v1249_v42 = vmul.f32 %v3481_v7, %v3492_v52  ;;  %v1274_v7 = vmul.f32 %v3506_v40, %v3479_v8 }
 0x1c8   :  { %1219 = vrot.lane.b32.xlu1 %v1214_v6, %s2820_s4  ;;  %1252 = vrot.lane.b32.xlu0 %v1248_v58, %s2813_s3 }
 0x1ca   :  { %v3498_v19 = vpop.permute.xlu1 %827  ;;  %v3500_v12 = vpop.permute.xlu0 %838 }
 0x1cb   :  { %5044 = vst [vmem:[#allocation132_spill] sm:$0xff] %v3500_v12  ;;  %v1262_v12 = vmul.f32 %v3494_v2, %v3492_v52  ;;  %v1289_v2 = vmul.f32 %v3518_v53, %v1286_v38 }
 0x1cc   :  { %1254 = vrot.lane.b32.xlu1 %v1249_v42, %s2813_s3  ;;  %1265 = vrot.lane.b32.xlu0 %v1261_v15, %s2813_s3 }
 0x1ce   :  { %v3510_v6 = vpop.permute.xlu1 %840  ;;  %v3512_v58 = vpop.permute.xlu0 %851 }
 0x1cf   :  { %5046 = vst [vmem:[#allocation134_spill] sm:$0xff] %v3510_v6  ;;  %v1275_v6 = vmul.f32 %v3506_v40, %v3492_v52  ;;  %v3569_v52 = vstv %s2704_s30 }
 0x1d0   :  { %1267 = vrot.lane.b32.xlu1 %v1262_v12, %s2813_s3  ;;  %1278 = vrot.lane.b32.xlu0 %v1274_v7, %s2813_s3  ;;  %5059 = vst [vmem:[#allocation147_spill] sm:$0xff] %v3569_v52 }
 0x1d2   :  { %v3522_v42 = vpop.permute.xlu1 %853  ;;  %v3524_v15 = vpop.permute.xlu0 %864 }
 0x1d3   :  { %5048 = vst [vmem:[#allocation136_spill] sm:$0xff] %v3524_v15  ;;  %v1302_v15 = vmul.f32 %v3529_v11, %v1286_v38 }
 0x1d4   :  { %1280 = vrot.lane.b32.xlu1 %v1275_v6, %s2813_s3  ;;  %1293 = vrot.lane.b32.xlu0 %v1289_v2, %s2812_s1  ;;  %v1303_v2 = vmul.f32 %v3529_v11, %v1287_v37 }
 0x1d6   :  { %v3533_v12 = vpop.permute.xlu1 %866  ;;  %v3535_v7 = vpop.permute.xlu0 %877 }
 0x1d7   :  { %5050 = vst [vmem:[#allocation138_spill] sm:$0xff] %v3533_v12  ;;  %v1315_v12 = vmul.f32 %v3539_v29, %v1286_v38 }
 0x1d8   :  { %1295 = vrot.lane.b32.xlu1 %v1290_v34, %s2812_s1  ;;  %1306 = vrot.lane.b32.xlu0 %v1302_v15, %s2814_s8  ;;  %v1316_v15 = vmul.f32 %v3539_v29, %v1287_v37 }
 0x1da   :  { %v3543_v40 = vpop.permute.xlu1 %879  ;;  %v3545_v6 = vpop.permute.xlu0 %912 }
 0x1db   :  { %5052 = vst [vmem:[#allocation140_spill] sm:$0xff] %v3543_v40  ;;  %5053 = vst [vmem:[#allocation141_spill] sm:$0xff] %v3545_v6  ;;  %v3559_v6 = vstv %s2703_s29 }
 0x1dc   :  { %1308 = vrot.lane.b32.xlu1 %v1303_v2, %s2814_s8  ;;  %1319 = vrot.lane.b32.xlu0 %v1315_v12, %s2814_s8  ;;  %5056 = vst [vmem:[#allocation144_spill] sm:$0xff] %v3559_v6  ;;  %v1329_v12 = vmul.f32 %v3549_v30, %v1287_v37 }
 0x1de   :  { %v3553_v53 = vpop.permute.xlu1 %914  ;;  %v3555_v34 = vpop.permute.xlu0 %925 }
 0x1df   :  { %5055 = vst [vmem:[#allocation143_spill] sm:$0xff] %v3553_v53  ;;  %v1341_v53 = vmul.f32 %v3559_v6, %v1286_v38 }
 0x1e0   :  { %1321 = vrot.lane.b32.xlu1 %v1316_v15, %s2814_s8  ;;  %1332 = vrot.lane.b32.xlu0 %v1328_v27, %s2814_s8  ;;  %v1342_v27 = vmul.f32 %v3559_v6, %v1287_v37  ;;  %v1354_v15 = vmul.f32 %v3569_v52, %v1286_v38 }
 0x1e2   :  { %v3563_v11 = vpop.permute.xlu1 %927  ;;  %v3565_v2 = vpop.permute.xlu0 %938 }
 0x1e3   :  { %5057 = vst [vmem:[#allocation145_spill] sm:$0xff] %v3563_v11  ;;  %5058 = vst [vmem:[#allocation146_spill] sm:$0xff] %v3565_v2  ;;  %v3579_v11 = vstv %s2705_s5 }
 0x1e4   :  { %1334 = vrot.lane.b32.xlu1 %v1329_v12, %s2814_s8  ;;  %1345 = vrot.lane.b32.xlu0 %v1341_v53, %s2814_s8  ;;  %5062 = vst [vmem:[#allocation150_spill] sm:$0xff] %v3579_v11  ;;  %v1355_v53 = vmul.f32 %v3569_v52, %v1287_v37  ;;  %v1367_v12 = vmul.f32 %v3579_v11, %v1286_v38 }
 0x1e6   :  { %v3573_v29 = vpop.permute.xlu1 %940  ;;  %v3575_v8 = vpop.permute.xlu0 %953 }
 0x1e7   :  { %5060 = vst [vmem:[#allocation148_spill] sm:$0xff] %v3573_v29  ;;  %5061 = vst [vmem:[#allocation149_spill] sm:$0xff] %v3575_v8 }
 0x1e8   :  { %1347 = vrot.lane.b32.xlu1 %v1342_v27, %s2814_s8  ;;  %1358 = vrot.lane.b32.xlu0 %v1354_v15, %s2815_s13  ;;  %v1368_v27 = vmul.f32 %v3579_v11, %v1287_v37 }
 0x1ea   :  { %v3583_v30 = vpop.permute.xlu1 %955  ;;  %v3585_v2 = vpop.permute.xlu0 %966 }
 0x1eb   :  { %5063 = vst [vmem:[#allocation151_spill] sm:$0xff] %v3583_v30  ;;  %5064 = vst [vmem:[#allocation152_spill] sm:$0xff] %v3585_v2 }
 0x1ec   :  { %1360 = vrot.lane.b32.xlu1 %v1355_v53, %s2815_s13  ;;  %1371 = vrot.lane.b32.xlu0 %v1367_v12, %s2815_s13 }
 0x1ee   :  { %v3591_v6 = vpop.permute.xlu1 %968  ;;  %v3593_v29 = vpop.permute.xlu0 %979 }
 0x1ef   :  { %5065 = vst [vmem:[#allocation153_spill] sm:$0xff] %v3591_v6  ;;  %5066 = vst [vmem:[#allocation154_spill] sm:$0xff] %v3593_v29 }
 0x1f0   :  { %1373 = vrot.lane.b32.xlu1 %v1368_v27, %s2815_s13 }
 0x1f2   :  { %v3597_v15 = vpop.permute.xlu1 %981  ;;  %v3599_v30 = vpop.permute.xlu0 %992 }
 0x1f3   :  { %5067 = vst [vmem:[#allocation155_spill] sm:$0xff] %v3597_v15  ;;  %5068 = vst [vmem:[#allocation156_spill] sm:$0xff] %v3599_v30 }
 0x1f6   :  { %v3601_v2 = vpop.permute.xlu1 %994  ;;  %v3603_v52 = vpop.permute.xlu0 %1005 }
 0x1f7   :  { %5069 = vst [vmem:[#allocation157_spill] sm:$0xff] %v3601_v2  ;;  %5070 = vst [vmem:[#allocation158_spill] sm:$0xff] %v3603_v52 }
 0x1fa   :  { %v3605_v38 = vpop.permute.xlu1 %1007  ;;  %v3607_v53 = vpop.permute.xlu0 %1018 }
 0x1fb   :  { %5071 = vst [vmem:[#allocation159_spill] sm:$0xff] %v3605_v38  ;;  %5072 = vst [vmem:[#allocation160_spill] sm:$0xff] %v3607_v53 }
 0x1fe   :  { %v3609_v12 = vpop.permute.xlu1 %1020  ;;  %v3611_v6 = vpop.permute.xlu0 %1031 }
 0x1ff   :  { %5073 = vst [vmem:[#allocation161_spill] sm:$0xff] %v3609_v12  ;;  %5074 = vst [vmem:[#allocation162_spill] sm:$0xff] %v3611_v6 }
 0x202   :  { %v3613_v8 = vpop.permute.xlu1 %1033  ;;  %v3615_v37 = vpop.permute.xlu0 %1046 }
 0x203   :  { %5075 = vst [vmem:[#allocation163_spill] sm:$0xff] %v3613_v8  ;;  %5076 = vst [vmem:[#allocation164_spill] sm:$0xff] %v3615_v37 }
 0x206   :  { %v3617_v27 = vpop.permute.xlu1 %1048  ;;  %v3619_v11 = vpop.permute.xlu0 %1059 }
 0x207   :  { %5077 = vst [vmem:[#allocation165_spill] sm:$0xff] %v3617_v27  ;;  %5078 = vst [vmem:[#allocation166_spill] sm:$0xff] %v3619_v11 }
 0x20a   :  { %v3621_v30 = vpop.permute.xlu1 %1061  ;;  %v3623_v2 = vpop.permute.xlu0 %1072 }
 0x20b   :  { %5079 = vst [vmem:[#allocation167_spill] sm:$0xff] %v3621_v30  ;;  %5080 = vst [vmem:[#allocation168_spill] sm:$0xff] %v3623_v2 }
 0x20e   :  { %v3625_v52 = vpop.permute.xlu1 %1074  ;;  %v3627_v38 = vpop.permute.xlu0 %1085 }
 0x20f   :  { %5081 = vst [vmem:[#allocation169_spill] sm:$0xff] %v3625_v52  ;;  %5082 = vst [vmem:[#allocation170_spill] sm:$0xff] %v3627_v38 }
 0x212   :  { %v3629_v53 = vpop.permute.xlu1 %1087  ;;  %v3631_v12 = vpop.permute.xlu0 %1098 }
 0x213   :  { %5083 = vst [vmem:[#allocation171_spill] sm:$0xff] %v3629_v53  ;;  %5084 = vst [vmem:[#allocation172_spill] sm:$0xff] %v3631_v12  ;;  %v3649_v53 = vstv %s2609_s6 }
 0x214   :  { %5093 = vst [vmem:[#allocation181_spill] sm:$0xff] %v3649_v53 }
 0x216   :  { %v3633_v15 = vpop.permute.xlu1 %1100  ;;  %v3635_v8 = vpop.permute.xlu0 %1111 }
 0x217   :  { %5085 = vst [vmem:[#allocation173_spill] sm:$0xff] %v3633_v15  ;;  %5086 = vst [vmem:[#allocation174_spill] sm:$0xff] %v3635_v8  ;;  %v3655_v8 = vld [vmem:[#allocation2] sm:$0xff] }
 0x21a   :  { %v3637_v37 = vpop.permute.xlu1 %1113  ;;  %v3639_v27 = vpop.permute.xlu0 %1124 }
 0x21b   :  { %5087 = vst [vmem:[#allocation175_spill] sm:$0xff] %v3637_v37  ;;  %5088 = vst [vmem:[#allocation176_spill] sm:$0xff] %v3639_v27  ;;  %v213_v27 = vmul.f32 %v3655_v8, %v3649_v53 }
 0x21e   :  { %v3641_v30 = vpop.permute.xlu1 %1126  ;;  %v3643_v2 = vpop.permute.xlu0 %1139 }
 0x21f   :  { %5089 = vst [vmem:[#allocation177_spill] sm:$0xff] %v3641_v30  ;;  %5090 = vst [vmem:[#allocation178_spill] sm:$0xff] %v3643_v2  ;;  %v3664_v2 = vstv %s2611_s7 }
 0x222   :  { %v3645_v52 = vpop.permute.xlu1 %1141  ;;  %v3647_v11 = vpop.permute.xlu0 %1152 }
 0x223   :  { %5091 = vst [vmem:[#allocation179_spill] sm:$0xff] %v3645_v52  ;;  %5092 = vst [vmem:[#allocation180_spill] sm:$0xff] %v3647_v11  ;;  %v251_v52 = vadd.f32 %v3055_v21, %v213_v27  ;;  %v3666_v11 = vld [vmem:[#allocation2 + $0x8] sm:$0xff] }
 0x226   :  { %v3651_v12 = vpop.permute.xlu1 %1154  ;;  %v3653_v15 = vpop.permute.xlu0 %1165 }
 0x227   :  { %5094 = vst [vmem:[#allocation182_spill] sm:$0xff] %v3651_v12  ;;  %5095 = vst [vmem:[#allocation183_spill] sm:$0xff] %v3653_v15  ;;  %v214_v12 = vmul.f32 %v3666_v11, %v3649_v53  ;;  %v305_v15 = vadd.f32 %v3095_v62, %v251_v52  ;;  %v224_v52 = vmul.f32 %v3666_v11, %v3664_v2 }
 0x229   :  { %v357_v21 = vadd.f32 %v3135_v17, %v305_v15  ;;  %v3691_v15 = vstv %s2637_s9 }
 0x22a   :  { %v3659_v37 = vpop.permute.xlu1 %1167  ;;  %v3661_v30 = vpop.permute.xlu0 %1178 }
 0x22b   :  { %5096 = vst [vmem:[#allocation184_spill] sm:$0xff] %v3659_v37  ;;  %5097 = vst [vmem:[#allocation185_spill] sm:$0xff] %v3661_v30  ;;  %v252_v37 = vadd.f32 %v3063_v26, %v214_v12  ;;  %v223_v30 = vmul.f32 %v3655_v8, %v3664_v2  ;;  %v411_v29 = vadd.f32 %v3175_v33, %v357_v21 }
 0x22d   :  { %v279_v27 = vadd.f32 %v3075_v39, %v223_v30  ;;  %v306_v40 = vadd.f32 %v3103_v0, %v252_v37  ;;  %v465_v17 = vadd.f32 %v3215_v63, %v411_v29  ;;  %v280_v30 = vadd.f32 %v3083_v47, %v224_v52  ;;  %v3704_v63 = vld [vmem:[#allocation2 + $0x4] sm:$0xff] }
 0x22e   :  { %v3671_v38 = vpop.permute.xlu1 %1180  ;;  %v3673_v6 = vpop.permute.xlu0 %1191  ;;  %v553_v47 = vmul.f32 %v3704_v63, %v3691_v15 }
 0x22f   :  { %v331_v26 = vadd.f32 %v3115_v23, %v279_v27  ;;  %v358_v12 = vadd.f32 %v3143_v22, %v306_v40  ;;  %v517_v33 = vadd.f32 %v3262_v35, %v465_v17  ;;  %v332_v23 = vadd.f32 %v3123_v43, %v280_v30 }
 0x230   :  { %v3711_v27 = vstv %s2639_s10 }
 0x231   :  { %v385_v39 = vadd.f32 %v3155_v31, %v331_v26  ;;  %v412_v0 = vadd.f32 %v3183_v5, %v358_v12  ;;  %v386_v31 = vadd.f32 %v3163_v3, %v332_v23  ;;  %v555_v40 = vadd.f32 %v553_v47, %v517_v33  ;;  %5098 = vst [vmem:[#allocation186_spill] sm:$0xff] %v3711_v27  ;;  %v3720_v12 = vld [vmem:[#allocation2 + $0xc] sm:$0xff] }
 0x232   :  { %v3682_v53 = vpop.permute.xlu1 %1193  ;;  %v3684_v62 = vpop.permute.xlu0 %1204  ;;  %v554_v3 = vmul.f32 %v3720_v12, %v3691_v15  ;;  %v563_v17 = vmul.f32 %v3704_v63, %v3711_v27 }
 0x233   :  { %v437_v22 = vadd.f32 %v3195_v46, %v385_v39  ;;  %v466_v29 = vadd.f32 %v3223_v55, %v412_v0  ;;  %v438_v55 = vadd.f32 %v3203_v59, %v386_v31  ;;  %v591_v26 = vadd.f32 %v3305_v28, %v555_v40 }
 0x235   :  { %v491_v5 = vadd.f32 %v3237_v9, %v437_v22  ;;  %v518_v35 = vadd.f32 %v3272_v50, %v466_v29  ;;  %v492_v9 = vadd.f32 %v3248_v14, %v438_v55  ;;  %v645_v30 = vadd.f32 %v3345_v10, %v591_v26 }
 0x236   :  { %v3697_v37 = vpop.permute.xlu1 %1206  ;;  %v3699_v21 = vpop.permute.xlu0 %1217  ;;  %v564_v14 = vmul.f32 %v3720_v12, %v3711_v27  ;;  %v3765_v26 = vstv %s2667_s12 }
 0x237   :  { %v543_v46 = vadd.f32 %v3285_v49, %v491_v5  ;;  %v556_v50 = vadd.f32 %v554_v3, %v518_v35  ;;  %v544_v49 = vadd.f32 %v3293_v60, %v492_v9  ;;  %v697_v33 = vadd.f32 %v3385_v16, %v645_v30  ;;  %5100 = vst [vmem:[#allocation188_spill] sm:$0xff] %v3765_v26 }
 0x239   :  { %v592_v28 = vadd.f32 %v3313_v32, %v556_v50  ;;  %v565_v0 = vadd.f32 %v563_v17, %v543_v46  ;;  %v751_v10 = vadd.f32 %v3425_v18, %v697_v33  ;;  %v566_v60 = vadd.f32 %v564_v14, %v544_v49  ;;  %v5101_v17 = vld [vmem:[#allocation154_spill] sm:$0xff] }
 0x23a   :  { %v3713_v52 = vpop.permute.xlu1 %1219  ;;  %v3715_v43 = vpop.permute.xlu0 %1252  ;;  %v903_v50 = vmul.f32 %v3765_v26, %v3229_v25 }
 0x23b   :  { %v619_v23 = vadd.f32 %v3325_v24, %v565_v0  ;;  %v646_v22 = vadd.f32 %v3353_v44, %v592_v28  ;;  %v805_v16 = vadd.f32 %v3465_v36, %v751_v10  ;;  %v3747_v24 = vstv %s2665_s11 }
 0x23c   :  { %5099 = vst [vmem:[#allocation187_spill] sm:$0xff] %v3747_v24  ;;  %v620_v5 = vadd.f32 %v3333_v13, %v566_v60  ;;  %v893_v46 = vmul.f32 %v3747_v24, %v3229_v25  ;;  %v5106_v60 = vld [vmem:[#allocation155_spill] sm:$0xff] }
 0x23d   :  { %v671_v32 = vadd.f32 %v3365_v4, %v619_v23  ;;  %v698_v31 = vadd.f32 %v3393_v20, %v646_v22  ;;  %v857_v35 = vadd.f32 %v3512_v58, %v805_v16  ;;  %v5104_v23 = vld [vmem:[#allocation162_spill] sm:$0xff]  ;;  %v5105_v22 = vld [vmem:[#allocation149_spill] sm:$0xff] }
 0x23e   :  { %v3728_v39 = vpop.permute.xlu1 %1254  ;;  %v3730_v59 = vpop.permute.xlu0 %1265  ;;  %v672_v4 = vadd.f32 %v3373_v54, %v620_v5 }
 0x23f   :  { %v725_v44 = vadd.f32 %v3405_v1, %v671_v32  ;;  %v752_v18 = vadd.f32 %v3433_v51, %v698_v31  ;;  %v895_v58 = vadd.f32 %v893_v46, %v857_v35  ;;  %v5107_v31 = vld [vmem:[#allocation170_spill] sm:$0xff] }
 0x240   :  { %v726_v13 = vadd.f32 %v3413_v48, %v672_v4  ;;  %v894_v48 = vmul.f32 %v3747_v24, %v3242_v56  ;;  %v5108_v35 = vld [vmem:[#allocation158_spill] sm:$0xff] }
 0x241   :  { %v777_v20 = vadd.f32 %v3445_v45, %v725_v44  ;;  %v806_v36 = vadd.f32 %v3473_v57, %v752_v18  ;;  %v931_v45 = vadd.f32 %v3555_v34, %v895_v58  ;;  %v5110_v46 = vld [vmem:[#allocation178_spill] sm:$0xff] }
 0x242   :  { %v3740_v29 = vpop.permute.xlu1 %1267  ;;  %v3742_v47 = vpop.permute.xlu0 %1278  ;;  %v778_v54 = vadd.f32 %v3453_v61, %v726_v13  ;;  %v5102_v61 = vld [vmem:[#allocation140_spill] sm:$0xff] }
 0x243   :  { %v831_v1 = vadd.f32 %v3487_v41, %v777_v20  ;;  %v858_v51 = vadd.f32 %v3522_v42, %v806_v36  ;;  %v985_v30 = vadd.f32 %v5101_v17, %v931_v45  ;;  %v5109_v20 = vld [vmem:[#allocation163_spill] sm:$0xff] }
 0x244   :  { %v832_v41 = vadd.f32 %v3498_v19, %v778_v54  ;;  %v904_v19 = vmul.f32 %v3765_v26, %v3242_v56  ;;  %v5113_v54 = vld [vmem:[#allocation166_spill] sm:$0xff]  ;;  %v5114_v45 = vld [vmem:[#allocation171_spill] sm:$0xff] }
 0x245   :  { %v883_v57 = vadd.f32 %v3535_v7, %v831_v1  ;;  %v896_v42 = vadd.f32 %v894_v48, %v858_v51  ;;  %v5103_v7 = vld [vmem:[#allocation145_spill] sm:$0xff]  ;;  %v1037_v14 = vadd.f32 %v5104_v23, %v985_v30  ;;  %v3795_v1 = vstv %s2693_s14  ;;  %v5112_v51 = vld [vmem:[#allocation151_spill] sm:$0xff]  ;;  %v5223_v26 = vld [vmem:[#allocation122_spill] sm:$0xff] }
 0x246   :  { %v3753_v40 = vpop.permute.xlu1 %1280  ;;  %v3755_v55 = vpop.permute.xlu0 %1293  ;;  %v884_v0 = vadd.f32 %v5102_v61, %v832_v41  ;;  %5111 = vst [vmem:[#allocation154_spill] sm:$0xff] %v3795_v1  ;;  %v5115_v61 = vld [vmem:[#allocation159_spill] sm:$0xff] }
 0x247   :  { %v932_v33 = vadd.f32 %v5103_v7, %v896_v42  ;;  %v905_v34 = vadd.f32 %v903_v50, %v883_v57  ;;  %v1091_v16 = vadd.f32 %v5107_v31, %v1037_v14  ;;  %v1425_v42 = vld [vmem:[#allocation7 + $0x40] sm:$0xff]  ;;  %v1428_v50 = vld [vmem:[#allocation7 + $0x50] sm:$0xff]  ;;  %v5118_v14 = vld [vmem:[#allocation127_spill] sm:$0xff] }
 0x248   :  { %v906_v18 = vadd.f32 %v904_v19, %v884_v0  ;;  %v5116_v7 = vld [vmem:[#allocation174_spill] sm:$0xff]  ;;  %v1430_v19 = vadd.f32 %v1428_v50, %v1425_v42 }
 0x249   :  { %v959_v10 = vadd.f32 %v5105_v22, %v905_v34  ;;  %v986_v32 = vadd.f32 %v5106_v60, %v932_v33  ;;  %v1145_v13 = vadd.f32 %v5110_v46, %v1091_v16  ;;  %v5117_v34 = vld [vmem:[#allocation179_spill] sm:$0xff]  ;;  %v1233_v22 = vmul.f32 %v3795_v1, %v5118_v14  ;;  %v1435_v46 = vld [vmem:[#allocation7 + $0x60] sm:$0xff] }
 0x24a   :  { %v3767_v3 = vpop.permute.xlu1 %1295  ;;  %v3769_v9 = vpop.permute.xlu0 %1306  ;;  %v960_v58 = vadd.f32 %v5112_v51, %v906_v18  ;;  %v5120_v60 = vld [vmem:[#allocation167_spill] sm:$0xff] }
 0x24b   :  { %v1011_v4 = vadd.f32 %v5108_v35, %v959_v10  ;;  %v1038_v36 = vadd.f32 %v5109_v20, %v986_v32  ;;  %v1197_v41 = vadd.f32 %v3673_v6, %v1145_v13  ;;  %v3808_v10 = vstv %s2695_s15  ;;  %v5121_v6 = vld [vmem:[#allocation183_spill] sm:$0xff]  ;;  %v1426_v35 = vld [vmem:[#allocation7 + $0x48] sm:$0xff] }
 0x24c   :  { %v1012_v0 = vadd.f32 %v5115_v61, %v960_v58  ;;  %5119 = vst [vmem:[#allocation140_spill] sm:$0xff] %v3808_v10  ;;  %v5122_v13 = vld [vmem:[#allocation175_spill] sm:$0xff] }
 0x24d   :  { %v1065_v57 = vadd.f32 %v5113_v54, %v1011_v4  ;;  %v1092_v48 = vadd.f32 %v5114_v45, %v1038_v36  ;;  %v1235_v18 = vadd.f32 %v1233_v22, %v1197_v41  ;;  %v1429_v4 = vld [vmem:[#allocation7 + $0x58] sm:$0xff]  ;;  %v5124_v41 = vld [vmem:[#allocation184_spill] sm:$0xff] }
 0x24e   :  { %v3780_v49 = vpop.permute.xlu1 %1308  ;;  %v1320_v28 = vpop.permute.xlu0 %1319  ;;  %v1066_v32 = vadd.f32 %v5120_v60, %v1012_v0  ;;  %v1442_v60 = vld [vmem:[#allocation7 + $0x70] sm:$0xff] }
 0x24f   :  { %v1117_v33 = vadd.f32 %v5116_v7, %v1065_v57  ;;  %v1146_v23 = vadd.f32 %v5117_v34, %v1092_v48  ;;  %v1271_v54 = vadd.f32 %v3730_v59, %v1235_v18  ;;  %v5123_v57 = vld [vmem:[#allocation130_spill] sm:$0xff]  ;;  %v1243_v48 = vmul.f32 %v3808_v10, %v5118_v14  ;;  %v1436_v34 = vld [vmem:[#allocation7 + $0x68] sm:$0xff] }
 0x250   :  { %v1118_v51 = vadd.f32 %v5122_v13, %v1066_v32  ;;  %v1234_v45 = vmul.f32 %v3795_v1, %v5123_v57 }
 0x251   :  { %v1171_v31 = vadd.f32 %v5121_v6, %v1117_v33  ;;  %v1198_v16 = vadd.f32 %v3682_v53, %v1146_v23  ;;  %v1431_v53 = vadd.f32 %v1429_v4, %v1426_v35  ;;  %v1325_v7 = vadd.f32 %v1320_v28, %v1271_v54 }
 0x252   :  { %v1322_v5 = vpop.permute.xlu1 %1321  ;;  %v3790_v44 = vpop.permute.xlu0 %1332  ;;  %v1172_v61 = vadd.f32 %v5124_v41, %v1118_v51  ;;  %v1437_v33 = vadd.f32 %v1435_v46, %v1430_v19  ;;  %v1443_v19 = vld [vmem:[#allocation7 + $0x78] sm:$0xff]  ;;  %v1432_v51 = vmax.f32 %v1425_v42, %v1428_v50 }
 0x253   :  { %v1223_v58 = vadd.f32 %v3699_v21, %v1171_v31  ;;  %v1236_v0 = vadd.f32 %v1234_v45, %v1198_v16  ;;  %v1244_v31 = vmul.f32 %v3808_v10, %v5123_v57  ;;  %v1438_v18 = vadd.f32 %v1436_v34, %v1431_v53 }
 0x254   :  { %v1224_v21 = vadd.f32 %v3713_v52, %v1172_v61  ;;  %v1444_v28 = vadd.f32 %v1442_v60, %v1437_v33 }
 0x255   :  { %v1272_v59 = vadd.f32 %v3740_v29, %v1236_v0  ;;  %v1245_v32 = vadd.f32 %v1243_v48, %v1223_v58  ;;  %v1445_v61 = vadd.f32 %v1443_v19, %v1438_v18  ;;  %v1439_v48 = vmax.f32 %v1432_v51, %v1435_v46 }
 0x256   :  { %v3801_v17 = vpop.permute.xlu1 %1334  ;;  %v1346_v30 = vpop.permute.xlu0 %1345  ;;  %v1246_v45 = vadd.f32 %v1244_v31, %v1224_v21  ;;  %v1448_v58 = vmul.f32 0.25, %v1444_v28  ;;  %v5126_v21 = vld [vmem:[#allocation13_spill] sm:$0xff] }
 0x257   :  { %v1299_v13 = vadd.f32 %v3755_v55, %v1245_v32  ;;  %v1326_v16 = vadd.f32 %v1322_v5, %v1272_v59  ;;  %v1433_v55 = vmax.f32 %v1426_v35, %v1429_v4  ;;  %v1449_v42 = vmul.f32 0.25, %v1445_v61  ;;  %v5130_v61 = vld [vmem:[#allocation48_spill] sm:$0xff] }
 0x258   :  { %v1300_v29 = vadd.f32 %v3767_v3, %v1246_v45  ;;  %v1446_v50 = vmax.f32 %v1439_v48, %v1442_v60  ;;  %v3858_v32 = vstv %s2610_s17 }
 0x259   :  { %v1351_v41 = vadd.f32 %v1346_v30, %v1299_v13  ;;  %v1440_v53 = vmax.f32 %v1433_v55, %v1436_v34  ;;  %v218_v18 = vmul.f32 %v3655_v8, %v3858_v32  ;;  %v5127_v13 = vld [vmem:[#allocation46_spill] sm:$0xff]  ;;  %v219_v45 = vmul.f32 %v3666_v11, %v3858_v32 }
 0x25a   :  { %v1348_v20 = vpop.permute.xlu1 %1347  ;;  %v3813_v36 = vpop.permute.xlu0 %1358 }
 0x25b   :  { %v1352_v5 = vadd.f32 %v1348_v20, %v1300_v29  ;;  %v1447_v3 = vmax.f32 %v1440_v53, %v1443_v19  ;;  %v5128_v19 = vld [vmem:[#allocation14_spill] sm:$0xff]  ;;  %v265_v29 = vadd.f32 %v5130_v61, %v219_v45  ;;  %v5133_v53 = vld [vmem:[#allocation56_spill] sm:$0xff]  ;;  %v5142_v61 = vld [vmem:[#allocation17_spill] sm:$0xff] }
 0x25e   :  { %v3823_v23 = vpop.permute.xlu1 %1360  ;;  %v1372_v22 = vpop.permute.xlu0 %1371 }
 0x25f   :  { %v1377_v6 = vadd.f32 %v1372_v22, %v1325_v7  ;;  %v5125_v22 = vld [vmem:[#allocation12_spill] sm:$0xff] }
 0x261   :  { %1381 = vrot.lane.b32.xlu0 %v1377_v6, %s2814_s8 }
 0x262   :  { %v1374_v54 = vpop.permute.xlu1 %1373 }
 0x263   :  { %v1378_v52 = vadd.f32 %v1374_v54, %v1326_v16  ;;  %v264_v16 = vadd.f32 %v5127_v13, %v218_v18  ;;  %v3891_v18 = vstv %s2638_s18  ;;  %v5139_v13 = vld [vmem:[#allocation72_spill] sm:$0xff] }
 0x264   :  { %5138 = vst [vmem:[#allocation145_spill] sm:$0xff] %v3891_v18 }
 0x265   :  { %1383 = vrot.lane.b32.xlu1 %v1378_v52, %s2814_s8  ;;  %1391 = vrot.lane.b32.xlu0 %v1351_v41, %s2814_s8  ;;  %v5129_v41 = vld [vmem:[#allocation54_spill] sm:$0xff] }
 0x266   :  { %v318_v52 = vadd.f32 %v5129_v41, %v264_v16  ;;  %v558_v41 = vmul.f32 %v3704_v63, %v3891_v18 }
 0x269   :  { %1393 = vrot.lane.b32.xlu1 %v1352_v5, %s2814_s8  ;;  %1452 = vrot.lane.b32.xlu0 %v1448_v58, %s2812_s1  ;;  %v5131_v58 = vld [vmem:[#allocation62_spill] sm:$0xff]  ;;  %v5132_v5 = vld [vmem:[#allocation15_spill] sm:$0xff] }
 0x26a   :  { %v372_v48 = vadd.f32 %v5131_v58, %v318_v52  ;;  %v5143_v58 = vld [vmem:[#allocation88_spill] sm:$0xff] }
 0x26d   :  { %1454 = vrot.lane.b32.xlu1 %v1449_v42, %s2812_s1  ;;  %1462 = vrot.lane.b32.xlu0 %v1446_v50, %s2812_s1 }
 0x271   :  { %1464 = vrot.lane.b32.xlu1 %v1447_v3, %s2812_s1  ;;  %v319_v3 = vadd.f32 %v5133_v53, %v265_v29  ;;  %v559_v53 = vmul.f32 %v3720_v12, %v3891_v18 }
 0x2d3   :  { %v3839_v30 = vpop.permute.xlu0 %1381 }
 0x2d7   :  { %v3841_v0 = vpop.permute.xlu1 %1383  ;;  %v3843_v35 = vpop.permute.xlu0 %1391 }
 0x2db   :  { %v3845_v4 = vpop.permute.xlu1 %1393  ;;  %v1453_v20 = vpop.permute.xlu0 %1452 }
 0x2dc   :  { %1458 = vst.msk [vmem:[#allocation2 + $0x3] sm:$0xff] %vm191_vm5, %v1453_v20  ;;  %v5134_v20 = vld [vmem:[#allocation70_spill] sm:$0xff] }
 0x2df   :  { %v1455_v46 = vpop.permute.xlu1 %1454  ;;  %v1463_v7 = vpop.permute.xlu0 %1462 }
 0x2e0   :  { %1459 = vst.msk [vmem:[#allocation2 + $0xb] sm:$0xff] %vm191_vm5, %v1455_v46  ;;  %1468 = vst.msk [vmem:[#allocation2 + $0x1b] sm:$0xff] %vm191_vm5, %v1463_v7  ;;  %v424_v46 = vadd.f32 %v5134_v20, %v372_v48  ;;  %v5135_v7 = vld [vmem:[#allocation64_spill] sm:$0xff]  ;;  %v5145_v20 = vld [vmem:[#allocation18_spill] sm:$0xff] }
 0x2e3   :  { %v3850_v33 = vld [vmem:[#allocation2] sm:$0xff]  ;;  %v1465_v34 = vpop.permute.xlu1 %1464 }
 0x2e4   :  { %v1488_v60 = vmul.f32 %v3850_v33, %v5125_v22  ;;  %1469 = vst.msk [vmem:[#allocation2 + $0x23] sm:$0xff] %vm191_vm5, %v1465_v34  ;;  %v1500_v59 = vmul.f32 %v3850_v33, %v5126_v21  ;;  %v1512_v51 = vmul.f32 %v3850_v33, %v5128_v19  ;;  %v1524_v54 = vld [vmem:[#allocation2 + $0x1] sm:$0xff]  ;;  %v373_v34 = vadd.f32 %v5135_v7, %v319_v3 }
 0x2e5   :  { %v1526_v42 = vmul.f32 %v1524_v54, %v5132_v5  ;;  %v1550_v29 = vmul.f32 %v1524_v54, %v5142_v61 }
 0x2e6   :  { %1492 = vrot.lane.b32.xlu0 %v1488_v60, %s2813_s3  ;;  %v425_v16 = vadd.f32 %v5139_v13, %v373_v34  ;;  %v5146_v34 = vld [vmem:[#allocation102_spill] sm:$0xff] }
 0x2e7   :  { %v3860_v6 = vld [vmem:[#allocation2 + $0x8] sm:$0xff] }
 0x2e8   :  { %v1489_v31 = vmul.f32 %v3860_v6, %v5125_v22  ;;  %v1501_v28 = vmul.f32 %v3860_v6, %v5126_v21  ;;  %v1513_v55 = vmul.f32 %v3860_v6, %v5128_v19  ;;  %v1525_v50 = vld [vmem:[#allocation2 + $0x9] sm:$0xff]  ;;  %v5136_v22 = vld [vmem:[#allocation78_spill] sm:$0xff] }
 0x2e9   :  { %v478_v60 = vadd.f32 %v5136_v22, %v424_v46  ;;  %v1527_v21 = vmul.f32 %v1525_v50, %v5132_v5  ;;  %v5144_v5 = vld [vmem:[#allocation94_spill] sm:$0xff]  ;;  %v1551_v3 = vmul.f32 %v1525_v50, %v5142_v61  ;;  %v1562_v46 = vmul.f32 %v1524_v54, %v5145_v20 }
 0x2ea   :  { %1494 = vrot.lane.b32.xlu1 %v1489_v31, %s2813_s3  ;;  %1504 = vrot.lane.b32.xlu0 %v1500_v59, %s2813_s3  ;;  %v5137_v59 = vld [vmem:[#allocation16_spill] sm:$0xff]  ;;  %v1563_v13 = vmul.f32 %v1525_v50, %v5145_v20 }
 0x2eb   :  { %v1538_v31 = vmul.f32 %v1524_v54, %v5137_v59  ;;  %v1539_v52 = vmul.f32 %v1525_v50, %v5137_v59  ;;  %v5148_v59 = vld [vmem:[#allocation110_spill] sm:$0xff]  ;;  %v5157_v20 = vld [vmem:[#allocation136_spill] sm:$0xff] }
 0x2ec   :  { %v4213_v18 = vld [vmem:[#allocation2 + $0x1e] sm:$0xff] }
 0x2ed   :  { %5235 = vst [vmem:[#allocation179_spill] sm:$0xff] %v4213_v18 }
 0x2ee   :  { %1506 = vrot.lane.b32.xlu1 %v1501_v28, %s2813_s3  ;;  %1516 = vrot.lane.b32.xlu0 %v1512_v51, %s2813_s3  ;;  %v5140_v28 = vld [vmem:[#allocation86_spill] sm:$0xff]  ;;  %v5141_v51 = vld [vmem:[#allocation80_spill] sm:$0xff] }
 0x2ef   :  { %v530_v19 = vadd.f32 %v5140_v28, %v478_v60  ;;  %v479_v45 = vadd.f32 %v5141_v51, %v425_v16  ;;  %v5147_v60 = vld [vmem:[#allocation96_spill] sm:$0xff]  ;;  %v5149_v16 = vld [vmem:[#allocation19_spill] sm:$0xff] }
 0x2f0   :  { %v1574_v28 = vmul.f32 %v1524_v54, %v5149_v16 }
 0x2f1   :  { %v531_v48 = vadd.f32 %v5143_v58, %v479_v45  ;;  %v5151_v45 = vld [vmem:[#allocation118_spill] sm:$0xff] }
 0x2f2   :  { %1518 = vrot.lane.b32.xlu1 %v1513_v55, %s2813_s3  ;;  %1530 = vrot.lane.b32.xlu0 %v1526_v42, %s2812_s1  ;;  %v560_v55 = vadd.f32 %v558_v41, %v530_v19  ;;  %v5150_v19 = vld [vmem:[#allocation104_spill] sm:$0xff] }
 0x2f3   :  { %v561_v7 = vadd.f32 %v559_v53, %v531_v48  ;;  %v1575_v48 = vmul.f32 %v1525_v50, %v5149_v16  ;;  %v5156_v53 = vld [vmem:[#allocation120_spill] sm:$0xff] }
 0x2f4   :  { %v604_v42 = vadd.f32 %v5144_v5, %v560_v55  ;;  %v5154_v55 = vld [vmem:[#allocation20_spill] sm:$0xff] }
 0x2f5   :  { %v1586_v5 = vmul.f32 %v1524_v54, %v5154_v55 }
 0x2f6   :  { %1532 = vrot.lane.b32.xlu1 %v1527_v21, %s2812_s1  ;;  %1542 = vrot.lane.b32.xlu0 %v1538_v31, %s2814_s8  ;;  %v658_v22 = vadd.f32 %v5146_v34, %v604_v42  ;;  %v605_v21 = vadd.f32 %v5147_v60, %v561_v7  ;;  %v3925_v42 = vstv %s2666_s20  ;;  %v5158_v7 = vld [vmem:[#allocation129_spill] sm:$0xff]  ;;  %v1587_v60 = vmul.f32 %v1525_v50, %v5154_v55  ;;  %v5164_v55 = vld [vmem:[#allocation148_spill] sm:$0xff] }
 0x2f7   :  { %5155 = vst [vmem:[#allocation162_spill] sm:$0xff] %v3925_v42 }
 0x2f8   :  { %v712_v31 = vadd.f32 %v5148_v59, %v658_v22  ;;  %v659_v51 = vadd.f32 %v5150_v19, %v605_v21  ;;  %v898_v22 = vmul.f32 %v3925_v42, %v3229_v25  ;;  %v5159_v21 = vld [vmem:[#allocation21_spill] sm:$0xff]  ;;  %v5161_v19 = vld [vmem:[#allocation146_spill] sm:$0xff] }
 0x2f9   :  { %v1598_v59 = vmul.f32 %v1524_v54, %v5159_v21 }
 0x2fa   :  { %1544 = vrot.lane.b32.xlu1 %v1539_v52, %s2814_s8  ;;  %1554 = vrot.lane.b32.xlu0 %v1550_v29, %s2814_s8  ;;  %v764_v41 = vadd.f32 %v5151_v45, %v712_v31  ;;  %v5152_v52 = vld [vmem:[#allocation112_spill] sm:$0xff]  ;;  %v5153_v29 = vld [vmem:[#allocation126_spill] sm:$0xff]  ;;  %v899_v45 = vmul.f32 %v3925_v42, %v3242_v56 }
 0x2fb   :  { %v713_v61 = vadd.f32 %v5152_v52, %v659_v51  ;;  %v1610_v31 = vld [vmem:[#allocation2 + $0x2] sm:$0xff] }
 0x2fc   :  { %v818_v58 = vadd.f32 %v5153_v29, %v764_v41  ;;  %v1599_v41 = vmul.f32 %v1525_v50, %v5159_v21  ;;  %v5162_v52 = vld [vmem:[#allocation22_spill] sm:$0xff]  ;;  %v1611_v29 = vld [vmem:[#allocation2 + $0xa] sm:$0xff]  ;;  %v5167_v50 = vld [vmem:[#allocation157_spill] sm:$0xff] }
 0x2fd   :  { %v5169_v21 = vld [vmem:[#allocation165_spill] sm:$0xff]  ;;  %v5216_v42 = vld [vmem:[#allocation106_spill] sm:$0xff] }
 0x2fe   :  { %1556 = vrot.lane.b32.xlu1 %v1551_v3, %s2814_s8  ;;  %1566 = vrot.lane.b32.xlu0 %v1562_v46, %s2814_s8  ;;  %v765_v3 = vadd.f32 %v5156_v53, %v713_v61  ;;  %v870_v46 = vadd.f32 %v5157_v20, %v818_v58  ;;  %v1612_v61 = vmul.f32 %v1610_v31, %v5162_v52  ;;  %v5163_v58 = vld [vmem:[#allocation156_spill] sm:$0xff] }
 0x2ff   :  { %v5165_v53 = vld [vmem:[#allocation164_spill] sm:$0xff]  ;;  %v1613_v20 = vmul.f32 %v1611_v29, %v5162_v52 }
 0x300   :  { %v819_v34 = vadd.f32 %v5158_v7, %v765_v3 }
 0x302   :  { %1568 = vrot.lane.b32.xlu1 %v1563_v13, %s2814_s8  ;;  %1578 = vrot.lane.b32.xlu0 %v1574_v28, %s2814_s8  ;;  %v5160_v13 = vld [vmem:[#allocation138_spill] sm:$0xff]  ;;  %v900_v28 = vadd.f32 %v898_v22, %v870_v46  ;;  %v5166_v46 = vld [vmem:[#allocation23_spill] sm:$0xff]  ;;  %v5168_v22 = vld [vmem:[#allocation172_spill] sm:$0xff] }
 0x303   :  { %v871_v16 = vadd.f32 %v5160_v13, %v819_v34  ;;  %v1624_v7 = vmul.f32 %v1610_v31, %v5166_v46  ;;  %v5170_v13 = vld [vmem:[#allocation180_spill] sm:$0xff] }
 0x304   :  { %v944_v51 = vadd.f32 %v5161_v19, %v900_v28  ;;  %v1625_v28 = vmul.f32 %v1611_v29, %v5166_v46  ;;  %v5171_v19 = vld [vmem:[#allocation24_spill] sm:$0xff] }
 0x305   :  { %v901_v54 = vadd.f32 %v899_v45, %v871_v16  ;;  %v3959_v45 = vstv %s2694_s0 }
 0x306   :  { %1580 = vrot.lane.b32.xlu1 %v1575_v48, %s2814_s8  ;;  %1590 = vrot.lane.b32.xlu0 %v1586_v5, %s2815_s13  ;;  %v998_v48 = vadd.f32 %v5163_v58, %v944_v51  ;;  %v1636_v51 = vmul.f32 %v1610_v31, %v5171_v19  ;;  %5172 = vst [vmem:[#allocation149_spill] sm:$0xff] %v3959_v45 }
 0x307   :  { %v945_v5 = vadd.f32 %v5164_v55, %v901_v54  ;;  %v5174_v54 = vld [vmem:[#allocation182_spill] sm:$0xff]  ;;  %v1637_v55 = vmul.f32 %v1611_v29, %v5171_v19  ;;  %v1239_v46 = vmul.f32 %v3959_v45, %v5123_v57 }
 0x308   :  { %v1052_v3 = vadd.f32 %v5165_v53, %v998_v48  ;;  %v1238_v48 = vmul.f32 %v3959_v45, %v5118_v14  ;;  %v1696_v19 = vld [vmem:[#allocation2 + $0x3] sm:$0xff]  ;;  %v4147_v45 = vld [vmem:[#allocation2 + $0x1b] sm:$0xff] }
 0x309   :  { %v999_v34 = vadd.f32 %v5167_v50, %v945_v5  ;;  %v5175_v5 = vld [vmem:[#allocation25_spill] sm:$0xff]  ;;  %v5176_v50 = vld [vmem:[#allocation26_spill] sm:$0xff]  ;;  %5212 = vst [vmem:[#allocation163_spill] sm:$0xff] %v4147_v45 }
 0x30a   :  { %1592 = vrot.lane.b32.xlu1 %v1587_v60, %s2815_s13  ;;  %1602 = vrot.lane.b32.xlu0 %v1598_v59, %s2815_s13  ;;  %v1104_v60 = vadd.f32 %v5168_v22, %v1052_v3  ;;  %v1648_v53 = vmul.f32 %v1610_v31, %v5175_v5 }
 0x30b   :  { %v1053_v59 = vadd.f32 %v5169_v21, %v999_v34  ;;  %v1660_v34 = vmul.f32 %v1610_v31, %v5176_v50 }
 0x30c   :  { %v1158_v16 = vadd.f32 %v5170_v13, %v1104_v60 }
 0x30e   :  { %1604 = vrot.lane.b32.xlu1 %v1599_v41, %s2815_s13  ;;  %1616 = vrot.lane.b32.xlu0 %v1612_v61, %s2816_s16  ;;  %v5173_v41 = vld [vmem:[#allocation173_spill] sm:$0xff]  ;;  %v1210_v61 = vadd.f32 %v3684_v62, %v1158_v16  ;;  %v5177_v16 = vld [vmem:[#allocation27_spill] sm:$0xff] }
 0x30f   :  { %v1105_v52 = vadd.f32 %v5173_v41, %v1053_v59 }
 0x311   :  { %v1159_v58 = vadd.f32 %v5174_v54, %v1105_v52 }
 0x312   :  { %1618 = vrot.lane.b32.xlu1 %v1613_v20, %s2816_s16  ;;  %1628 = vrot.lane.b32.xlu0 %v1624_v7, %s2816_s16  ;;  %v1240_v20 = vadd.f32 %v1238_v48, %v1210_v61  ;;  %v1649_v7 = vmul.f32 %v1611_v29, %v5175_v5  ;;  %v5180_v61 = vld [vmem:[#allocation30_spill] sm:$0xff] }
 0x313   :  { %v1211_v3 = vadd.f32 %v3697_v37, %v1159_v58  ;;  %v1710_v54 = vmul.f32 %v1696_v19, %v5180_v61  ;;  %v5181_v58 = vld [vmem:[#allocation31_spill] sm:$0xff] }
 0x314   :  { %v1284_v62 = vadd.f32 %v3742_v47, %v1240_v20  ;;  %v1661_v47 = vmul.f32 %v1611_v29, %v5176_v50  ;;  %v1722_v48 = vmul.f32 %v1696_v19, %v5181_v58 }
 0x315   :  { %v1241_v22 = vadd.f32 %v1239_v46, %v1211_v3  ;;  %v5183_v3 = vld [vmem:[#allocation33_spill] sm:$0xff]  ;;  %v5184_v46 = vld [vmem:[#allocation34_spill] sm:$0xff] }
 0x316   :  { %1630 = vrot.lane.b32.xlu1 %v1625_v28, %s2816_s16  ;;  %1640 = vrot.lane.b32.xlu0 %v1636_v51, %s2817_s19  ;;  %v1338_v60 = vadd.f32 %v3790_v44, %v1284_v62  ;;  %v1672_v44 = vmul.f32 %v1610_v31, %v5177_v16  ;;  %v5178_v28 = vld [vmem:[#allocation28_spill] sm:$0xff]  ;;  %v5179_v51 = vld [vmem:[#allocation29_spill] sm:$0xff]  ;;  %v1746_v20 = vmul.f32 %v1696_v19, %v5183_v3 }
 0x317   :  { %v1285_v37 = vadd.f32 %v3753_v40, %v1241_v22  ;;  %v1673_v40 = vmul.f32 %v1611_v29, %v5177_v16  ;;  %v1698_v41 = vmul.f32 %v1696_v19, %v5179_v51  ;;  %v5187_v16 = vld [vmem:[#allocation37_spill] sm:$0xff] }
 0x318   :  { %v1397_v21 = vadd.f32 %v3843_v35, %v1338_v60  ;;  %v1684_v35 = vmul.f32 %v1610_v31, %v5178_v28  ;;  %v4021_v60 = vld [vmem:[#allocation2 + $0x4] sm:$0xff] }
 0x319   :  { %v1339_v59 = vadd.f32 %v3801_v17, %v1285_v37  ;;  %v1685_v17 = vmul.f32 %v1611_v29, %v5178_v28 }
 0x31a   :  { %1642 = vrot.lane.b32.xlu1 %v1637_v55, %s2817_s19  ;;  %1652 = vrot.lane.b32.xlu0 %v1648_v53, %s2817_s19  ;;  %v5182_v55 = vld [vmem:[#allocation32_spill] sm:$0xff] }
 0x31b   :  { %v1398_v13 = vadd.f32 %v3845_v4, %v1339_v59  ;;  %v1697_v4 = vld [vmem:[#allocation2 + $0xb] sm:$0xff]  ;;  %v1734_v5 = vmul.f32 %v1696_v19, %v5182_v55 }
 0x31c   :  { %v1699_v52 = vmul.f32 %v1697_v4, %v5179_v51  ;;  %v1711_v31 = vmul.f32 %v1697_v4, %v5180_v61  ;;  %v1723_v29 = vmul.f32 %v1697_v4, %v5181_v58  ;;  %v1735_v53 = vmul.f32 %v1697_v4, %v5182_v55  ;;  %v4028_v59 = vld [vmem:[#allocation2 + $0xc] sm:$0xff]  ;;  %v5190_v58 = vld [vmem:[#allocation53_spill] sm:$0xff] }
 0x31d   :  { %v1747_v62 = vmul.f32 %v1697_v4, %v5183_v3  ;;  %v1759_v50 = vmul.f32 %v1697_v4, %v5184_v46  ;;  %v1813_v28 = vmul.f32 %v4028_v59, %v5187_v16  ;;  %v4056_v61 = vstv %s60_s21 }
 0x31e   :  { %1654 = vrot.lane.b32.xlu1 %v1649_v7, %s2817_s19  ;;  %1664 = vrot.lane.b32.xlu0 %v1660_v34, %s2817_s19  ;;  %v1758_v7 = vmul.f32 %v1696_v19, %v5184_v46  ;;  %v5185_v34 = vld [vmem:[#allocation35_spill] sm:$0xff]  ;;  %v208_v55 = vmul.f32 %v3655_v8, %v4056_v61  ;;  %v5193_v8 = vld [vmem:[#allocation69_spill] sm:$0xff] }
 0x31f   :  { %v1770_v22 = vmul.f32 %v1696_v19, %v5185_v34  ;;  %v1771_v37 = vmul.f32 %v1697_v4, %v5185_v34 }
 0x322   :  { %1666 = vrot.lane.b32.xlu1 %v1661_v47, %s2817_s19  ;;  %1401 = vrot.lane.b32.xlu0 %v1397_v21, %s2817_s19  ;;  %v5186_v21 = vld [vmem:[#allocation36_spill] sm:$0xff] }
 0x323   :  { %v1800_v47 = vmul.f32 %v4021_v60, %v5186_v21 }
 0x326   :  { %1403 = vrot.lane.b32.xlu1 %v1398_v13, %s2817_s19  ;;  %1676 = vrot.lane.b32.xlu0 %v1672_v44, %s2817_s19  ;;  %v1801_v13 = vmul.f32 %v4028_v59, %v5186_v21  ;;  %v1812_v44 = vmul.f32 %v4021_v60, %v5187_v16 }
 0x32a   :  { %1678 = vrot.lane.b32.xlu1 %v1673_v40, %s2817_s19  ;;  %1688 = vrot.lane.b32.xlu0 %v1684_v35, %s2818_s25  ;;  %v4036_v40 = vld [vmem:[#allocation2 + $0x5] sm:$0xff] }
 0x32b   :  { %v5188_v35 = vld [vmem:[#allocation39_spill] sm:$0xff] }
 0x32c   :  { %v1838_v19 = vmul.f32 %v4036_v40, %v5188_v35 }
 0x32e   :  { %1690 = vrot.lane.b32.xlu1 %v1685_v17, %s2818_s25  ;;  %1702 = vrot.lane.b32.xlu0 %v1698_v41, %s2819_s27  ;;  %v4044_v17 = vld [vmem:[#allocation2 + $0xd] sm:$0xff]  ;;  %v5189_v41 = vld [vmem:[#allocation45_spill] sm:$0xff] }
 0x32f   :  { %v1839_v51 = vmul.f32 %v4044_v17, %v5188_v35  ;;  %v1886_v4 = vmul.f32 %v4036_v40, %v5189_v41  ;;  %v5196_v35 = vld [vmem:[#allocation58_spill] sm:$0xff] }
 0x332   :  { %1704 = vrot.lane.b32.xlu1 %v1699_v52, %s2819_s27  ;;  %1714 = vrot.lane.b32.xlu0 %v1710_v54, %s2819_s27  ;;  %v4052_v52 = vld [vmem:[#allocation2 + $0x6] sm:$0xff] }
 0x336   :  { %1716 = vrot.lane.b32.xlu1 %v1711_v31, %s2819_s27  ;;  %1726 = vrot.lane.b32.xlu0 %v1722_v48, %s2819_s27  ;;  %v1887_v31 = vmul.f32 %v4044_v17, %v5189_v41  ;;  %v1936_v48 = vmul.f32 %v4052_v52, %v5190_v58 }
 0x33a   :  { %1728 = vrot.lane.b32.xlu1 %v1723_v29, %s2819_s27  ;;  %1738 = vrot.lane.b32.xlu0 %v1734_v5, %s2820_s4  ;;  %v4064_v29 = vld [vmem:[#allocation2 + $0xe] sm:$0xff]  ;;  %v4070_v5 = vld [vmem:[#allocation2 + $0x18] sm:$0xff] }
 0x33b   :  { %v2034_v34 = vmul.f32 %v4070_v5, %v5193_v8 }
 0x33e   :  { %1740 = vrot.lane.b32.xlu1 %v1735_v53, %s2820_s4  ;;  %1750 = vrot.lane.b32.xlu0 %v1746_v20, %s2820_s4  ;;  %v1937_v20 = vmul.f32 %v4064_v29, %v5190_v58 }
 0x342   :  { %1752 = vrot.lane.b32.xlu1 %v1747_v62, %s2820_s4  ;;  %1762 = vrot.lane.b32.xlu0 %v1758_v7, %s2820_s4  ;;  %v5191_v62 = vld [vmem:[#allocation61_spill] sm:$0xff]  ;;  %v5192_v7 = vld [vmem:[#allocation42_spill] sm:$0xff] }
 0x343   :  { %v1984_v46 = vmul.f32 %v4052_v52, %v5191_v62  ;;  %v1985_v16 = vmul.f32 %v4064_v29, %v5191_v62 }
 0x346   :  { %1764 = vrot.lane.b32.xlu1 %v1759_v50, %s2820_s4  ;;  %1774 = vrot.lane.b32.xlu0 %v1770_v22, %s2820_s4  ;;  %v238_v50 = vadd.f32 %v5192_v7, %v208_v55  ;;  %v209_v22 = vmul.f32 %v3666_v11, %v4056_v61  ;;  %v5197_v11 = vld [vmem:[#allocation52_spill] sm:$0xff] }
 0x34a   :  { %1776 = vrot.lane.b32.xlu1 %v1771_v37, %s2820_s4  ;;  %1804 = vrot.lane.b32.xlu0 %v1800_v47, %s2813_s3  ;;  %v5194_v37 = vld [vmem:[#allocation50_spill] sm:$0xff] }
 0x34b   :  { %v292_v21 = vadd.f32 %v5194_v37, %v238_v50  ;;  %v5201_v50 = vld [vmem:[#allocation74_spill] sm:$0xff] }
 0x34c   :  { %v4112_v37 = vld [vmem:[#allocation2 + $0x1a] sm:$0xff] }
 0x34d   :  { %5202 = vst [vmem:[#allocation155_spill] sm:$0xff] %v4112_v37 }
 0x34e   :  { %1806 = vrot.lane.b32.xlu1 %v1801_v13, %s2813_s3  ;;  %1816 = vrot.lane.b32.xlu0 %v1812_v44, %s2813_s3  ;;  %v5195_v44 = vld [vmem:[#allocation44_spill] sm:$0xff] }
 0x352   :  { %1818 = vrot.lane.b32.xlu1 %v1813_v28, %s2813_s3  ;;  %1842 = vrot.lane.b32.xlu0 %v1838_v19, %s2812_s1  ;;  %v239_v28 = vadd.f32 %v5195_v44, %v209_v22  ;;  %v344_v19 = vadd.f32 %v5196_v35, %v292_v21  ;;  %v5203_v21 = vld [vmem:[#allocation68_spill] sm:$0xff]  ;;  %v5204_v44 = vld [vmem:[#allocation82_spill] sm:$0xff] }
 0x354   :  { %v293_v41 = vadd.f32 %v5197_v11, %v239_v28  ;;  %v5206_v11 = vld [vmem:[#allocation85_spill] sm:$0xff] }
 0x356   :  { %1844 = vrot.lane.b32.xlu1 %v1839_v51, %s2812_s1  ;;  %1890 = vrot.lane.b32.xlu0 %v1886_v4, %s2814_s8  ;;  %v4096_v51 = vld [vmem:[#allocation2 + $0x20] sm:$0xff] }
 0x357   :  { %v5198_v4 = vld [vmem:[#allocation66_spill] sm:$0xff]  ;;  %v2035_v55 = vmul.f32 %v4096_v51, %v5193_v8 }
 0x358   :  { %v4058_v54 = vpop.permute.xlu0 %1492 }
 0x35a   :  { %1892 = vrot.lane.b32.xlu1 %v1887_v31, %s2814_s8  ;;  %1940 = vrot.lane.b32.xlu0 %v1936_v48, %s2816_s16  ;;  %v398_v31 = vadd.f32 %v5198_v4, %v344_v19  ;;  %v5207_v4 = vld [vmem:[#allocation76_spill] sm:$0xff] }
 0x35c   :  { %v4072_v53 = vpop.permute.xlu1 %1494  ;;  %v4074_v3 = vpop.permute.xlu0 %1504  ;;  %v450_v22 = vadd.f32 %v5201_v50, %v398_v31 }
 0x35e   :  { %1942 = vrot.lane.b32.xlu1 %v1937_v20, %s2816_s16  ;;  %1988 = vrot.lane.b32.xlu0 %v1984_v46, %s2817_s19  ;;  %v5199_v20 = vld [vmem:[#allocation77_spill] sm:$0xff]  ;;  %v5200_v46 = vld [vmem:[#allocation60_spill] sm:$0xff]  ;;  %v504_v28 = vadd.f32 %v5204_v44, %v450_v22 }
 0x35f   :  { %v2082_v62 = vmul.f32 %v4070_v5, %v5199_v20  ;;  %v345_v7 = vadd.f32 %v5200_v46, %v293_v41  ;;  %v2083_v19 = vmul.f32 %v4096_v51, %v5199_v20  ;;  %v2150_v41 = vmul.f32 %v4112_v37, %v5206_v11  ;;  %v5209_v46 = vld [vmem:[#allocation84_spill] sm:$0xff] }
 0x360   :  { %v4088_v47 = vpop.permute.xlu1 %1506  ;;  %v4090_v13 = vpop.permute.xlu0 %1516 }
 0x362   :  { %1990 = vrot.lane.b32.xlu1 %v1985_v16, %s2817_s19  ;;  %2038 = vrot.lane.b32.xlu0 %v2034_v34, %s2819_s27  ;;  %v4114_v34 = vstv %s2636_s22  ;;  %v399_v16 = vadd.f32 %v5203_v21, %v345_v7 }
 0x364   :  { %v4102_v58 = vpop.permute.xlu1 %1518  ;;  %v4104_v48 = vpop.permute.xlu0 %1530  ;;  %v451_v31 = vadd.f32 %v5207_v4, %v399_v16  ;;  %v5210_v16 = vld [vmem:[#allocation93_spill] sm:$0xff] }
 0x365   :  { %v2198_v44 = vmul.f32 %v4112_v37, %v5210_v16 }
 0x366   :  { %2040 = vrot.lane.b32.xlu1 %v2035_v55, %s2819_s27  ;;  %2086 = vrot.lane.b32.xlu0 %v2082_v62, %s2820_s4  ;;  %v548_v55 = vmul.f32 %v3704_v63, %v4114_v34  ;;  %v4131_v62 = vld [vmem:[#allocation2 + $0x22] sm:$0xff]  ;;  %v505_v7 = vadd.f32 %v5209_v46, %v451_v31 }
 0x367   :  { %5208 = vst [vmem:[#allocation158_spill] sm:$0xff] %v4131_v62  ;;  %v2151_v21 = vmul.f32 %v4131_v62, %v5206_v11  ;;  %v5211_v63 = vld [vmem:[#allocation90_spill] sm:$0xff]  ;;  %v2199_v46 = vmul.f32 %v4131_v62, %v5210_v16 }
 0x368   :  { %v4120_v8 = vpop.permute.xlu1 %1532  ;;  %v4122_v35 = vpop.permute.xlu0 %1542  ;;  %v550_v50 = vadd.f32 %v548_v55, %v504_v28  ;;  %v4178_v62 = vld [vmem:[#allocation2 + $0x1c] sm:$0xff] }
 0x369   :  { %5205 = vst [vmem:[#allocation170_spill] sm:$0xff] %v4120_v8  ;;  %5224 = vst [vmem:[#allocation166_spill] sm:$0xff] %v4178_v62  ;;  %v5244_v8 = vld [vmem:[#allocation176_spill] sm:$0xff] }
 0x36a   :  { %2088 = vrot.lane.b32.xlu1 %v2083_v19, %s2820_s4  ;;  %2154 = vrot.lane.b32.xlu0 %v2150_v41, %s2812_s1  ;;  %v578_v4 = vadd.f32 %v5211_v63, %v550_v50  ;;  %v549_v19 = vmul.f32 %v3720_v12, %v4114_v34  ;;  %v5213_v41 = vld [vmem:[#allocation98_spill] sm:$0xff]  ;;  %v5214_v50 = vld [vmem:[#allocation101_spill] sm:$0xff]  ;;  %v5215_v63 = vld [vmem:[#allocation92_spill] sm:$0xff] }
 0x36b   :  { %v2248_v12 = vmul.f32 %v4147_v45, %v5214_v50 }
 0x36c   :  { %v4136_v22 = vpop.permute.xlu1 %1544  ;;  %v4138_v20 = vpop.permute.xlu0 %1554  ;;  %v551_v28 = vadd.f32 %v549_v19, %v505_v7  ;;  %v632_v31 = vadd.f32 %v5213_v41, %v578_v4  ;;  %v5218_v7 = vld [vmem:[#allocation100_spill] sm:$0xff]  ;;  %v5219_v4 = vld [vmem:[#allocation114_spill] sm:$0xff] }
 0x36e   :  { %2156 = vrot.lane.b32.xlu1 %v2151_v21, %s2812_s1  ;;  %2202 = vrot.lane.b32.xlu0 %v2198_v44, %s2814_s8  ;;  %v579_v1 = vadd.f32 %v5215_v63, %v551_v28  ;;  %v684_v24 = vadd.f32 %v5216_v42, %v632_v31  ;;  %v4162_v21 = vld [vmem:[#allocation2 + $0x23] sm:$0xff]  ;;  %v5221_v28 = vld [vmem:[#allocation109_spill] sm:$0xff]  ;;  %v5222_v31 = vld [vmem:[#allocation108_spill] sm:$0xff] }
 0x36f   :  { %5217 = vst [vmem:[#allocation178_spill] sm:$0xff] %v4162_v21  ;;  %v2249_v10 = vmul.f32 %v4162_v21, %v5214_v50  ;;  %v2296_v42 = vmul.f32 %v4147_v45, %v5221_v28 }
 0x370   :  { %v4152_v55 = vpop.permute.xlu1 %1556  ;;  %v4154_v11 = vpop.permute.xlu0 %1566  ;;  %v633_v44 = vadd.f32 %v5218_v7, %v579_v1  ;;  %v738_v19 = vadd.f32 %v5219_v4, %v684_v24  ;;  %v5226_v24 = vld [vmem:[#allocation116_spill] sm:$0xff] }
 0x371   :  { %v5227_v7 = vld [vmem:[#allocation132_spill] sm:$0xff] }
 0x372   :  { %2204 = vrot.lane.b32.xlu1 %v2199_v46, %s2814_s8  ;;  %2252 = vrot.lane.b32.xlu0 %v2248_v12, %s2816_s16  ;;  %v685_v63 = vadd.f32 %v5222_v31, %v633_v44  ;;  %v790_v46 = vadd.f32 %v5223_v26, %v738_v19  ;;  %v4180_v12 = vstv %s2664_s26  ;;  %v2297_v44 = vmul.f32 %v4162_v21, %v5221_v28  ;;  %v5229_v26 = vld [vmem:[#allocation117_spill] sm:$0xff]  ;;  %v5230_v31 = vld [vmem:[#allocation124_spill] sm:$0xff] }
 0x373   :  { %5225 = vst [vmem:[#allocation171_spill] sm:$0xff] %v4180_v12  ;;  %v2346_v19 = vmul.f32 %v4178_v62, %v5229_v26 }
 0x374   :  { %v4168_v41 = vpop.permute.xlu1 %1568  ;;  %v4170_v16 = vpop.permute.xlu0 %1578  ;;  %v739_v1 = vadd.f32 %v5226_v24, %v685_v63  ;;  %v844_v4 = vadd.f32 %v5227_v7, %v790_v46  ;;  %v5232_v63 = vld [vmem:[#allocation134_spill] sm:$0xff] }
 0x375   :  { %5220 = vst [vmem:[#allocation151_spill] sm:$0xff] %v4170_v16  ;;  %v4244_v16 = vstv %s2692_s28 }
 0x376   :  { %2254 = vrot.lane.b32.xlu1 %v2249_v10, %s2816_s16  ;;  %2300 = vrot.lane.b32.xlu0 %v2296_v42, %s2817_s19  ;;  %v791_v45 = vadd.f32 %v5230_v31, %v739_v1  ;;  %v888_v10 = vmul.f32 %v4180_v12, %v3229_v25  ;;  %v4197_v42 = vld [vmem:[#allocation2 + $0x24] sm:$0xff]  ;;  %v5233_v1 = vld [vmem:[#allocation125_spill] sm:$0xff]  ;;  %5245 = vst [vmem:[#allocation127_spill] sm:$0xff] %v4244_v16 }
 0x377   :  { %5231 = vst [vmem:[#allocation174_spill] sm:$0xff] %v4197_v42  ;;  %v2347_v21 = vmul.f32 %v4197_v42, %v5229_v26  ;;  %v2394_v31 = vmul.f32 %v4178_v62, %v5233_v1  ;;  %v5234_v25 = vld [vmem:[#allocation141_spill] sm:$0xff]  ;;  %v5239_v62 = vld [vmem:[#allocation160_spill] sm:$0xff] }
 0x378   :  { %v4186_v50 = vpop.permute.xlu1 %1580  ;;  %v4188_v37 = vpop.permute.xlu0 %1590  ;;  %v845_v46 = vadd.f32 %v5232_v63, %v791_v45  ;;  %v890_v24 = vadd.f32 %v888_v10, %v844_v4  ;;  %v5236_v4 = vld [vmem:[#allocation152_spill] sm:$0xff]  ;;  %v2395_v63 = vmul.f32 %v4197_v42, %v5233_v1 }
 0x379   :  { %5228 = vst [vmem:[#allocation159_spill] sm:$0xff] %v4186_v50 }
 0x37a   :  { %2302 = vrot.lane.b32.xlu1 %v2297_v44, %s2817_s19  ;;  %2350 = vrot.lane.b32.xlu0 %v2346_v19, %s2819_s27  ;;  %v918_v27 = vadd.f32 %v5234_v25, %v890_v24  ;;  %v889_v44 = vmul.f32 %v4180_v12, %v3242_v56  ;;  %v5237_v24 = vld [vmem:[#allocation135_spill] sm:$0xff] }
 0x37b   :  { %v2462_v56 = vmul.f32 %v4213_v18, %v5237_v24  ;;  %v5238_v25 = vld [vmem:[#allocation143_spill] sm:$0xff] }
 0x37c   :  { %v4202_v7 = vpop.permute.xlu1 %1592  ;;  %v4204_v28 = vpop.permute.xlu0 %1602  ;;  %v891_v45 = vadd.f32 %v889_v44, %v845_v46  ;;  %v972_v19 = vadd.f32 %v5236_v4, %v918_v27  ;;  %v5240_v27 = vld [vmem:[#allocation153_spill] sm:$0xff] }
 0x37e   :  { %2352 = vrot.lane.b32.xlu1 %v2347_v21, %s2819_s27  ;;  %2398 = vrot.lane.b32.xlu0 %v2394_v31, %s2820_s4  ;;  %v919_v12 = vadd.f32 %v5238_v25, %v891_v45  ;;  %v1024_v50 = vadd.f32 %v5239_v62, %v972_v19  ;;  %v4228_v21 = vld [vmem:[#allocation2 + $0x26] sm:$0xff]  ;;  %v5241_v31 = vld [vmem:[#allocation168_spill] sm:$0xff]  ;;  %v5243_v19 = vld [vmem:[#allocation161_spill] sm:$0xff] }
 0x37f   :  { %v2463_v42 = vmul.f32 %v4228_v21, %v5237_v24  ;;  %v5242_v45 = vld [vmem:[#allocation144_spill] sm:$0xff] }
 0x380   :  { %v4218_v10 = vpop.permute.xlu1 %1604  ;;  %v4220_v26 = vpop.permute.xlu0 %1616  ;;  %v973_v46 = vadd.f32 %v5240_v27, %v919_v12  ;;  %v1078_v44 = vadd.f32 %v5241_v31, %v1024_v50  ;;  %v2510_v62 = vmul.f32 %v4213_v18, %v5242_v45  ;;  %v5246_v12 = vld [vmem:[#allocation169_spill] sm:$0xff]  ;;  %v2511_v18 = vmul.f32 %v4228_v21, %v5242_v45 }
 0x382   :  { %2400 = vrot.lane.b32.xlu1 %v2395_v63, %s2820_s4  ;;  %2466 = vrot.lane.b32.xlu0 %v2462_v56, %s2812_s1  ;;  %v1025_v25 = vadd.f32 %v5243_v19, %v973_v46  ;;  %v1130_v63 = vadd.f32 %v5244_v8, %v1078_v44  ;;  %v5247_v56 = vld [vmem:[#allocation185_spill] sm:$0xff]  ;;  %v5248_v46 = vld [vmem:[#allocation38_spill] sm:$0xff] }
 0x383   :  { %v1824_v8 = vmul.f32 %v4021_v60, %v5248_v46  ;;  %v5249_v44 = vld [vmem:[#allocation177_spill] sm:$0xff]  ;;  %v1825_v45 = vmul.f32 %v4028_v59, %v5248_v46 }
 0x384   :  { %v4234_v4 = vpop.permute.xlu1 %1618  ;;  %v4236_v1 = vpop.permute.xlu0 %1628  ;;  %v1079_v50 = vadd.f32 %v5246_v12, %v1025_v25  ;;  %v1184_v27 = vadd.f32 %v5247_v56, %v1130_v63  ;;  %v5250_v56 = vld [vmem:[#allocation41_spill] sm:$0xff] }
 0x385   :  { %v1863_v46 = vmul.f32 %v4044_v17, %v5250_v56 }
 0x386   :  { %2468 = vrot.lane.b32.xlu1 %v2463_v42, %s2812_s1  ;;  %2514 = vrot.lane.b32.xlu0 %v2510_v62, %s2814_s8  ;;  %v1131_v19 = vadd.f32 %v5249_v44, %v1079_v50  ;;  %v1228_v42 = vmul.f32 %v4244_v16, %v5118_v14  ;;  %v1862_v50 = vmul.f32 %v4036_v40, %v5250_v56  ;;  %s2821_s1 = smov [#allocation8]  }
 0x387   :  { %v1229_v14 = vmul.f32 %v4244_v16, %v5123_v57 }
 0x388   :  { %v4250_v31 = vpop.permute.xlu1 %1630  ;;  %v4252_v24 = vpop.permute.xlu0 %1640  ;;  %v1185_v62 = vadd.f32 %v3671_v38, %v1131_v19  ;;  %v1230_v25 = vadd.f32 %v1228_v42, %v1184_v27  ;;  %v5251_v19 = vld [vmem:[#allocation43_spill] sm:$0xff] }
 0x389   :  { %v1875_v56 = vmul.f32 %v4044_v17, %v5251_v19 }
 0x38a   :  { %2516 = vrot.lane.b32.xlu1 %v2511_v18, %s2814_s8  ;;  %1828 = vrot.lane.b32.xlu0 %v1824_v8, %s2813_s3  ;;  %v1258_v44 = vadd.f32 %v3715_v43, %v1230_v25  ;;  %v1231_v38 = vadd.f32 %v1229_v14, %v1185_v62  ;;  %v1874_v43 = vmul.f32 %v4036_v40, %v5251_v19 }
 0x38c   :  { %v4264_v63 = vpop.permute.xlu1 %1642  ;;  %v4266_v12 = vpop.permute.xlu0 %1652  ;;  %v1312_v18 = vadd.f32 %v3769_v9, %v1258_v44  ;;  %v1259_v42 = vadd.f32 %v3728_v39, %v1231_v38 }
 0x38e   :  { %1830 = vrot.lane.b32.xlu1 %v1825_v45, %s2813_s3  ;;  %1866 = vrot.lane.b32.xlu0 %v1862_v50, %s2814_s8  ;;  %v1364_v57 = vadd.f32 %v3813_v36, %v1312_v18  ;;  %v1313_v9 = vadd.f32 %v3780_v49, %v1259_v42  ;;  %v5252_v50 = vld [vmem:[#allocation49_spill] sm:$0xff] }
 0x38f   :  { %v1910_v44 = vmul.f32 %v4036_v40, %v5252_v50  ;;  %v1911_v18 = vmul.f32 %v4044_v17, %v5252_v50 }
 0x390   :  { %v4278_v27 = vpop.permute.xlu1 %1654  ;;  %v4280_v8 = vpop.permute.xlu0 %1664  ;;  %v1387_v62 = vadd.f32 %v3839_v30, %v1364_v57  ;;  %v1365_v39 = vadd.f32 %v3823_v23, %v1313_v9  ;;  %v5254_v9 = vld [vmem:[#allocation57_spill] sm:$0xff] }
 0x391   :  { %v1961_v50 = vmul.f32 %v4064_v29, %v5254_v9 }
 0x392   :  { %1868 = vrot.lane.b32.xlu1 %v1863_v46, %s2814_s8  ;;  %1878 = vrot.lane.b32.xlu0 %v1874_v43, %s2814_s8  ;;  %v1388_v49 = vadd.f32 %v3841_v0, %v1365_v39  ;;  %v5253_v46 = vld [vmem:[#allocation51_spill] sm:$0xff] }
 0x393   :  { %v1924_v19 = vmul.f32 %v4052_v52, %v5253_v46  ;;  %v1925_v57 = vmul.f32 %v4064_v29, %v5253_v46 }
 0x394   :  { %v4292_v25 = vpop.permute.xlu1 %1666  ;;  %v1402_v45 = vpop.permute.xlu0 %1401 }
 0x395   :  { %v1407_v36 = vadd.f32 %v1402_v45, %v1387_v62  ;;  %v1960_v62 = vmul.f32 %v4052_v52, %v5254_v9  ;;  %v5257_v9 = vld [vmem:[#allocation181_spill] sm:$0xff] }
 0x396   :  { %1880 = vrot.lane.b32.xlu1 %v1875_v56, %s2814_s8  ;;  %1914 = vrot.lane.b32.xlu0 %v1910_v44, %s2815_s13  ;;  %v5255_v44 = vld [vmem:[#allocation59_spill] sm:$0xff] }
 0x397   :  { %v2706_v14 = vmul.f32 -1.442695, %v1407_v36  ;;  %v1972_v39 = vmul.f32 %v4052_v52, %v5255_v44  ;;  %v1472_v36 = vmul.f32 %v3850_v33, %v4056_v61 }
 0x398   :  { %v1404_v30 = vpop.permute.xlu1 %1403  ;;  %v4302_v38 = vpop.permute.xlu0 %1676 }
 0x399   :  { %2725 = vpow2.f32 %v2706_v14  ;;  %v1408_v43 = vadd.f32 %v1404_v30, %v1388_v49  ;;  %v1498_v14 = vadd.f32 %v4058_v54, %v1472_v36  ;;  %v1477_v54 = vmul.f32 %v3860_v6, %v5257_v9 }
 0x39a   :  { %1916 = vrot.lane.b32.xlu1 %v1911_v18, %s2815_s13  ;;  %1928 = vrot.lane.b32.xlu0 %v1924_v19, %s2816_s16  ;;  %v1973_v19 = vmul.f32 %v4064_v29, %v5255_v44  ;;  %v1481_v44 = vmul.f32 %v3860_v6, %v3858_v32 }
 0x39b   :  { %v2707_v23 = vmul.f32 -1.442695, %v1408_v43  ;;  %v5256_v43 = vld [vmem:[#allocation65_spill] sm:$0xff] }
 0x39c   :  { %v4310_v42 = vpop.permute.xlu1 %1678  ;;  %v1689_v0 = vpop.permute.xlu0 %1688 }
 0x39d   :  { %2727 = vpow2.f32 %v2707_v23  ;;  %v2010_v23 = vmul.f32 %v4070_v5, %v5256_v43 }
 0x39e   :  { %1930 = vrot.lane.b32.xlu1 %v1925_v57, %s2816_s16  ;;  %1964 = vrot.lane.b32.xlu0 %v1960_v62, %s2817_s19  ;;  %v1473_v57 = vmul.f32 %v3860_v6, %v4056_v61  ;;  %v1476_v62 = vmul.f32 %v3850_v33, %v5257_v9  ;;  %v1485_v9 = vmul.f32 %v3860_v6, %v3664_v2 }
 0x39f   :  { %v1511_v6 = vadd.f32 %v4088_v47, %v1477_v54 }
 0x3a0   :  { %v4318_v45 = vpop.permute.xlu1 %1690  ;;  %v4320_v56 = vpop.permute.xlu0 %1702  ;;  %v1499_v36 = vadd.f32 %v4072_v53, %v1473_v57 }
 0x3a1   :  { %v1561_v47 = vadd.f32 %v4152_v55, %v1511_v6  ;;  %v1523_v55 = vadd.f32 %v4102_v58, %v1481_v44  ;;  %v5260_v44 = vld [vmem:[#allocation151_spill] sm:$0xff] }
 0x3a2   :  { %1966 = vrot.lane.b32.xlu1 %v1961_v50, %s2817_s19  ;;  %1976 = vrot.lane.b32.xlu0 %v1972_v39, %s2817_s19  ;;  %v1548_v50 = vadd.f32 %v4122_v35, %v1498_v14  ;;  %v1480_v39 = vmul.f32 %v3850_v33, %v3858_v32  ;;  %v1484_v35 = vmul.f32 %v3850_v33, %v3664_v2 }
 0x3a3   :  { %v2726_v49 = vpop.eup %2725  ;;  %v1784_v2 = vmul.f32 %v4021_v60, %v4114_v34  ;;  %v1573_v58 = vadd.f32 %v4168_v41, %v1523_v55  ;;  %v5262_v41 = vld [vmem:[#allocation170_spill] sm:$0xff] }
 0x3a4   :  { %v1415_v30 = vadd.f32 1.0, %v2726_v49  ;;  %v4331_v18 = vpop.permute.xlu1 %1704  ;;  %v4333_v46 = vpop.permute.xlu0 %1714  ;;  %v1510_v49 = vadd.f32 %v4074_v3, %v1476_v62  ;;  %v1596_v14 = vadd.f32 %v4188_v37, %v1548_v50  ;;  %v1549_v3 = vadd.f32 %v4136_v22, %v1499_v36 }
 0x3a5   :  { %v1788_v22 = vmul.f32 %v4021_v60, %v3691_v15  ;;  %v1789_v36 = vmul.f32 %v4028_v59, %v3691_v15 }
 0x3a6   :  { %2729 = vrcp.f32 %v1415_v30  ;;  %1978 = vrot.lane.b32.xlu1 %v1973_v19, %s2817_s19  ;;  %2014 = vrot.lane.b32.xlu0 %v2010_v23, %s2819_s27  ;;  %v2011_v19 = vmul.f32 %v4096_v51, %v5256_v43  ;;  %v5258_v23 = vld [vmem:[#allocation67_spill] sm:$0xff]  ;;  %v1560_v33 = vadd.f32 %v4138_v20, %v1510_v49  ;;  %v1646_v37 = vadd.f32 %v4252_v24, %v1596_v14 }
 0x3a7   :  { %v2728_v61 = vpop.eup %2727  ;;  %v2022_v53 = vmul.f32 %v4070_v5, %v5258_v23  ;;  %v1785_v43 = vmul.f32 %v4028_v59, %v4114_v34  ;;  %v1522_v20 = vadd.f32 %v4090_v13, %v1480_v39  ;;  %v1597_v24 = vadd.f32 %v4202_v7, %v1549_v3 }
 0x3a8   :  { %v1416_v16 = vadd.f32 1.0, %v2728_v61  ;;  %v4359_v32 = vpop.permute.xlu1 %1716  ;;  %v4361_v30 = vpop.permute.xlu0 %1726  ;;  %v1608_v57 = vadd.f32 %v4204_v28, %v1560_v33  ;;  %v1694_v62 = vadd.f32 %v1689_v0, %v1646_v37  ;;  %v2023_v54 = vmul.f32 %v4096_v51, %v5258_v23  ;;  %v5259_v61 = vld [vmem:[#allocation73_spill] sm:$0xff]  ;;  %v5261_v23 = vld [vmem:[#allocation75_spill] sm:$0xff] }
 0x3a9   :  { %v2058_v34 = vmul.f32 %v4070_v5, %v5259_v61  ;;  %v1572_v13 = vadd.f32 %v4154_v11, %v1522_v20  ;;  %v1647_v7 = vadd.f32 %v4264_v63, %v1597_v24  ;;  %v1536_v39 = vadd.f32 %v4104_v48, %v1484_v35  ;;  %v4412_v33 = vld [vmem:[#allocation2 + $0x19] sm:$0xff] }
 0x3aa   :  { %2731 = vrcp.f32 %v1416_v16  ;;  %2016 = vrot.lane.b32.xlu1 %v2011_v19, %s2819_s27  ;;  %2026 = vrot.lane.b32.xlu0 %v2022_v53, %s2819_s27  ;;  %v1658_v28 = vadd.f32 %v4266_v12, %v1608_v57  ;;  %v1609_v49 = vadd.f32 %v4218_v10, %v1561_v47  ;;  %v2059_v19 = vmul.f32 %v4096_v51, %v5259_v61  ;;  %v5265_v61 = vld [vmem:[#allocation145_spill] sm:$0xff] }
 0x3ab   :  { %v1622_v15 = vadd.f32 %v4220_v26, %v1572_v13  ;;  %v1695_v11 = vadd.f32 %v4318_v45, %v1647_v7  ;;  %v1584_v48 = vadd.f32 %v5260_v44, %v1536_v39  ;;  %v2070_v53 = vmul.f32 %v4070_v5, %v5261_v23  ;;  %v4435_v13 = vld [vmem:[#allocation2 + $0x21] sm:$0xff] }
 0x3ac   :  { %v4383_v16 = vpop.permute.xlu1 %1728  ;;  %v1739_v50 = vpop.permute.xlu0 %1738  ;;  %v1708_v63 = vadd.f32 %v4320_v56, %v1658_v28  ;;  %v1659_v26 = vadd.f32 %v4278_v27, %v1609_v49  ;;  %v1537_v37 = vadd.f32 %v5262_v41, %v1485_v9 }
 0x3ad   :  { %v1744_v0 = vadd.f32 %v1739_v50, %v1694_v62  ;;  %v1670_v45 = vadd.f32 %v4280_v8, %v1622_v15  ;;  %v1634_v6 = vadd.f32 %v4236_v1, %v1584_v48  ;;  %v5263_v62 = vld [vmem:[#allocation159_spill] sm:$0xff]  ;;  %v5264_v1 = vld [vmem:[#allocation81_spill] sm:$0xff] }
 0x3ae   :  { %2028 = vrot.lane.b32.xlu1 %v2023_v54, %s2819_s27  ;;  %2062 = vrot.lane.b32.xlu0 %v2058_v34, %s2820_s4  ;;  %v1709_v27 = vadd.f32 %v4331_v18, %v1659_v26  ;;  %v1585_v47 = vadd.f32 %v5263_v62, %v1537_v37  ;;  %v2124_v54 = vmul.f32 %v4412_v33, %v5264_v1  ;;  %v5266_v15 = vld [vmem:[#allocation83_spill] sm:$0xff] }
 0x3af   :  { %v4402_v14 = vadd.f32 %v1784_v2, %v1744_v0  ;;  %v1623_v2 = vadd.f32 %v4234_v4, %v1573_v58  ;;  %v1720_v8 = vadd.f32 %v4333_v46, %v1670_v45  ;;  %v2071_v4 = vmul.f32 %v4096_v51, %v5261_v23  ;;  %v5271_v37 = vld [vmem:[#allocation91_spill] sm:$0xff] }
 0x3b0   :  { %v2730_v12 = vpop.eup %2729  ;;  %v1741_v35 = vpop.permute.xlu1 %1740  ;;  %v1792_v18 = vmul.f32 %v4021_v60, %v5265_v61  ;;  %v1635_v7 = vadd.f32 %v4250_v31, %v1585_v47  ;;  %v2125_v49 = vmul.f32 %v4435_v13, %v5264_v1  ;;  %v2136_v31 = vmul.f32 %v4412_v33, %v5266_v15 }
 0x3b1   :  { %v1751_v10 = vpop.permute.xlu0 %1750  ;;  %v1745_v56 = vadd.f32 %v1741_v35, %v1695_v11  ;;  %1422 = vst.msk [vmem:[#allocation8] sm:$0xff] %vm1421_vm6, %v2730_v12  ;;  %v1671_v46 = vadd.f32 %v4292_v25, %v1623_v2  ;;  %v5267_v11 = vld [vmem:[#allocation186_spill] sm:$0xff] }
 0x3b2   :  { %v1756_v3 = vadd.f32 %v1751_v10, %v1708_v63  ;;  %2064 = vrot.lane.b32.xlu1 %v2059_v19, %s2820_s4  ;;  %2074 = vrot.lane.b32.xlu0 %v2070_v53, %s2820_s4  ;;  %v1796_v63 = vmul.f32 %v4021_v60, %v5267_v11  ;;  %v1683_v12 = vadd.f32 %v4310_v42, %v1635_v7  ;;  %v5268_v42 = vld [vmem:[#allocation89_spill] sm:$0xff]  ;;  %v5269_v19 = vld [vmem:[#allocation155_spill] sm:$0xff] }
 0x3b3   :  { %v4422_v20 = vadd.f32 %v1785_v43, %v1745_v56  ;;  %v1682_v43 = vadd.f32 %v4302_v38, %v1634_v6  ;;  %v1721_v28 = vadd.f32 %v4359_v32, %v1671_v46  ;;  %v2137_v60 = vmul.f32 %v4435_v13, %v5266_v15 }
 0x3b4   :  { %v4424_v24 = vadd.f32 %v1788_v22, %v1756_v3  ;;  %v2732_v57 = vpop.eup %2731  ;;  %v1753_v9 = vpop.permute.xlu1 %1752  ;;  %v2174_v23 = vmul.f32 %v5269_v19, %v5268_v42  ;;  %v1797_v26 = vmul.f32 %v4028_v59, %v5267_v11  ;;  %v5270_v3 = vld [vmem:[#allocation158_spill] sm:$0xff]  ;;  %v2186_v2 = vmul.f32 %v5269_v19, %v5271_v37 }
 0x3b5   :  { %v1763_v50 = vpop.permute.xlu0 %1762  ;;  %v1757_v22 = vadd.f32 %v1753_v9, %v1709_v27  ;;  %1423 = vst.msk [vmem:[#allocation8 + $0x8] sm:$0xff] %vm1421_vm6, %v2732_v57  ;;  %v1732_v0 = vadd.f32 %v4361_v30, %v1682_v43  ;;  %v1793_v30 = vmul.f32 %v4028_v59, %v5265_v61  ;;  %v2175_v41 = vmul.f32 %v5270_v3, %v5268_v42  ;;  %v5276_v43 = vld [vmem:[#allocation105_spill] sm:$0xff]  ;;  %v5279_v11 = vld [vmem:[#allocation166_spill] sm:$0xff] }
 0x3b6   :  { %v1768_v34 = vadd.f32 %v1763_v50, %v1720_v8  ;;  %2076 = vrot.lane.b32.xlu1 %v2071_v4, %s2820_s4  ;;  %2128 = vrot.lane.b32.xlu0 %v2124_v54, %s2813_s3  ;;  %v2187_v27 = vmul.f32 %v5270_v3, %v5271_v37  ;;  %v5272_v8 = vld [vmem:[#allocation97_spill] sm:$0xff]  ;;  %v5273_v50 = vld [vmem:[#allocation99_spill] sm:$0xff] }
 0x3b7   :  { %v4443_v55 = vadd.f32 %v1789_v36, %v1757_v22  ;;  %v1733_v36 = vadd.f32 %v4383_v16, %v1683_v12  ;;  %v2222_v57 = vmul.f32 %v5269_v19, %v5272_v8  ;;  %v2223_v9 = vmul.f32 %v5270_v3, %v5272_v8  ;;  %v5274_v4 = vld [vmem:[#allocation163_spill] sm:$0xff] }
 0x3b8   :  { %v4445_v25 = vadd.f32 %v1792_v18, %v1768_v34  ;;  %v1765_v38 = vpop.permute.xlu1 %1764  ;;  %v2236_v1 = vmul.f32 %v5274_v4, %v5273_v50  ;;  %v5275_v18 = vld [vmem:[#allocation178_spill] sm:$0xff]  ;;  %v2272_v22 = vmul.f32 %v5274_v4, %v5276_v43 }
 0x3b9   :  { %v1775_v39 = vpop.permute.xlu0 %1774  ;;  %v1769_v32 = vadd.f32 %v1765_v38, %v1721_v28  ;;  %v2237_v46 = vmul.f32 %v5275_v18, %v5273_v50  ;;  %v2273_v28 = vmul.f32 %v5275_v18, %v5276_v43 }
 0x3ba   :  { %v1780_v58 = vadd.f32 %v1775_v39, %v1732_v0  ;;  %2130 = vrot.lane.b32.xlu1 %v2125_v49, %s2813_s3  ;;  %2140 = vrot.lane.b32.xlu0 %v2136_v31, %s2813_s3  ;;  %v5277_v0 = vld [vmem:[#allocation107_spill] sm:$0xff]  ;;  %v5278_v31 = vld [vmem:[#allocation113_spill] sm:$0xff] }
 0x3bb   :  { %v4459_v48 = vadd.f32 %v1793_v30, %v1769_v32  ;;  %v2284_v38 = vmul.f32 %v5274_v4, %v5277_v0  ;;  %v2285_v15 = vmul.f32 %v5275_v18, %v5277_v0 }
 0x3bc   :  { %v1798_v44 = vadd.f32 %v1796_v63, %v1780_v58  ;;  %v1777_v35 = vpop.permute.xlu1 %1776  ;;  %v2322_v63 = vmul.f32 %v5279_v11, %v5278_v31 }
 0x3bd   :  { %v4461_v10 = vpop.permute.xlu0 %1804  ;;  %v1781_v53 = vadd.f32 %v1777_v35, %v1733_v36  ;;  %v5280_v36 = vld [vmem:[#allocation174_spill] sm:$0xff] }
 0x3be   :  { %2142 = vrot.lane.b32.xlu1 %v2137_v60, %s2813_s3  ;;  %2178 = vrot.lane.b32.xlu0 %v2174_v23, %s2814_s8  ;;  %v2323_v35 = vmul.f32 %v5280_v36, %v5278_v31  ;;  %v5281_v60 = vld [vmem:[#allocation115_spill] sm:$0xff] }
 0x3bf   :  { %v1799_v16 = vadd.f32 %v1797_v26, %v1781_v53  ;;  %v2334_v42 = vmul.f32 %v5279_v11, %v5281_v60  ;;  %v4541_v31 = vld [vmem:[#allocation2 + $0x25] sm:$0xff] }
 0x3c0   :  { %v4471_v45 = vpop.permute.xlu1 %1806 }
 0x3c1   :  { %v4473_v56 = vpop.permute.xlu0 %1816 }
 0x3c2   :  { %2180 = vrot.lane.b32.xlu1 %v2175_v41, %s2814_s8  ;;  %2190 = vrot.lane.b32.xlu0 %v2186_v2, %s2814_s8  ;;  %v2335_v2 = vmul.f32 %v5280_v36, %v5281_v60 }
 0x3c4   :  { %v4481_v59 = vpop.permute.xlu1 %1818 }
 0x3c5   :  { %v1843_v6 = vpop.permute.xlu0 %1842 }
 0x3c6   :  { %2192 = vrot.lane.b32.xlu1 %v2187_v27, %s2814_s8  ;;  %2226 = vrot.lane.b32.xlu0 %v2222_v57, %s2815_s13  ;;  %v1848_v12 = vadd.f32 %v1843_v6, %v1798_v44  ;;  %v5282_v6 = vld [vmem:[#allocation121_spill] sm:$0xff] }
 0x3c7   :  { %v2370_v27 = vmul.f32 %v5279_v11, %v5282_v6  ;;  %v2371_v50 = vmul.f32 %v5280_v36, %v5282_v6 }
 0x3c8   :  { %v1845_v62 = vpop.permute.xlu1 %1844 }
 0x3c9   :  { %v1891_v47 = vpop.permute.xlu0 %1890  ;;  %v1849_v23 = vadd.f32 %v1845_v62, %v1799_v16 }
 0x3ca   :  { %2228 = vrot.lane.b32.xlu1 %v2223_v9, %s2815_s13  ;;  %2240 = vrot.lane.b32.xlu0 %v2236_v1, %s2816_s16  ;;  %v1896_v32 = vadd.f32 %v1891_v47, %v1848_v12  ;;  %v5283_v1 = vld [vmem:[#allocation123_spill] sm:$0xff] }
 0x3cc   :  { %v1893_v54 = vpop.permute.xlu1 %1892 }
 0x3cd   :  { %v1941_v61 = vpop.permute.xlu0 %1940  ;;  %v1897_v44 = vadd.f32 %v1893_v54, %v1849_v23  ;;  %v2382_v54 = vmul.f32 %v5279_v11, %v5283_v1 }
 0x3ce   :  { %2242 = vrot.lane.b32.xlu1 %v2237_v46, %s2816_s16  ;;  %2276 = vrot.lane.b32.xlu0 %v2272_v22, %s2817_s19  ;;  %v1946_v53 = vadd.f32 %v1941_v61, %v1896_v32  ;;  %v5284_v46 = vld [vmem:[#allocation188_spill] sm:$0xff]  ;;  %v4531_v22 = vld [vmem:[#allocation2 + $0x1d] sm:$0xff] }
 0x3cf   :  { %v2108_v43 = vmul.f32 %v4412_v33, %v5284_v46 }
 0x3d0   :  { %v1943_v34 = vpop.permute.xlu1 %1942 }
 0x3d1   :  { %v1989_v7 = vpop.permute.xlu0 %1988  ;;  %v1947_v8 = vadd.f32 %v1943_v34, %v1897_v44 }
 0x3d2   :  { %2278 = vrot.lane.b32.xlu1 %v2273_v28, %s2817_s19  ;;  %2288 = vrot.lane.b32.xlu0 %v2284_v38, %s2817_s19  ;;  %v1994_v26 = vadd.f32 %v1989_v7, %v1946_v53  ;;  %v2383_v38 = vmul.f32 %v5280_v36, %v5283_v1 }
 0x3d4   :  { %v1991_v39 = vpop.permute.xlu1 %1990 }
 0x3d5   :  { %v2039_v49 = vpop.permute.xlu0 %2038  ;;  %v1995_v16 = vadd.f32 %v1991_v39, %v1947_v8  ;;  %v5285_v39 = vld [vmem:[#allocation131_spill] sm:$0xff] }
 0x3d6   :  { %2290 = vrot.lane.b32.xlu1 %v2285_v15, %s2817_s19  ;;  %2326 = vrot.lane.b32.xlu0 %v2322_v63, %s2819_s27  ;;  %v2044_v57 = vadd.f32 %v2039_v49, %v1994_v26  ;;  %v2436_v49 = vmul.f32 %v4531_v22, %v5285_v39  ;;  %v2109_v15 = vmul.f32 %v4435_v13, %v5284_v46  ;;  %v5290_v46 = vld [vmem:[#allocation140_spill] sm:$0xff] }
 0x3d8   :  { %v2041_v58 = vpop.permute.xlu1 %2040 }
 0x3d9   :  { %v2087_v30 = vpop.permute.xlu0 %2086  ;;  %v2045_v61 = vadd.f32 %v2041_v58, %v1995_v16 }
 0x3da   :  { %2328 = vrot.lane.b32.xlu1 %v2323_v35, %s2819_s27  ;;  %2338 = vrot.lane.b32.xlu0 %v2334_v42, %s2819_s27  ;;  %v2092_v62 = vadd.f32 %v2087_v30, %v2044_v57  ;;  %v2437_v30 = vmul.f32 %v4541_v31, %v5285_v39  ;;  %v5286_v35 = vld [vmem:[#allocation133_spill] sm:$0xff]  ;;  %v5291_v39 = vld [vmem:[#allocation150_spill] sm:$0xff] }
 0x3db   :  { %v2448_v60 = vmul.f32 %v4531_v22, %v5286_v35 }
 0x3dc   :  { %v2089_v41 = vpop.permute.xlu1 %2088  ;;  %v2110_v7 = vadd.f32 %v2108_v43, %v2092_v62  ;;  %v2420_v43 = vmul.f32 %v4531_v22, %v5290_v46 }
 0x3dd   :  { %v2155_v37 = vpop.permute.xlu0 %2154  ;;  %v2093_v34 = vadd.f32 %v2089_v41, %v2045_v61  ;;  %v2449_v41 = vmul.f32 %v4541_v31, %v5286_v35  ;;  %v2535_v35 = vmul.f32 %v4228_v21, %v5291_v39 }
 0x3de   :  { %2340 = vrot.lane.b32.xlu1 %v2335_v2, %s2819_s27  ;;  %2374 = vrot.lane.b32.xlu0 %v2370_v27, %s2820_s4  ;;  %v2160_v63 = vadd.f32 %v2155_v37, %v2110_v7  ;;  %v5287_v37 = vld [vmem:[#allocation139_spill] sm:$0xff] }
 0x3df   :  { %v2111_v12 = vadd.f32 %v2109_v15, %v2093_v34  ;;  %v5288_v2 = vld [vmem:[#allocation179_spill] sm:$0xff] }
 0x3e0   :  { %v2157_v47 = vpop.permute.xlu1 %2156  ;;  %v2486_v6 = vmul.f32 %v5288_v2, %v5287_v37 }
 0x3e1   :  { %v2203_v9 = vpop.permute.xlu0 %2202  ;;  %v2161_v23 = vadd.f32 %v2157_v47, %v2111_v12  ;;  %v2487_v47 = vmul.f32 %v4228_v21, %v5287_v37 }
 0x3e2   :  { %2376 = vrot.lane.b32.xlu1 %v2371_v50, %s2820_s4  ;;  %2386 = vrot.lane.b32.xlu0 %v2382_v54, %s2820_s4  ;;  %v2208_v42 = vadd.f32 %v2203_v9, %v2160_v63  ;;  %v5289_v50 = vld [vmem:[#allocation142_spill] sm:$0xff]  ;;  %v2421_v63 = vmul.f32 %v4541_v31, %v5290_v46 }
 0x3e3   :  { %v2498_v1 = vmul.f32 %v5288_v2, %v5289_v50 }
 0x3e4   :  { %v2205_v28 = vpop.permute.xlu1 %2204 }
 0x3e5   :  { %v2253_v0 = vpop.permute.xlu0 %2252  ;;  %v2209_v27 = vadd.f32 %v2205_v28, %v2161_v23 }
 0x3e6   :  { %2388 = vrot.lane.b32.xlu1 %v2383_v38, %s2820_s4  ;;  %2440 = vrot.lane.b32.xlu0 %v2436_v49, %s2813_s3  ;;  %v2258_v53 = vadd.f32 %v2253_v0, %v2208_v42  ;;  %v2499_v38 = vmul.f32 %v4228_v21, %v5289_v50  ;;  %v2534_v49 = vmul.f32 %v5288_v2, %v5291_v39 }
 0x3e8   :  { %v2255_v32 = vpop.permute.xlu1 %2254 }
 0x3e9   :  { %v2301_v58 = vpop.permute.xlu0 %2300  ;;  %v2259_v57 = vadd.f32 %v2255_v32, %v2209_v27 }
 0x3ea   :  { %2442 = vrot.lane.b32.xlu1 %v2437_v30, %s2813_s3  ;;  %2452 = vrot.lane.b32.xlu0 %v2448_v60, %s2813_s3  ;;  %v2306_v8 = vadd.f32 %v2301_v58, %v2258_v53 }
 0x3ec   :  { %v2303_v44 = vpop.permute.xlu1 %2302 }
 0x3ed   :  { %v2351_v26 = vpop.permute.xlu0 %2350  ;;  %v2307_v54 = vadd.f32 %v2303_v44, %v2259_v57 }
 0x3ee   :  { %2454 = vrot.lane.b32.xlu1 %v2449_v41, %s2813_s3  ;;  %2490 = vrot.lane.b32.xlu0 %v2486_v6, %s2814_s8  ;;  %v2356_v16 = vadd.f32 %v2351_v26, %v2306_v8  ;;  %v5292_v41 = vld [vmem:[#allocation40_spill] sm:$0xff]  ;;  %v1822_v6 = vadd.f32 %v4473_v56, %v4424_v24 }
 0x3ef   :  { %v1850_v37 = vmul.f32 %v4036_v40, %v5292_v41 }
 0x3f0   :  { %v2353_v62 = vpop.permute.xlu1 %2352 }
 0x3f1   :  { %v2399_v9 = vpop.permute.xlu0 %2398  ;;  %v2357_v34 = vadd.f32 %v2353_v62, %v2307_v54  ;;  %v1851_v62 = vmul.f32 %v4044_v17, %v5292_v41  ;;  %v5294_v54 = vld [vmem:[#allocation55_spill] sm:$0xff] }
 0x3f2   :  { %v2404_v61 = vadd.f32 %v2399_v9, %v2356_v16  ;;  %2492 = vrot.lane.b32.xlu1 %v2487_v47, %s2814_s8  ;;  %2502 = vrot.lane.b32.xlu0 %v2498_v1, %s2814_s8  ;;  %v5293_v9 = vld [vmem:[#allocation47_spill] sm:$0xff]  ;;  %v1823_v47 = vadd.f32 %v4481_v59, %v4443_v55 }
 0x3f4   :  { %v2422_v7 = vadd.f32 %v2420_v43, %v2404_v61  ;;  %v2401_v28 = vpop.permute.xlu1 %2400  ;;  %v1948_v61 = vmul.f32 %v4052_v52, %v5294_v54  ;;  %v1949_v43 = vmul.f32 %v4064_v29, %v5294_v54 }
 0x3f5   :  { %v2467_v0 = vpop.permute.xlu0 %2466  ;;  %v2405_v15 = vadd.f32 %v2401_v28, %v2357_v34  ;;  %v5295_v34 = vld [vmem:[#allocation63_spill] sm:$0xff] }
 0x3f6   :  { %2504 = vrot.lane.b32.xlu1 %v2499_v38, %s2814_s8  ;;  %2538 = vrot.lane.b32.xlu0 %v2534_v49, %s2815_s13  ;;  %v2472_v12 = vadd.f32 %v2467_v0, %v2422_v7  ;;  %v1996_v7 = vmul.f32 %v4052_v52, %v5295_v34  ;;  %v1997_v39 = vmul.f32 %v4064_v29, %v5295_v34  ;;  %v5296_v49 = vld [vmem:[#allocation71_spill] sm:$0xff] }
 0x3f7   :  { %v2423_v32 = vadd.f32 %v2421_v63, %v2405_v15  ;;  %v2046_v15 = vmul.f32 %v4070_v5, %v5296_v49 }
 0x3f8   :  { %v2469_v58 = vpop.permute.xlu1 %2468 }
 0x3f9   :  { %v2515_v30 = vpop.permute.xlu0 %2514  ;;  %v2473_v42 = vadd.f32 %v2469_v58, %v2423_v32  ;;  %v2047_v32 = vmul.f32 %v4096_v51, %v5296_v49  ;;  %v5297_v58 = vld [vmem:[#allocation79_spill] sm:$0xff] }
 0x3fa   :  { %v2520_v60 = vadd.f32 %v2515_v30, %v2472_v12  ;;  %2540 = vrot.lane.b32.xlu1 %v2535_v35, %s2815_s13  ;;  %v2112_v30 = vmul.f32 %v4412_v33, %v5297_v58  ;;  %v2113_v5 = vmul.f32 %v4435_v13, %v5297_v58 }
 0x3fc   :  { %2558 = vrot.lane.b32.xlu0 %v2520_v60, %s2814_s8  ;;  %v2517_v23 = vpop.permute.xlu1 %2516  ;;  %v5298_v60 = vld [vmem:[#allocation87_spill] sm:$0xff] }
 0x3fd   :  { %v1829_v53 = vpop.permute.xlu0 %1828  ;;  %v2521_v44 = vadd.f32 %v2517_v23, %v2473_v42  ;;  %v2162_v42 = vmul.f32 %v5269_v19, %v5298_v60 }
 0x3fe   :  { %v1834_v26 = vadd.f32 %v1829_v53, %v4445_v25  ;;  %v1898_v25 = vmul.f32 %v4036_v40, %v5293_v9  ;;  %v2163_v53 = vmul.f32 %v5270_v3, %v5298_v60 }
 0x3ff   :  { %2560 = vrot.lane.b32.xlu1 %v2521_v44, %s2814_s8  ;;  %v5299_v44 = vld [vmem:[#allocation95_spill] sm:$0xff] }
 0x400   :  { %1854 = vrot.lane.b32.xlu0 %v1850_v37, %s2814_s8  ;;  %v1831_v27 = vpop.permute.xlu1 %1830 }
 0x401   :  { %v1867_v8 = vpop.permute.xlu0 %1866  ;;  %v1835_v57 = vadd.f32 %v1831_v27, %v4459_v48  ;;  %v1899_v48 = vmul.f32 %v4044_v17, %v5293_v9  ;;  %v2211_v27 = vmul.f32 %v5270_v3, %v5299_v44  ;;  %v5302_v3 = vld [vmem:[#allocation187_spill] sm:$0xff] }
 0x402   :  { %v1872_v16 = vadd.f32 %v1867_v8, %v1822_v6  ;;  %v5300_v8 = vld [vmem:[#allocation103_spill] sm:$0xff] }
 0x403   :  { %1856 = vrot.lane.b32.xlu1 %v1851_v62, %s2814_s8  ;;  %v2261_v9 = vmul.f32 %v5275_v18, %v5300_v8 }
 0x404   :  { %1902 = vrot.lane.b32.xlu0 %v1898_v25, %s2815_s13  ;;  %v1869_v24 = vpop.permute.xlu1 %1868  ;;  %v5301_v25 = vld [vmem:[#allocation111_spill] sm:$0xff] }
 0x405   :  { %v1879_v56 = vpop.permute.xlu0 %1878  ;;  %v1873_v50 = vadd.f32 %v1869_v24, %v1823_v47  ;;  %v2308_v47 = vmul.f32 %v5274_v4, %v5301_v25 }
 0x406   :  { %v1884_v1 = vadd.f32 %v1879_v56, %v1834_v26  ;;  %v2210_v26 = vmul.f32 %v5269_v19, %v5299_v44 }
 0x407   :  { %1904 = vrot.lane.b32.xlu1 %v1899_v48, %s2815_s13 }
 0x408   :  { %1952 = vrot.lane.b32.xlu0 %v1948_v61, %s2817_s19  ;;  %v1881_v40 = vpop.permute.xlu1 %1880 }
 0x409   :  { %v1915_v55 = vpop.permute.xlu0 %1914  ;;  %v1885_v59 = vadd.f32 %v1881_v40, %v1835_v57  ;;  %v2260_v57 = vmul.f32 %v5274_v4, %v5300_v8 }
 0x40a   :  { %v1920_v46 = vadd.f32 %v1915_v55, %v1872_v16 }
 0x40b   :  { %1954 = vrot.lane.b32.xlu1 %v1949_v43, %s2817_s19  ;;  %v2101_v43 = vmul.f32 %v4435_v13, %v5302_v3 }
 0x40c   :  { %2000 = vrot.lane.b32.xlu0 %v1996_v7, %s2818_s25  ;;  %v1917_v17 = vpop.permute.xlu1 %1916 }
 0x40d   :  { %v1929_v28 = vpop.permute.xlu0 %1928  ;;  %v1921_v0 = vadd.f32 %v1917_v17, %v1873_v50 }
 0x40e   :  { %v1934_v38 = vadd.f32 %v1929_v28, %v1884_v1  ;;  %v2100_v1 = vmul.f32 %v4412_v33, %v5302_v3  ;;  %v5304_v28 = vld [vmem:[#allocation162_spill] sm:$0xff] }
 0x40f   :  { %2002 = vrot.lane.b32.xlu1 %v1997_v39, %s2818_s25 }
 0x410   :  { %2050 = vrot.lane.b32.xlu0 %v2046_v15, %s2820_s4  ;;  %v1931_v63 = vpop.permute.xlu1 %1930 }
 0x411   :  { %v1965_v52 = vpop.permute.xlu0 %1964  ;;  %v1935_v12 = vadd.f32 %v1931_v63, %v1885_v59  ;;  %v2309_v59 = vmul.f32 %v5275_v18, %v5301_v25 }
 0x412   :  { %v1970_v6 = vadd.f32 %v1965_v52, %v1920_v46  ;;  %v5303_v46 = vld [vmem:[#allocation119_spill] sm:$0xff]  ;;  %v5305_v52 = vld [vmem:[#allocation128_spill] sm:$0xff] }
 0x413   :  { %2052 = vrot.lane.b32.xlu1 %v2047_v32, %s2820_s4  ;;  %v2358_v4 = vmul.f32 %v5279_v11, %v5303_v46  ;;  %v2359_v11 = vmul.f32 %v5280_v36, %v5303_v46  ;;  %v2105_v32 = vmul.f32 %v4435_v13, %v5304_v28 }
 0x414   :  { %2116 = vrot.lane.b32.xlu0 %v2112_v30, %s2813_s3  ;;  %v1967_v29 = vpop.permute.xlu1 %1966 }
 0x415   :  { %v1977_v35 = vpop.permute.xlu0 %1976  ;;  %v1971_v24 = vadd.f32 %v1967_v29, %v1921_v0  ;;  %v2104_v0 = vmul.f32 %v4412_v33, %v5304_v28 }
 0x416   :  { %v1982_v56 = vadd.f32 %v1977_v35, %v1934_v38  ;;  %v2425_v35 = vmul.f32 %v4541_v31, %v5305_v52 }
 0x417   :  { %2118 = vrot.lane.b32.xlu1 %v2113_v5, %s2813_s3  ;;  %v5306_v5 = vld [vmem:[#allocation137_spill] sm:$0xff] }
 0x418   :  { %2166 = vrot.lane.b32.xlu0 %v2162_v42, %s2814_s8  ;;  %v1979_v51 = vpop.permute.xlu1 %1978  ;;  %v2474_v60 = vmul.f32 %v5288_v2, %v5306_v5 }
 0x419   :  { %v2015_v23 = vpop.permute.xlu0 %2014  ;;  %v1983_v34 = vadd.f32 %v1979_v51, %v1935_v12  ;;  %v2424_v12 = vmul.f32 %v4531_v22, %v5305_v52  ;;  %v2475_v51 = vmul.f32 %v4228_v21, %v5306_v5 }
 0x41a   :  { %v2020_v16 = vadd.f32 %v2015_v23, %v1970_v6  ;;  %v5307_v23 = vld [vmem:[#allocation147_spill] sm:$0xff] }
 0x41b   :  { %2168 = vrot.lane.b32.xlu1 %v2163_v53, %s2814_s8  ;;  %v2522_v53 = vmul.f32 %v5288_v2, %v5307_v23 }
 0x41c   :  { %2214 = vrot.lane.b32.xlu0 %v2210_v26, %s2815_s13  ;;  %v2017_v41 = vpop.permute.xlu1 %2016 }
 0x41d   :  { %v2027_v37 = vpop.permute.xlu0 %2026  ;;  %v2021_v48 = vadd.f32 %v2017_v41, %v1971_v24  ;;  %v2523_v41 = vmul.f32 %v4228_v21, %v5307_v23 }
 0x41e   :  { %v2032_v54 = vadd.f32 %v2027_v37, %v1982_v56 }
 0x41f   :  { %2216 = vrot.lane.b32.xlu1 %v2211_v27, %s2815_s13 }
 0x420   :  { %2264 = vrot.lane.b32.xlu0 %v2260_v57, %s2817_s19  ;;  %v2029_v62 = vpop.permute.xlu1 %2028 }
 0x421   :  { %v2063_v19 = vpop.permute.xlu0 %2062  ;;  %v2033_v38 = vadd.f32 %v2029_v62, %v1983_v34  ;;  %v5308_v34 = vld [vmem:[#allocation154_spill] sm:$0xff] }
 0x422   :  { %v2068_v50 = vadd.f32 %v2063_v19, %v2020_v16 }
 0x423   :  { %2266 = vrot.lane.b32.xlu1 %v2261_v9, %s2817_s19 }
 0x424   :  { %2312 = vrot.lane.b32.xlu0 %v2308_v47, %s2818_s25  ;;  %v2102_v61 = vadd.f32 %v2100_v1, %v2068_v50  ;;  %v2065_v40 = vpop.permute.xlu1 %2064 }
 0x425   :  { %v2075_v55 = vpop.permute.xlu0 %2074  ;;  %v2069_v7 = vadd.f32 %v2065_v40, %v2021_v48 }
 0x426   :  { %v2080_v17 = vadd.f32 %v2075_v55, %v2032_v54 }
 0x427   :  { %2314 = vrot.lane.b32.xlu1 %v2309_v59, %s2818_s25  ;;  %v2103_v39 = vadd.f32 %v2101_v43, %v2069_v7 }
 0x428   :  { %2362 = vrot.lane.b32.xlu0 %v2358_v4, %s2820_s4  ;;  %v2106_v49 = vadd.f32 %v2104_v0, %v2080_v17  ;;  %v2077_v18 = vpop.permute.xlu1 %2076 }
 0x429   :  { %v2129_v15 = vpop.permute.xlu0 %2128  ;;  %v2081_v63 = vadd.f32 %v2077_v18, %v2033_v38 }
 0x42a   :  { %v2134_v2 = vadd.f32 %v2129_v15, %v2102_v61  ;;  %v2412_v61 = vmul.f32 %v4531_v22, %v5308_v34 }
 0x42b   :  { %2364 = vrot.lane.b32.xlu1 %v2359_v11, %s2820_s4  ;;  %v2107_v58 = vadd.f32 %v2105_v32, %v2081_v63  ;;  %v2413_v11 = vmul.f32 %v4541_v31, %v5308_v34  ;;  %v1811_v34 = vadd.f32 %v4471_v45, %v4422_v20 }
 0x42c   :  { %2428 = vrot.lane.b32.xlu0 %v2424_v12, %s2813_s3  ;;  %v2131_v30 = vpop.permute.xlu1 %2130 }
 0x42d   :  { %v2141_v29 = vpop.permute.xlu0 %2140  ;;  %v2135_v24 = vadd.f32 %v2131_v30, %v2103_v39 }
 0x42e   :  { %v2146_v56 = vadd.f32 %v2141_v29, %v2106_v49 }
 0x42f   :  { %2430 = vrot.lane.b32.xlu1 %v2425_v35, %s2813_s3  ;;  %s2596_s3 = sshll.u32 %s2821_s1, 4  ;;  %s2597_s3 = int_to_ptr.vmem [resolvable:$true] %s2596_s3 }
 0x430   :  { %2478 = vrot.lane.b32.xlu0 %v2474_v60, %s2814_s8  ;;  %v2143_v36 = vpop.permute.xlu1 %2142  ;;  %p2784_p0 = scmp.lt.s32.totalorder %s2597_s3, %s2597_s3 }
 0x431   :  { %v2179_v42 = vpop.permute.xlu0 %2178  ;;  %v2147_v40 = vadd.f32 %v2143_v36, %v2107_v58  ;;  %v5309_v58 = vld [vmem:[#allocation149_spill] sm:$0xff] }
 0x432   :  { %v2184_v47 = vadd.f32 %v2179_v42, %v2134_v2  ;;  %v2416_v30 = vmul.f32 %v4531_v22, %v5309_v58 }
 0x433   :  { %2480 = vrot.lane.b32.xlu1 %v2475_v51, %s2814_s8  ;;  %v2417_v51 = vmul.f32 %v4541_v31, %v5309_v58 }
 0x434   :  { %2526 = vrot.lane.b32.xlu0 %v2522_v53, %s2815_s13  ;;  %v2181_v44 = vpop.permute.xlu1 %2180 }
 0x435   :  { %v2191_v26 = vpop.permute.xlu0 %2190  ;;  %v2185_v21 = vadd.f32 %v2181_v44, %v2135_v24 }
 0x436   :  { %v2196_v48 = vadd.f32 %v2191_v26, %v2146_v56 }
 0x437   :  { %2528 = vrot.lane.b32.xlu1 %v2523_v41, %s2815_s13 }
 0x438   :  { %v2193_v37 = vpop.permute.xlu1 %2192 }
 0x439   :  { %v2227_v6 = vpop.permute.xlu0 %2226  ;;  %v2197_v7 = vadd.f32 %v2193_v37, %v2147_v40 }
 0x43a   :  { %v2232_v50 = vadd.f32 %v2227_v6, %v2184_v47 }
 0x43c   :  { %v2229_v27 = vpop.permute.xlu1 %2228 }
 0x43d   :  { %v2241_v8 = vpop.permute.xlu0 %2240  ;;  %v2233_v55 = vadd.f32 %v2229_v27, %v2185_v21 }
 0x43e   :  { %v2246_v59 = vadd.f32 %v2241_v8, %v2196_v48 }
 0x440   :  { %v2243_v57 = vpop.permute.xlu1 %2242 }
 0x441   :  { %v2277_v16 = vpop.permute.xlu0 %2276  ;;  %v2247_v38 = vadd.f32 %v2243_v57, %v2197_v7 }
 0x442   :  { %v2282_v54 = vadd.f32 %v2277_v16, %v2232_v50 }
 0x444   :  { %v2279_v62 = vpop.permute.xlu1 %2278 }
 0x445   :  { %v2289_v19 = vpop.permute.xlu0 %2288  ;;  %v2283_v17 = vadd.f32 %v2279_v62, %v2233_v55 }
 0x446   :  { %v2294_v28 = vadd.f32 %v2289_v19, %v2246_v59  ;;  %v1810_v59 = vadd.f32 %v4461_v10, %v4402_v14 }
 0x448   :  { %v2291_v9 = vpop.permute.xlu1 %2290 }
 0x449   :  { %v2327_v25 = vpop.permute.xlu0 %2326  ;;  %v2295_v52 = vadd.f32 %v2291_v9, %v2247_v38 }
 0x44a   :  { %v2332_v46 = vadd.f32 %v2327_v25, %v2282_v54 }
 0x44c   :  { %v2329_v3 = vpop.permute.xlu1 %2328 }
 0x44d   :  { %v2339_v1 = vpop.permute.xlu0 %2338  ;;  %v2333_v39 = vadd.f32 %v2329_v3, %v2283_v17 }
 0x44e   :  { %v2344_v49 = vadd.f32 %v2339_v1, %v2294_v28 }
 0x450   :  { %v2341_v4 = vpop.permute.xlu1 %2340 }
 0x451   :  { %v2375_v43 = vpop.permute.xlu0 %2374  ;;  %v2345_v29 = vadd.f32 %v2341_v4, %v2295_v52 }
 0x452   :  { %v2380_v0 = vadd.f32 %v2375_v43, %v2332_v46 }
 0x454   :  { %v2414_v18 = vadd.f32 %v2412_v61, %v2380_v0  ;;  %v2377_v15 = vpop.permute.xlu1 %2376 }
 0x455   :  { %v2387_v63 = vpop.permute.xlu0 %2386  ;;  %v2381_v12 = vadd.f32 %v2377_v15, %v2333_v39 }
 0x456   :  { %v2392_v32 = vadd.f32 %v2387_v63, %v2344_v49 }
 0x457   :  { %v2415_v35 = vadd.f32 %v2413_v11, %v2381_v12  ;;  %v5310_v11 = vld [vmem:[#allocation171_spill] sm:$0xff] }
 0x458   :  { %v2418_v5 = vadd.f32 %v2416_v30, %v2392_v32  ;;  %v2389_v60 = vpop.permute.xlu1 %2388  ;;  %v2096_v14 = vmul.f32 %v4412_v33, %v5310_v11  ;;  %v2097_v20 = vmul.f32 %v4435_v13, %v5310_v11 }
 0x459   :  { %v2441_v36 = vpop.permute.xlu0 %2440  ;;  %v2393_v42 = vadd.f32 %v2389_v60, %v2345_v29 }
 0x45a   :  { %v2446_v27 = vadd.f32 %v2441_v36, %v2414_v18 }
 0x45b   :  { %v2419_v23 = vadd.f32 %v2417_v51, %v2393_v42 }
 0x45c   :  { %v2443_v53 = vpop.permute.xlu1 %2442 }
 0x45d   :  { %v2453_v44 = vpop.permute.xlu0 %2452  ;;  %v2447_v62 = vadd.f32 %v2443_v53, %v2415_v35 }
 0x45e   :  { %v2458_v2 = vadd.f32 %v2453_v44, %v2418_v5 }
 0x460   :  { %v2455_v26 = vpop.permute.xlu1 %2454 }
 0x461   :  { %v2491_v41 = vpop.permute.xlu0 %2490  ;;  %v2459_v50 = vadd.f32 %v2455_v26, %v2419_v23 }
 0x462   :  { %v2496_v8 = vadd.f32 %v2491_v41, %v2446_v27 }
 0x464   :  { %v2493_v37 = vpop.permute.xlu1 %2492 }
 0x465   :  { %v2503_v6 = vpop.permute.xlu0 %2502  ;;  %v2497_v9 = vadd.f32 %v2493_v37, %v2447_v62 }
 0x466   :  { %v2508_v25 = vadd.f32 %v2503_v6, %v2458_v2 }
 0x468   :  { %v2505_v57 = vpop.permute.xlu1 %2504 }
 0x469   :  { %v2539_v16 = vpop.permute.xlu0 %2538  ;;  %v2509_v1 = vadd.f32 %v2505_v57, %v2459_v50 }
 0x46a   :  { %v2544_v19 = vadd.f32 %v2539_v16, %v2496_v8  ;;  %v5311_v16 = vld [vmem:[#allocation127_spill] sm:$0xff] }
 0x46b   :  { %v2408_v62 = vmul.f32 %v4531_v22, %v5311_v16 }
 0x46c   :  { %2548 = vrot.lane.b32.xlu0 %v2544_v19, %s2814_s8  ;;  %v2541_v47 = vpop.permute.xlu1 %2540 }
 0x46d   :  { %v2545_v24 = vadd.f32 %v2541_v47, %v2497_v9  ;;  %v2409_v47 = vmul.f32 %v4541_v31, %v5311_v16 }
 0x46e   :  { %v2559_v56 = vpop.permute.xlu0 %2558 }
 0x46f   :  { %v2564_v3 = vadd.f32 %v2559_v56, %v2508_v25  ;;  %2550 = vrot.lane.b32.xlu1 %v2545_v24, %s2814_s8  ;;  %s2779_s8 = scalar_lea.vmem %s2597_s3, 512 }
 0x470   :  { %p2780_p13 = scmp.ne.s32.totalorder %s2597_s3, %s2779_s8  ;;  %p2785_p1 = scmp.lt.s32.totalorder %s2779_s8, %s2779_s8 }
 0x471   :  { %2568 = vrot.lane.b32.xlu0 %v2564_v3, %s2817_s19  ;;  %v2561_v21 = vpop.permute.xlu1 %2560 }
 0x472   :  { %v1855_v48 = vpop.permute.xlu0 %1854  ;;  %v2565_v54 = vadd.f32 %v2561_v21, %v2509_v1  ;;  %p2786_p2 = por %p2785_p1, %p2784_p0 }
 0x473   :  { %v1860_v43 = vadd.f32 %v1855_v48, %v1810_v59 }
 0x474   :  { %2570 = vrot.lane.b32.xlu1 %v2565_v54, %s2817_s19  ;;  %p2787_p3 = pnand %p2786_p2, %p2780_p13 }
 0x475   :  { %v1857_v40 = vpop.permute.xlu1 %1856 }
 0x476   :  { %v1903_v55 = vpop.permute.xlu0 %1902  ;;  %v1861_v28 = vadd.f32 %v1857_v40, %v1811_v34 }
 0x477   :  { %v1908_v61 = vadd.f32 %v1903_v55, %v1860_v43 }
 0x479   :  { %v1905_v46 = vpop.permute.xlu1 %1904 }
 0x47a   :  { %v1953_v4 = vpop.permute.xlu0 %1952  ;;  %v1909_v38 = vadd.f32 %v1905_v46, %v1861_v28 }
 0x47b   :  { %v1958_v0 = vadd.f32 %v1953_v4, %v1908_v61 }
 0x47d   :  { %v1955_v7 = vpop.permute.xlu1 %1954 }
 0x47e   :  { %v2001_v17 = vpop.permute.xlu0 %2000  ;;  %v1959_v15 = vadd.f32 %v1955_v7, %v1909_v38 }
 0x47f   :  { %v2006_v39 = vadd.f32 %v2001_v17, %v1958_v0 }
 0x481   :  { %v2003_v49 = vpop.permute.xlu1 %2002 }
 0x482   :  { %v2051_v18 = vpop.permute.xlu0 %2050  ;;  %v2007_v10 = vadd.f32 %v2003_v49, %v1959_v15 }
 0x483   :  { %v2056_v63 = vadd.f32 %v2051_v18, %v2006_v39 }
 0x485   :  { %v2098_v52 = vadd.f32 %v2096_v14, %v2056_v63  ;;  %v2053_v12 = vpop.permute.xlu1 %2052 }
 0x486   :  { %v2117_v32 = vpop.permute.xlu0 %2116  ;;  %v2057_v58 = vadd.f32 %v2053_v12, %v2007_v10 }
 0x487   :  { %v2122_v60 = vadd.f32 %v2117_v32, %v2098_v52 }
 0x488   :  { %v2099_v45 = vadd.f32 %v2097_v20, %v2057_v58 }
 0x489   :  { %v2119_v30 = vpop.permute.xlu1 %2118 }
 0x48a   :  { %v2167_v29 = vpop.permute.xlu0 %2166  ;;  %v2123_v23 = vadd.f32 %v2119_v30, %v2099_v45 }
 0x48b   :  { %v2172_v51 = vadd.f32 %v2167_v29, %v2122_v60 }
 0x48d   :  { %v2169_v35 = vpop.permute.xlu1 %2168 }
 0x48e   :  { %v2215_v5 = vpop.permute.xlu0 %2214  ;;  %v2173_v26 = vadd.f32 %v2169_v35, %v2123_v23 }
 0x48f   :  { %v2220_v53 = vadd.f32 %v2215_v5, %v2172_v51 }
 0x491   :  { %v2217_v36 = vpop.permute.xlu1 %2216 }
 0x492   :  { %v2265_v42 = vpop.permute.xlu0 %2264  ;;  %v2221_v37 = vadd.f32 %v2217_v36, %v2173_v26 }
 0x493   :  { %v2270_v41 = vadd.f32 %v2265_v42, %v2220_v53 }
 0x495   :  { %v2267_v33 = vpop.permute.xlu1 %2266 }
 0x496   :  { %v2313_v44 = vpop.permute.xlu0 %2312  ;;  %v2271_v13 = vadd.f32 %v2267_v33, %v2221_v37 }
 0x497   :  { %v2318_v6 = vadd.f32 %v2313_v44, %v2270_v41 }
 0x499   :  { %v2315_v27 = vpop.permute.xlu1 %2314 }
 0x49a   :  { %v2363_v8 = vpop.permute.xlu0 %2362  ;;  %v2319_v19 = vadd.f32 %v2315_v27, %v2271_v13 }
 0x49b   :  { %v2368_v57 = vadd.f32 %v2363_v8, %v2318_v6 }
 0x49d   :  { %v2410_v2 = vadd.f32 %v2408_v62, %v2368_v57  ;;  %v2365_v9 = vpop.permute.xlu1 %2364 }
 0x49e   :  { %v2369_v25 = vadd.f32 %v2365_v9, %v2319_v19  ;;  %v2429_v56 = vpop.permute.xlu0 %2428 }
 0x49f   :  { %v2434_v48 = vadd.f32 %v2429_v56, %v2410_v2 }
 0x4a0   :  { %v2411_v24 = vadd.f32 %v2409_v47, %v2369_v25 }
 0x4a1   :  { %v2431_v50 = vpop.permute.xlu1 %2430 }
 0x4a2   :  { %v2479_v3 = vpop.permute.xlu0 %2478  ;;  %v2435_v59 = vadd.f32 %v2431_v50, %v2411_v24 }
 0x4a3   :  { %v2484_v54 = vadd.f32 %v2479_v3, %v2434_v48 }
 0x4a5   :  { %v2481_v1 = vpop.permute.xlu1 %2480 }
 0x4a6   :  { %v2527_v21 = vpop.permute.xlu0 %2526  ;;  %v2485_v22 = vadd.f32 %v2481_v1, %v2435_v59 }
 0x4a7   :  { %v2532_v46 = vadd.f32 %v2527_v21, %v2484_v54 }
 0x4a9   :  { %v2529_v40 = vpop.permute.xlu1 %2528 }
 0x4aa   :  { %v2533_v61 = vadd.f32 %v2529_v40, %v2485_v22 }
 0x4de   :  { %v2549_v55 = vpop.permute.xlu0 %2548 }
 0x4df   :  { %v2554_v4 = vadd.f32 %v2549_v55, %v2532_v46 }
 0x4e1   :  { %v2551_v43 = vpop.permute.xlu1 %2550 }
 0x4e2   :  { %v2555_v17 = vadd.f32 %v2551_v43, %v2533_v61 }
 0x4e3   :  { %v2569_v34 = vpop.permute.xlu0 %2568 }
 0x4e4   :  { %v2574_v7 = vadd.f32 %v2569_v34, %v2554_v4 }
 0x4e6   :  { %v2708_v31 = vmul.f32 -1.442695, %v2574_v7  ;;  %v2571_v28 = vpop.permute.xlu1 %2570 }
 0x4e7   :  { %v2575_v0 = vadd.f32 %v2571_v28, %v2555_v17 }
 0x4e8   :  { %2733 = vpow2.f32 %v2708_v31 }
 0x4e9   :  { %v2709_v38 = vmul.f32 -1.442695, %v2575_v0 }
 0x4eb   :  { %2735 = vpow2.f32 %v2709_v38 }
 0x4f2   :  { %v2734_v39 = vpop.eup %2733 }
 0x4f3   :  { %v2582_v49 = vadd.f32 1.0, %v2734_v39 }
 0x4f5   :  { %2737 = vrcp.f32 %v2582_v49  ;;  %v2736_v18 = vpop.eup %2735 }
 0x4f6   :  { %v2583_v15 = vadd.f32 1.0, %v2736_v18 }
 0x4f8   :  { %2739 = vrcp.f32 %v2583_v15 }
 0x4ff   :  { %v2738_v63 = vpop.eup %2737 }
 0x500   :  { %2589 = vst.msk [vmem:[#allocation8 + $0x10] sm:$0xff] %vm1421_vm6, %v2738_v63 }
 0x502   :  { %v2740_v11 = vpop.eup %2739 }
 0x503   :  { %2590 = vst.msk [vmem:[#allocation8 + $0x18] sm:$0xff] %vm1421_vm6, %v2740_v11 }
 0x504   :  { %2790 = shalt.err (!%p2787_p3)
}
 0x505   :  { %s2791_s19 = scalar_lea.hbm %s4719_s2, 512 }
 0x506   :  { %p2792_p4 = scmp.ne.s32.totalorder %s4719_s2, %s2791_s19  ;;  %p2795_p5 = scmp.lt.u32.totalorder %s2791_s19, %s4719_s2 }
 0x508   :  { %p2797_p6 = pnand %p2795_p5, %p2792_p4 }
 0x50a   :  { %2800 = shalt.err (!%p2797_p6)
}
 0x50b   :  { %2602 = dma.vmem_to_hbm [thread:$0]  %s2597_s3, 512, %s4719_s2, [#allocation5], %s2809_s23, %s2809_s23, %s2810_s24  }
 0x50c   :  { %2805 = dma.done.wait [#allocation5], 512  }
 0x50d   :  { %2806 = vsyncadd [#allocation5], 4294966784 }
 0x50e   :  { %2606 = vsyncpa [#allocation4], 1 }
 0x50f   :  { %2607 = vsyncpa [#allocation5], 1 }
 0x510   :  { %2608 = vsyncpa [#allocation6], 1 }

</bundles_post_ra>
